<compile_context>
chip_gen: v7x
topology: tpu7x:2x2x1
jax: 0.10.0
libtpu: 0.0.40
codegen_flags: <defaults>
</compile_context>

<pallas_src>
import functools

import jax
import jax.numpy as jnp
from jax.experimental import pallas as pl
from jax.experimental.pallas import tpu as pltpu

_LANE = 128


# ----------------------------- in-kernel helpers -----------------------------


def _gru_cell(gi, gh, h, Hp):
    """PyTorch GRUCell gate math.  gi/gh: [B, 3Hp] f32, h: [B, Hp] f32 (vreg-resident)."""
    r = jax.nn.sigmoid(gi[:, 0:Hp] + gh[:, 0:Hp])
    z = jax.nn.sigmoid(gi[:, Hp:2 * Hp] + gh[:, Hp:2 * Hp])
    n = jnp.tanh(gi[:, 2 * Hp:3 * Hp] + r * gh[:, 2 * Hp:3 * Hp])
    return (1.0 - z) * n + z * h


def _gru_step(gi, h, wh_b16, bh_b, Hp):
    gh = jnp.dot(h.astype(jnp.bfloat16), wh_b16,
                 preferred_element_type=jnp.float32) + bh_b
    return _gru_cell(gi, gh, h, Hp)


def _encoder_pass(enc_x_ref, wi_e_ref, wh_e_ref, bi_e_ref, bh_e_ref):
    """Run the encoder GRU; returns final hidden state [Bb, Hp] f32."""
    f32 = jnp.float32
    T_enc, Bb, D_in = enc_x_ref.shape
    Hp = wh_e_ref.shape[0]

    # All input gates in one batched matmul (bias folded in), off the recurrent chain.
    gi_all = (jnp.dot(enc_x_ref[...].reshape(T_enc * Bb, D_in), wi_e_ref[...],
                      preferred_element_type=f32)
              + bi_e_ref[...]).reshape(T_enc, Bb, 3 * Hp)

    wh = wh_e_ref[...]
    bh = jnp.broadcast_to(bh_e_ref[...], (Bb, 3 * Hp)).astype(f32)   # hoisted broadcast

    h = jnp.zeros((Bb, Hp), f32)
    # Static unroll keeps the carry in vregs.  NOTE: for much larger T*B switch to
    # lax.fori_loop + a VMEM scratch slab to avoid regalloc spills (fine at these sizes).
    for t in range(T_enc):
        h = _gru_step(gi_all[t], h, wh, bh, Hp)
    return h


# ----------------------------- kernels ---------------------------------------


def _kernel_teacher_forcing(enc_x_ref, dec_x_ref, tgt_ref,
                            wi_e_ref, wh_e_ref, bi_e_ref, bh_e_ref,
                            w_head_ref, b_head_ref,
                            wi_dy_ref, wi_dx_ref, bi_d_ref, wh_d_ref, bh_d_ref,
                            w_out_ref, b_out_ref,
                            enc_pred_ref, dec_out_ref):
    f32, bf16 = jnp.float32, jnp.bfloat16
    T_dec, Bb, D_exo = dec_x_ref.shape
    D_out = tgt_ref.shape[2]
    Hp = wh_d_ref.shape[0]
    Dp = enc_pred_ref.shape[1]

    # ---- decoder bulk precompute: independent of the encoder recurrence (overlaps it) ----
    gi_x_all = (jnp.dot(dec_x_ref[...].reshape(T_dec * Bb, D_exo), wi_dx_ref[...],
                        preferred_element_type=f32)
                + bi_d_ref[...]).reshape(T_dec, Bb, 3 * Hp)
    if T_dec > 1:
        gi_tgt = jnp.dot(tgt_ref[0:T_dec - 1].reshape((T_dec - 1) * Bb, D_out),
                         wi_dy_ref[...],
                         preferred_element_type=f32).reshape(T_dec - 1, Bb, 3 * Hp)

    # ---------------- encoder ----------------
    h = _encoder_pass(enc_x_ref, wi_e_ref, wh_e_ref, bi_e_ref, bh_e_ref)

    # Fused encoder heads: one matmul gives [prediction | y0 @ wi_dy] (Dp boundary is
    # lane-aligned, so both slices are whole-vreg).
    head = (jnp.dot(h.astype(bf16), w_head_ref[...],
                    preferred_element_type=f32) + b_head_ref[...])
    enc_pred_ref[...] = head[:, :Dp]
    gi_y0 = head[:, Dp:]

    # ---------------- decoder (teacher forcing) ----------------
    wh = wh_d_ref[...]
    bh = jnp.broadcast_to(bh_d_ref[...], (Bb, 3 * Hp)).astype(f32)

    hs = []
    for t in range(T_dec):                 # only the recurrent matmul stays on the chain
        gi = gi_x_all[t] + (gi_y0 if t == 0 else gi_tgt[t - 1])
        h = _gru_step(gi, h, wh, bh, Hp)
        hs.append(h)

    # Deferred output head: one batched matmul, then full-lane (Dp=128) batch-major stores.
    h_all = jnp.stack(hs, axis=0).reshape(T_dec * Bb, Hp).astype(bf16)
    y_all = (jnp.dot(h_all, w_out_ref[...], preferred_element_type=f32)
             + b_out_ref[...]).reshape(T_dec, Bb, Dp)
    for t in range(T_dec):
        dec_out_ref[:, t, :] = y_all[t]


def _kernel_autoregressive(enc_x_ref, dec_x_ref,
                           wi_e_ref, wh_e_ref, bi_e_ref, bh_e_ref,
                           w_head_ref, b_head_ref,
                           wi_dx_ref, bi_d_ref, wh_comb_ref, bh_comb_ref,
                           w_out_ref, b_out_ref,
                           enc_pred_ref, dec_out_ref):
    f32, bf16 = jnp.float32, jnp.bfloat16
    T_dec, Bb, D_exo = dec_x_ref.shape
    Hp = wh_comb_ref.shape[0]
    Dp = enc_pred_ref.shape[1]
    G = 3 * Hp

    # Exogenous input gates (and bias) precomputed in one matmul, independent of encoder.
    gi_x_all = (jnp.dot(dec_x_ref[...].reshape(T_dec * Bb, D_exo), wi_dx_ref[...],
                        preferred_element_type=f32)
                + bi_d_ref[...]).reshape(T_dec, Bb, G)

    # ---------------- encoder ----------------
    h = _encoder_pass(enc_x_ref, wi_e_ref, wh_e_ref, bi_e_ref, bh_e_ref)

    head = (jnp.dot(h.astype(bf16), w_head_ref[...],
                    preferred_element_type=f32) + b_head_ref[...])
    enc_pred_ref[...] = head[:, :Dp]
    gi_y0 = head[:, Dp:]                      # gi_y(0) = enc_transform @ wi_dy

    # ---------------- decoder (autoregressive) ----------------
    # One fused dependent matmul per step: h(t) @ [wh_d | w_out@wi_dy] yields both gh(t)
    # and gi_y(t) (= y(t) @ wi_dy for t>=1, since y(t) = h(t)@w_out + b_out).
    wh_comb = wh_comb_ref[...]
    bh_comb = jnp.broadcast_to(bh_comb_ref[...], (Bb, 2 * G)).astype(f32)

    hs = []
    for t in range(T_dec):
        hw = jnp.dot(h.astype(bf16), wh_comb,
                     preferred_element_type=f32) + bh_comb
        gh = hw[:, :G]
        giy = gi_y0 if t == 0 else hw[:, G:]
        gi = gi_x_all[t] + giy
        h = _gru_cell(gi, gh, h, Hp)
        hs.append(h)

    # Deferred output head (same as teacher forcing): one batched matmul + lane-dense stores.
    h_all = jnp.stack(hs, axis=0).reshape(T_dec * Bb, Hp).astype(bf16)
    y_all = (jnp.dot(h_all, w_out_ref[...], preferred_element_type=f32)
             + b_out_ref[...]).reshape(T_dec, Bb, Dp)
    for t in range(T_dec):
        dec_out_ref[:, t, :] = y_all[t]


# ----------------------------- one-time parameter packing ---------------------


def pack_params(params):
    """Pad / split / fuse / bf16-cast all weights ONCE (call at model init, not per step).

    - gate columns lane-padded to Hp=128 so h is a whole f32 vreg and gate slices are
      whole-vreg (padded hidden units provably stay exactly zero),
    - fused encoder head  [w_pred | w_tr @ wi_dy]  and fused recurrence [wh_d | w_out @ wi_dy]
      (products computed in f32, then cast to bf16),
    - output-head columns padded to Dp=128 for full-vreg stores.
    """
    f32, bf16 = jnp.float32, jnp.bfloat16
    H = params["wh_e"].shape[0]
    D_out = params["w_out"].shape[1]
    Hp = max(_LANE, -(-H // _LANE) * _LANE)
    Dp = max(_LANE, -(-D_out // _LANE) * _LANE)

    def gcols(w):                       # [K, 3H] -> [K, 3Hp] (zero-pad each gate block)
        K = w.shape[0]
        w3 = w.astype(f32).reshape(K, 3, H)
        return jnp.pad(w3, ((0, 0), (0, 0), (0, Hp - H))).reshape(K, 3 * Hp)

    def hrows(w):                       # [H, N] -> [Hp, N]
        return jnp.pad(w.astype(f32), ((0, Hp - H), (0, 0)))

    def dcols(w):                       # [K, D_out] -> [K, Dp]
        return jnp.pad(w.astype(f32), ((0, 0), (0, Dp - D_out)))

    wi_d = params["wi_d"].astype(f32)
    wi_dy_raw = wi_d[:D_out]            # prev-output rows of wi_d, [D_out, 3H]

    # Fused encoder head: h @ [w_pred | w_tr@wi_dy]  ->  [prediction | y0 @ wi_dy]
    w_head = jnp.concatenate(
        [dcols(params["w_pred"]), gcols(params["w_tr"].astype(f32) @ wi_dy_raw)], axis=1)
    b_head = jnp.concatenate(
        [dcols(params["b_pred"]), gcols(params["b_tr"].astype(f32) @ wi_dy_raw)], axis=1)

    # Fused autoregressive recurrence: h @ [wh_d | w_out@wi_dy]
    wh_comb = jnp.concatenate(
        [gcols(params["wh_d"]), gcols(params["w_out"].astype(f32) @ wi_dy_raw)], axis=1)
    bh_comb = jnp.concatenate(
        [gcols(params["bh_d"]), gcols(params["b_out"].astype(f32) @ wi_dy_raw)], axis=1)

    return dict(
        # encoder GRU
        wi_e=gcols(params["wi_e"]).astype(bf16),
        wh_e=hrows(gcols(params["wh_e"])).astype(bf16),
        bi_e=gcols(params["bi_e"]),                      # biases stay f32
        bh_e=gcols(params["bh_e"]),
        # fused encoder heads
        w_head_e=hrows(w_head).astype(bf16),             # [Hp, Dp + 3Hp]
        b_head_e=b_head,                                 # [1,  Dp + 3Hp]
        # decoder GRU (split input projection + teacher-forcing path)
        wi_dy=gcols(wi_dy_raw).astype(bf16),
        wi_dx=gcols(wi_d[D_out:]).astype(bf16),
        bi_d=gcols(params["bi_d"]),
        wh_d=hrows(gcols(params["wh_d"])).astype(bf16),
        bh_d=gcols(params["bh_d"]),
        # fused autoregressive recurrence
        wh_comb=hrows(wh_comb).astype(bf16),             # [Hp, 6Hp]
        bh_comb=bh_comb,                                 # [1,  6Hp]
        # decoder output head (lane-padded)
        w_out=hrows(dcols(params["w_out"])).astype(bf16),  # [Hp, Dp]
        b_out=dcols(params["b_out"]),                      # [1,  Dp]
    )


# ----------------------------- wrapper ---------------------------------------


def _pick_block_b(B):
    """Batch tile: a divisor of B that is a multiple of 8 (prefer 16 for v5e bf16 packing)."""
    if B % 8 != 0:
        return B                        # single full-size block (grid of 1)
    bb = min(B, 256)
    while bb > 8 and (B % bb != 0 or bb % 16 != 0):
        bb -= 8
    if B % bb != 0:
        bb = 8
    return bb


@functools.partial(jax.jit, static_argnames=("validate",))
def seq2seq_forward(enc_inputs, dec_inputs, target_vars, packed, validate=False):
    """enc_inputs:[B,T_enc,D_in] dec_inputs:[B,T_dec,D_exo] target_vars:[B,T_dec,D_out].

    `packed` = pack_params(params), produced once at init (hoisted out of this path).
    """
    B, T_enc, D_in = enc_inputs.shape
    _, T_dec, D_exo = dec_inputs.shape
    D_out = target_vars.shape[-1]
    Hp = packed["wh_d"].shape[0]
    Dp = packed["w_out"].shape[1]

    f32, bf16 = jnp.float32, jnp.bfloat16

    # Time-major bf16 activations (f32 accumulation inside the kernel).  These three tiny
    # transposes/casts are the only remaining per-call pre-kernel ops.
    enc_x = jnp.transpose(enc_inputs, (1, 0, 2)).astype(bf16)
    dec_x = jnp.transpose(dec_inputs, (1, 0, 2)).astype(bf16)

    Bb = _pick_block_b(B)
    grid = (B // Bb,)

    def seq_spec(T, D):
        return pl.BlockSpec((T, Bb, D), lambda i: (0, i, 0))

    def full_spec(a):
        zeros = (0,) * a.ndim
        return pl.BlockSpec(a.shape, lambda i, _z=zeros: _z)

    if validate:
        kernel = _kernel_autoregressive
        weights = (packed["wi_e"], packed["wh_e"], packed["bi_e"], packed["bh_e"],
                   packed["w_head_e"], packed["b_head_e"],
                   packed["wi_dx"], packed["bi_d"],
                   packed["wh_comb"], packed["bh_comb"],
                   packed["w_out"], packed["b_out"])
        args = (enc_x, dec_x) + weights            # no target DMA in validate mode
        in_specs = [seq_spec(T_enc, D_in), seq_spec(T_dec, D_exo)] + \
                   [full_spec(a) for a in weights]
    else:
        kernel = _kernel_teacher_forcing
        tgt = jnp.transpose(target_vars, (1, 0, 2)).astype(bf16)
        weights = (packed["wi_e"], packed["wh_e"], packed["bi_e"], packed["bh_e"],
                   packed["w_head_e"], packed["b_head_e"],
                   packed["wi_dy"], packed["wi_dx"], packed["bi_d"],
                   packed["wh_d"], packed["bh_d"],
                   packed["w_out"], packed["b_out"])
        args = (enc_x, dec_x, tgt) + weights
        in_specs = [seq_spec(T_enc, D_in), seq_spec(T_dec, D_exo), seq_spec(T_dec, D_out)] + \
                   [full_spec(a) for a in weights]

    # Explicit VMEM budget with headroom (keeps the config portable to v7x's 64 MiB).
    w_bytes = sum(v.size * v.dtype.itemsize for v in packed.values())
    blk_in = (T_enc * Bb * D_in + T_dec * Bb * D_exo
              + (0 if validate else T_dec * Bb * D_out)) * 2
    blk_out = (Bb * Dp + Bb * T_dec * Dp) * 4
    inter = ((T_enc + 2 * T_dec) * Bb * 3 * Hp
             + T_dec * Bb * (2 * Hp + Dp) + Bb * (Dp + 6 * Hp)) * 4
    vmem_limit = int(max(32 << 20,
                         min(64 << 20, 2 * (w_bytes + 2 * (blk_in + blk_out) + inter))))

    enc_pred_p, dec_out_p = pl.pallas_call(
        kernel,
        out_shape=(
            jax.ShapeDtypeStruct((B, Dp), f32),             # encoder_prediction (lane-padded)
            jax.ShapeDtypeStruct((B, T_dec, Dp), f32),      # decoder_outputs, batch-major
        ),
        grid=grid,
        in_specs=in_specs,
        out_specs=(pl.BlockSpec((Bb, Dp), lambda i: (i, 0)),
                   pl.BlockSpec((Bb, T_dec, Dp), lambda i: (i, 0, 0))),
        compiler_params=pltpu.CompilerParams(
            dimension_semantics=("parallel",),              # batch blocks across TCs (v7x)
            vmem_limit_bytes=vmem_limit),
    )(*args)

    # Only the lane padding is sliced off; no post-kernel transpose.
    return enc_pred_p[:, :D_out], dec_out_p[:, :, :D_out]


# --------------------------- pure-JAX reference -------------------------------


def _ref_forward(enc_inputs, dec_inputs, target_vars, params, validate=False):
    H = params["wh_e"].shape[0]

    def gru(x, h, wi, wh, bi, bh):
        gi = x @ wi + bi
        gh = h @ wh + bh
        r = jax.nn.sigmoid(gi[:, :H] + gh[:, :H])
        z = jax.nn.sigmoid(gi[:, H:2 * H] + gh[:, H:2 * H])
        n = jnp.tanh(gi[:, 2 * H:] + r * gh[:, 2 * H:])
        return (1 - z) * n + z * h

    B = enc_inputs.shape[0]
    h = jnp.zeros((B, H), jnp.float32)
    for t in range(enc_inputs.shape[1]):
        h = gru(enc_inputs[:, t], h, params["wi_e"], params["wh_e"],
                params["bi_e"], params["bh_e"])
    enc_pred = h @ params["w_pred"] + params["b_pred"]
    y = h @ params["w_tr"] + params["b_tr"]
    outs = []
    for t in range(dec_inputs.shape[1]):
        x_t = jnp.concatenate([y, dec_inputs[:, t]], axis=-1)
        h = gru(x_t, h, params["wi_d"], params["wh_d"],
                params["bi_d"], params["bh_d"])
        y_t = h @ params["w_out"] + params["b_out"]
        outs.append(y_t)
        y = y_t if validate else target_vars[:, t]
    return enc_pred, jnp.stack(outs, axis=1)


# ------------------------------- main -----------------------------------------


if __name__ == "__main__":
    B, T_ENC, T_DEC = 8, 8, 8
    D_IN, D_EXO, D_OUT, H = 16, 16, 16, 32

    key = jax.random.PRNGKey(0)
    ks = jax.random.split(key, 20)
    f32 = jnp.float32

    def init(k, shape, scale=0.1):
        return (scale * jax.random.normal(k, shape)).astype(f32)

    params = {
        # encoder GRU
        "wi_e": init(ks[0], (D_IN, 3 * H)),
        "wh_e": init(ks[1], (H, 3 * H)),
        "bi_e": init(ks[2], (1, 3 * H)),
        "bh_e": init(ks[3], (1, 3 * H)),
        # encoder heads
        "w_pred": init(ks[4], (H, D_OUT)),
        "b_pred": init(ks[5], (1, D_OUT)),
        "w_tr": init(ks[6], (H, D_OUT)),
        "b_tr": init(ks[7], (1, D_OUT)),
        # decoder GRU (input = [prev_output, dec_entity])
        "wi_d": init(ks[8], (D_OUT + D_EXO, 3 * H)),
        "wh_d": init(ks[9], (H, 3 * H)),
        "bi_d": init(ks[10], (1, 3 * H)),
        "bh_d": init(ks[11], (1, 3 * H)),
        # decoder output head
        "w_out": init(ks[12], (H, D_OUT)),
        "b_out": init(ks[13], (1, D_OUT)),
    }

    enc_inputs = init(ks[14], (B, T_ENC, D_IN), scale=1.0)
    dec_inputs = init(ks[15], (B, T_DEC, D_EXO), scale=1.0)
    target_vars = init(ks[16], (B, T_DEC, D_OUT), scale=1.0)

    # One-time packing (hoisted out of the per-call path).
    packed = pack_params(params)

    # --- teacher forcing (validate=False) ---
    enc_pred, dec_out = seq2seq_forward(
        enc_inputs, dec_inputs, target_vars, packed, validate=False)
    jax.block_until_ready((enc_pred, dec_out))
    ref_pred, ref_out = _ref_forward(
        enc_inputs, dec_inputs, target_vars, params, validate=False)
    assert enc_pred.shape == (B, D_OUT)
    assert dec_out.shape == (B, T_DEC, D_OUT)
    assert jnp.allclose(enc_pred, ref_pred, atol=3e-2, rtol=3e-2)
    assert jnp.allclose(dec_out, ref_out, atol=3e-2, rtol=3e-2)

    # --- autoregressive (validate=True) ---
    enc_pred_v, dec_out_v = seq2seq_forward(
        enc_inputs, dec_inputs, target_vars, packed, validate=True)
    jax.block_until_ready((enc_pred_v, dec_out_v))
    ref_pred_v, ref_out_v = _ref_forward(
        enc_inputs, dec_inputs, target_vars, params, validate=True)
    assert jnp.allclose(enc_pred_v, ref_pred_v, atol=3e-2, rtol=3e-2)
    assert jnp.allclose(dec_out_v, ref_out_v, atol=3e-2, rtol=3e-2)

    print("KERNEL_OK")
</pallas_src>

<mosaic_0001>
module attributes {stable_mosaic.version = 11 : i64} {
  func.func @_kernel_teacher_forcing(%arg0: i32, %arg1: memref<8x8x16xbf16, #tpu.memory_space<vmem>>, %arg2: memref<8x8x16xbf16, #tpu.memory_space<vmem>>, %arg3: memref<8x8x16xbf16, #tpu.memory_space<vmem>>, %arg4: memref<16x384xbf16, #tpu.memory_space<vmem>>, %arg5: memref<128x384xbf16, #tpu.memory_space<vmem>>, %arg6: memref<1x384xf32, #tpu.memory_space<vmem>>, %arg7: memref<1x384xf32, #tpu.memory_space<vmem>>, %arg8: memref<128x512xbf16, #tpu.memory_space<vmem>>, %arg9: memref<1x512xf32, #tpu.memory_space<vmem>>, %arg10: memref<16x384xbf16, #tpu.memory_space<vmem>>, %arg11: memref<16x384xbf16, #tpu.memory_space<vmem>>, %arg12: memref<1x384xf32, #tpu.memory_space<vmem>>, %arg13: memref<128x384xbf16, #tpu.memory_space<vmem>>, %arg14: memref<1x384xf32, #tpu.memory_space<vmem>>, %arg15: memref<128x128xbf16, #tpu.memory_space<vmem>>, %arg16: memref<1x128xf32, #tpu.memory_space<vmem>>, %arg17: memref<8x128xf32, #tpu.memory_space<vmem>>, %arg18: memref<8x8x128xf32, #tpu.memory_space<vmem>>) attributes {dimension_semantics = [#tpu.dimension_semantics<parallel>], iteration_bounds = array<i64: 1>, scalar_prefetch = 0 : i64, scratch_operands = 0 : i64, tpu.core_type = #tpu.core_type<tc>, window_params = [{transform_indices = @transform_0, window_bounds = array<i64: 8, 8, 16>}, {transform_indices = @transform_1, window_bounds = array<i64: 8, 8, 16>}, {transform_indices = @transform_2, window_bounds = array<i64: 8, 8, 16>}, {pipeline_mode = #tpu.pipeline_mode<synchronous>, transform_indices = @transform_3, window_bounds = array<i64: 16, 384>}, {pipeline_mode = #tpu.pipeline_mode<synchronous>, transform_indices = @transform_4, window_bounds = array<i64: 128, 384>}, {pipeline_mode = #tpu.pipeline_mode<synchronous>, transform_indices = @transform_5, window_bounds = array<i64: 1, 384>}, {pipeline_mode = #tpu.pipeline_mode<synchronous>, transform_indices = @transform_6, window_bounds = array<i64: 1, 384>}, {pipeline_mode = #tpu.pipeline_mode<synchronous>, transform_indices = @transform_7, window_bounds = array<i64: 128, 512>}, {pipeline_mode = #tpu.pipeline_mode<synchronous>, transform_indices = @transform_8, window_bounds = array<i64: 1, 512>}, {pipeline_mode = #tpu.pipeline_mode<synchronous>, transform_indices = @transform_9, window_bounds = array<i64: 16, 384>}, {pipeline_mode = #tpu.pipeline_mode<synchronous>, transform_indices = @transform_10, window_bounds = array<i64: 16, 384>}, {pipeline_mode = #tpu.pipeline_mode<synchronous>, transform_indices = @transform_11, window_bounds = array<i64: 1, 384>}, {pipeline_mode = #tpu.pipeline_mode<synchronous>, transform_indices = @transform_12, window_bounds = array<i64: 128, 384>}, {pipeline_mode = #tpu.pipeline_mode<synchronous>, transform_indices = @transform_13, window_bounds = array<i64: 1, 384>}, {pipeline_mode = #tpu.pipeline_mode<synchronous>, transform_indices = @transform_14, window_bounds = array<i64: 128, 128>}, {pipeline_mode = #tpu.pipeline_mode<synchronous>, transform_indices = @transform_15, window_bounds = array<i64: 1, 128>}, {transform_indices = @transform_16, window_bounds = array<i64: 8, 128>}, {transform_indices = @transform_17, window_bounds = array<i64: 8, 8, 128>}]} {
    %c0 = arith.constant 0 : index
    %c0_0 = arith.constant 0 : index
    %c0_1 = arith.constant 0 : index
    %0 = vector.load %arg2[%c0, %c0_0, %c0_1] : memref<8x8x16xbf16, #tpu.memory_space<vmem>>, vector<8x8x16xbf16>
    %1 = vector.shape_cast %0 : vector<8x8x16xbf16> to vector<64x16xbf16>
    %c0_2 = arith.constant 0 : index
    %c0_3 = arith.constant 0 : index
    %2 = vector.load %arg11[%c0_2, %c0_3] : memref<16x384xbf16, #tpu.memory_space<vmem>>, vector<16x384xbf16>
    %cst = arith.constant dense<0.000000e+00> : vector<64x384xf32>
    %3 = tpu.matmul %1, %2, %cst {dimension_numbers = #tpu.dot_dimension_numbers<[1], [0], [0], [1], [0, 0, 1, 1], [], []>} : vector<64x16xbf16>, vector<16x384xbf16>, vector<64x384xf32> -> vector<64x384xf32>
    %c0_4 = arith.constant 0 : index
    %c0_5 = arith.constant 0 : index
    %4 = vector.load %arg12[%c0_4, %c0_5] : memref<1x384xf32, #tpu.memory_space<vmem>>, vector<1x384xf32>
    %5 = vector.broadcast %4 : vector<1x384xf32> to vector<64x384xf32>
    %6 = arith.addf %3, %5 : vector<64x384xf32>
    %7 = vector.shape_cast %6 : vector<64x384xf32> to vector<8x8x384xf32>
    %c0_6 = arith.constant 0 : index
    %c0_7 = arith.constant 0 : index
    %c0_8 = arith.constant 0 : index
    %8 = vector.load %arg3[%c0_6, %c0_7, %c0_8] : memref<8x8x16xbf16, #tpu.memory_space<vmem>>, vector<7x8x16xbf16>
    %9 = vector.shape_cast %8 : vector<7x8x16xbf16> to vector<56x16xbf16>
    %c0_9 = arith.constant 0 : index
    %c0_10 = arith.constant 0 : index
    %10 = vector.load %arg10[%c0_9, %c0_10] : memref<16x384xbf16, #tpu.memory_space<vmem>>, vector<16x384xbf16>
    %cst_11 = arith.constant dense<0.000000e+00> : vector<56x384xf32>
    %11 = tpu.matmul %9, %10, %cst_11 {dimension_numbers = #tpu.dot_dimension_numbers<[1], [0], [0], [1], [0, 0, 1, 1], [], []>} : vector<56x16xbf16>, vector<16x384xbf16>, vector<56x384xf32> -> vector<56x384xf32>
    %12 = vector.shape_cast %11 : vector<56x384xf32> to vector<7x8x384xf32>
    %c0_12 = arith.constant 0 : index
    %c0_13 = arith.constant 0 : index
    %c0_14 = arith.constant 0 : index
    %13 = vector.load %arg1[%c0_12, %c0_13, %c0_14] : memref<8x8x16xbf16, #tpu.memory_space<vmem>>, vector<8x8x16xbf16>
    %14 = vector.shape_cast %13 : vector<8x8x16xbf16> to vector<64x16xbf16>
    %c0_15 = arith.constant 0 : index
    %c0_16 = arith.constant 0 : index
    %15 = vector.load %arg4[%c0_15, %c0_16] : memref<16x384xbf16, #tpu.memory_space<vmem>>, vector<16x384xbf16>
    %cst_17 = arith.constant dense<0.000000e+00> : vector<64x384xf32>
    %16 = tpu.matmul %14, %15, %cst_17 {dimension_numbers = #tpu.dot_dimension_numbers<[1], [0], [0], [1], [0, 0, 1, 1], [], []>} : vector<64x16xbf16>, vector<16x384xbf16>, vector<64x384xf32> -> vector<64x384xf32>
    %c0_18 = arith.constant 0 : index
    %c0_19 = arith.constant 0 : index
    %17 = vector.load %arg6[%c0_18, %c0_19] : memref<1x384xf32, #tpu.memory_space<vmem>>, vector<1x384xf32>
    %18 = vector.broadcast %17 : vector<1x384xf32> to vector<64x384xf32>
    %19 = arith.addf %16, %18 : vector<64x384xf32>
    %20 = vector.shape_cast %19 : vector<64x384xf32> to vector<8x8x384xf32>
    %c0_20 = arith.constant 0 : index
    %c0_21 = arith.constant 0 : index
    %21 = vector.load %arg5[%c0_20, %c0_21] : memref<128x384xbf16, #tpu.memory_space<vmem>>, vector<128x384xbf16>
    %c0_22 = arith.constant 0 : index
    %c0_23 = arith.constant 0 : index
    %22 = vector.load %arg7[%c0_22, %c0_23] : memref<1x384xf32, #tpu.memory_space<vmem>>, vector<1x384xf32>
    %23 = vector.shape_cast %22 : vector<1x384xf32> to vector<1x384xf32>
    %24 = vector.broadcast %23 : vector<1x384xf32> to vector<8x384xf32>
    %cst_24 = arith.constant 0.000000e+00 : f32
    %25 = vector.broadcast %cst_24 : f32 to vector<8x128xf32>
    %26 = vector.extract_strided_slice %20 {offsets = [0, 0, 0], sizes = [1, 8, 384], strides = [1, 1, 1]} : vector<8x8x384xf32> to vector<1x8x384xf32>
    %27 = vector.shape_cast %26 : vector<1x8x384xf32> to vector<8x384xf32>
    %28 = arith.truncf %25 : vector<8x128xf32> to vector<8x128xbf16>
    %cst_25 = arith.constant dense<0.000000e+00> : vector<8x384xf32>
    %29 = tpu.matmul %28, %21, %cst_25 {dimension_numbers = #tpu.dot_dimension_numbers<[1], [0], [0], [1], [0, 0, 1, 1], [], []>} : vector<8x128xbf16>, vector<128x384xbf16>, vector<8x384xf32> -> vector<8x384xf32>
    %30 = arith.addf %29, %24 : vector<8x384xf32>
    %31 = vector.extract_strided_slice %27 {offsets = [0, 0], sizes = [8, 128], strides = [1, 1]} : vector<8x384xf32> to vector<8x128xf32>
    %32 = vector.extract_strided_slice %30 {offsets = [0, 0], sizes = [8, 128], strides = [1, 1]} : vector<8x384xf32> to vector<8x128xf32>
    %33 = arith.addf %31, %32 : vector<8x128xf32>
    %34 = arith.negf %33 : vector<8x128xf32>
    %35 = math.exp %34 : vector<8x128xf32>
    %cst_26 = arith.constant 1.000000e+00 : f32
    %36 = vector.broadcast %cst_26 : f32 to vector<8x128xf32>
    %37 = arith.addf %36, %35 : vector<8x128xf32>
    %38 = arith.divf %36, %37 : vector<8x128xf32>
    %39 = vector.extract_strided_slice %27 {offsets = [0, 128], sizes = [8, 128], strides = [1, 1]} : vector<8x384xf32> to vector<8x128xf32>
    %40 = vector.extract_strided_slice %30 {offsets = [0, 128], sizes = [8, 128], strides = [1, 1]} : vector<8x384xf32> to vector<8x128xf32>
    %41 = arith.addf %39, %40 : vector<8x128xf32>
    %42 = arith.negf %41 : vector<8x128xf32>
    %43 = math.exp %42 : vector<8x128xf32>
    %cst_27 = arith.constant 1.000000e+00 : f32
    %44 = vector.broadcast %cst_27 : f32 to vector<8x128xf32>
    %45 = arith.addf %44, %43 : vector<8x128xf32>
    %46 = arith.divf %44, %45 : vector<8x128xf32>
    %47 = vector.extract_strided_slice %27 {offsets = [0, 256], sizes = [8, 128], strides = [1, 1]} : vector<8x384xf32> to vector<8x128xf32>
    %48 = vector.extract_strided_slice %30 {offsets = [0, 256], sizes = [8, 128], strides = [1, 1]} : vector<8x384xf32> to vector<8x128xf32>
    %49 = arith.mulf %38, %48 : vector<8x128xf32>
    %50 = arith.addf %47, %49 : vector<8x128xf32>
    %51 = math.tanh %50 : vector<8x128xf32>
    %cst_28 = arith.constant 1.000000e+00 : f32
    %52 = vector.broadcast %cst_28 : f32 to vector<8x128xf32>
    %53 = arith.subf %52, %46 : vector<8x128xf32>
    %54 = arith.mulf %53, %51 : vector<8x128xf32>
    %55 = arith.mulf %46, %25 : vector<8x128xf32>
    %56 = arith.addf %54, %55 : vector<8x128xf32>
    %57 = vector.extract_strided_slice %20 {offsets = [1, 0, 0], sizes = [1, 8, 384], strides = [1, 1, 1]} : vector<8x8x384xf32> to vector<1x8x384xf32>
    %58 = vector.shape_cast %57 : vector<1x8x384xf32> to vector<8x384xf32>
    %59 = arith.truncf %56 : vector<8x128xf32> to vector<8x128xbf16>
    %cst_29 = arith.constant dense<0.000000e+00> : vector<8x384xf32>
    %60 = tpu.matmul %59, %21, %cst_29 {dimension_numbers = #tpu.dot_dimension_numbers<[1], [0], [0], [1], [0, 0, 1, 1], [], []>} : vector<8x128xbf16>, vector<128x384xbf16>, vector<8x384xf32> -> vector<8x384xf32>
    %61 = arith.addf %60, %24 : vector<8x384xf32>
    %62 = vector.extract_strided_slice %58 {offsets = [0, 0], sizes = [8, 128], strides = [1, 1]} : vector<8x384xf32> to vector<8x128xf32>
    %63 = vector.extract_strided_slice %61 {offsets = [0, 0], sizes = [8, 128], strides = [1, 1]} : vector<8x384xf32> to vector<8x128xf32>
    %64 = arith.addf %62, %63 : vector<8x128xf32>
    %65 = arith.negf %64 : vector<8x128xf32>
    %66 = math.exp %65 : vector<8x128xf32>
    %cst_30 = arith.constant 1.000000e+00 : f32
    %67 = vector.broadcast %cst_30 : f32 to vector<8x128xf32>
    %68 = arith.addf %67, %66 : vector<8x128xf32>
    %69 = arith.divf %67, %68 : vector<8x128xf32>
    %70 = vector.extract_strided_slice %58 {offsets = [0, 128], sizes = [8, 128], strides = [1, 1]} : vector<8x384xf32> to vector<8x128xf32>
    %71 = vector.extract_strided_slice %61 {offsets = [0, 128], sizes = [8, 128], strides = [1, 1]} : vector<8x384xf32> to vector<8x128xf32>
    %72 = arith.addf %70, %71 : vector<8x128xf32>
    %73 = arith.negf %72 : vector<8x128xf32>
    %74 = math.exp %73 : vector<8x128xf32>
    %cst_31 = arith.constant 1.000000e+00 : f32
    %75 = vector.broadcast %cst_31 : f32 to vector<8x128xf32>
    %76 = arith.addf %75, %74 : vector<8x128xf32>
    %77 = arith.divf %75, %76 : vector<8x128xf32>
    %78 = vector.extract_strided_slice %58 {offsets = [0, 256], sizes = [8, 128], strides = [1, 1]} : vector<8x384xf32> to vector<8x128xf32>
    %79 = vector.extract_strided_slice %61 {offsets = [0, 256], sizes = [8, 128], strides = [1, 1]} : vector<8x384xf32> to vector<8x128xf32>
    %80 = arith.mulf %69, %79 : vector<8x128xf32>
    %81 = arith.addf %78, %80 : vector<8x128xf32>
    %82 = math.tanh %81 : vector<8x128xf32>
    %cst_32 = arith.constant 1.000000e+00 : f32
    %83 = vector.broadcast %cst_32 : f32 to vector<8x128xf32>
    %84 = arith.subf %83, %77 : vector<8x128xf32>
    %85 = arith.mulf %84, %82 : vector<8x128xf32>
    %86 = arith.mulf %77, %56 : vector<8x128xf32>
    %87 = arith.addf %85, %86 : vector<8x128xf32>
    %88 = vector.extract_strided_slice %20 {offsets = [2, 0, 0], sizes = [1, 8, 384], strides = [1, 1, 1]} : vector<8x8x384xf32> to vector<1x8x384xf32>
    %89 = vector.shape_cast %88 : vector<1x8x384xf32> to vector<8x384xf32>
    %90 = arith.truncf %87 : vector<8x128xf32> to vector<8x128xbf16>
    %cst_33 = arith.constant dense<0.000000e+00> : vector<8x384xf32>
    %91 = tpu.matmul %90, %21, %cst_33 {dimension_numbers = #tpu.dot_dimension_numbers<[1], [0], [0], [1], [0, 0, 1, 1], [], []>} : vector<8x128xbf16>, vector<128x384xbf16>, vector<8x384xf32> -> vector<8x384xf32>
    %92 = arith.addf %91, %24 : vector<8x384xf32>
    %93 = vector.extract_strided_slice %89 {offsets = [0, 0], sizes = [8, 128], strides = [1, 1]} : vector<8x384xf32> to vector<8x128xf32>
    %94 = vector.extract_strided_slice %92 {offsets = [0, 0], sizes = [8, 128], strides = [1, 1]} : vector<8x384xf32> to vector<8x128xf32>
    %95 = arith.addf %93, %94 : vector<8x128xf32>
    %96 = arith.negf %95 : vector<8x128xf32>
    %97 = math.exp %96 : vector<8x128xf32>
    %cst_34 = arith.constant 1.000000e+00 : f32
    %98 = vector.broadcast %cst_34 : f32 to vector<8x128xf32>
    %99 = arith.addf %98, %97 : vector<8x128xf32>
    %100 = arith.divf %98, %99 : vector<8x128xf32>
    %101 = vector.extract_strided_slice %89 {offsets = [0, 128], sizes = [8, 128], strides = [1, 1]} : vector<8x384xf32> to vector<8x128xf32>
    %102 = vector.extract_strided_slice %92 {offsets = [0, 128], sizes = [8, 128], strides = [1, 1]} : vector<8x384xf32> to vector<8x128xf32>
    %103 = arith.addf %101, %102 : vector<8x128xf32>
    %104 = arith.negf %103 : vector<8x128xf32>
    %105 = math.exp %104 : vector<8x128xf32>
    %cst_35 = arith.constant 1.000000e+00 : f32
    %106 = vector.broadcast %cst_35 : f32 to vector<8x128xf32>
    %107 = arith.addf %106, %105 : vector<8x128xf32>
    %108 = arith.divf %106, %107 : vector<8x128xf32>
    %109 = vector.extract_strided_slice %89 {offsets = [0, 256], sizes = [8, 128], strides = [1, 1]} : vector<8x384xf32> to vector<8x128xf32>
    %110 = vector.extract_strided_slice %92 {offsets = [0, 256], sizes = [8, 128], strides = [1, 1]} : vector<8x384xf32> to vector<8x128xf32>
    %111 = arith.mulf %100, %110 : vector<8x128xf32>
    %112 = arith.addf %109, %111 : vector<8x128xf32>
    %113 = math.tanh %112 : vector<8x128xf32>
    %cst_36 = arith.constant 1.000000e+00 : f32
    %114 = vector.broadcast %cst_36 : f32 to vector<8x128xf32>
    %115 = arith.subf %114, %108 : vector<8x128xf32>
    %116 = arith.mulf %115, %113 : vector<8x128xf32>
    %117 = arith.mulf %108, %87 : vector<8x128xf32>
    %118 = arith.addf %116, %117 : vector<8x128xf32>
    %119 = vector.extract_strided_slice %20 {offsets = [3, 0, 0], sizes = [1, 8, 384], strides = [1, 1, 1]} : vector<8x8x384xf32> to vector<1x8x384xf32>
    %120 = vector.shape_cast %119 : vector<1x8x384xf32> to vector<8x384xf32>
    %121 = arith.truncf %118 : vector<8x128xf32> to vector<8x128xbf16>
    %cst_37 = arith.constant dense<0.000000e+00> : vector<8x384xf32>
    %122 = tpu.matmul %121, %21, %cst_37 {dimension_numbers = #tpu.dot_dimension_numbers<[1], [0], [0], [1], [0, 0, 1, 1], [], []>} : vector<8x128xbf16>, vector<128x384xbf16>, vector<8x384xf32> -> vector<8x384xf32>
    %123 = arith.addf %122, %24 : vector<8x384xf32>
    %124 = vector.extract_strided_slice %120 {offsets = [0, 0], sizes = [8, 128], strides = [1, 1]} : vector<8x384xf32> to vector<8x128xf32>
    %125 = vector.extract_strided_slice %123 {offsets = [0, 0], sizes = [8, 128], strides = [1, 1]} : vector<8x384xf32> to vector<8x128xf32>
    %126 = arith.addf %124, %125 : vector<8x128xf32>
    %127 = arith.negf %126 : vector<8x128xf32>
    %128 = math.exp %127 : vector<8x128xf32>
    %cst_38 = arith.constant 1.000000e+00 : f32
    %129 = vector.broadcast %cst_38 : f32 to vector<8x128xf32>
    %130 = arith.addf %129, %128 : vector<8x128xf32>
    %131 = arith.divf %129, %130 : vector<8x128xf32>
    %132 = vector.extract_strided_slice %120 {offsets = [0, 128], sizes = [8, 128], strides = [1, 1]} : vector<8x384xf32> to vector<8x128xf32>
    %133 = vector.extract_strided_slice %123 {offsets = [0, 128], sizes = [8, 128], strides = [1, 1]} : vector<8x384xf32> to vector<8x128xf32>
    %134 = arith.addf %132, %133 : vector<8x128xf32>
    %135 = arith.negf %134 : vector<8x128xf32>
    %136 = math.exp %135 : vector<8x128xf32>
    %cst_39 = arith.constant 1.000000e+00 : f32
    %137 = vector.broadcast %cst_39 : f32 to vector<8x128xf32>
    %138 = arith.addf %137, %136 : vector<8x128xf32>
    %139 = arith.divf %137, %138 : vector<8x128xf32>
    %140 = vector.extract_strided_slice %120 {offsets = [0, 256], sizes = [8, 128], strides = [1, 1]} : vector<8x384xf32> to vector<8x128xf32>
    %141 = vector.extract_strided_slice %123 {offsets = [0, 256], sizes = [8, 128], strides = [1, 1]} : vector<8x384xf32> to vector<8x128xf32>
    %142 = arith.mulf %131, %141 : vector<8x128xf32>
    %143 = arith.addf %140, %142 : vector<8x128xf32>
    %144 = math.tanh %143 : vector<8x128xf32>
    %cst_40 = arith.constant 1.000000e+00 : f32
    %145 = vector.broadcast %cst_40 : f32 to vector<8x128xf32>
    %146 = arith.subf %145, %139 : vector<8x128xf32>
    %147 = arith.mulf %146, %144 : vector<8x128xf32>
    %148 = arith.mulf %139, %118 : vector<8x128xf32>
    %149 = arith.addf %147, %148 : vector<8x128xf32>
    %150 = vector.extract_strided_slice %20 {offsets = [4, 0, 0], sizes = [1, 8, 384], strides = [1, 1, 1]} : vector<8x8x384xf32> to vector<1x8x384xf32>
    %151 = vector.shape_cast %150 : vector<1x8x384xf32> to vector<8x384xf32>
    %152 = arith.truncf %149 : vector<8x128xf32> to vector<8x128xbf16>
    %cst_41 = arith.constant dense<0.000000e+00> : vector<8x384xf32>
    %153 = tpu.matmul %152, %21, %cst_41 {dimension_numbers = #tpu.dot_dimension_numbers<[1], [0], [0], [1], [0, 0, 1, 1], [], []>} : vector<8x128xbf16>, vector<128x384xbf16>, vector<8x384xf32> -> vector<8x384xf32>
    %154 = arith.addf %153, %24 : vector<8x384xf32>
    %155 = vector.extract_strided_slice %151 {offsets = [0, 0], sizes = [8, 128], strides = [1, 1]} : vector<8x384xf32> to vector<8x128xf32>
    %156 = vector.extract_strided_slice %154 {offsets = [0, 0], sizes = [8, 128], strides = [1, 1]} : vector<8x384xf32> to vector<8x128xf32>
    %157 = arith.addf %155, %156 : vector<8x128xf32>
    %158 = arith.negf %157 : vector<8x128xf32>
    %159 = math.exp %158 : vector<8x128xf32>
    %cst_42 = arith.constant 1.000000e+00 : f32
    %160 = vector.broadcast %cst_42 : f32 to vector<8x128xf32>
    %161 = arith.addf %160, %159 : vector<8x128xf32>
    %162 = arith.divf %160, %161 : vector<8x128xf32>
    %163 = vector.extract_strided_slice %151 {offsets = [0, 128], sizes = [8, 128], strides = [1, 1]} : vector<8x384xf32> to vector<8x128xf32>
    %164 = vector.extract_strided_slice %154 {offsets = [0, 128], sizes = [8, 128], strides = [1, 1]} : vector<8x384xf32> to vector<8x128xf32>
    %165 = arith.addf %163, %164 : vector<8x128xf32>
    %166 = arith.negf %165 : vector<8x128xf32>
    %167 = math.exp %166 : vector<8x128xf32>
    %cst_43 = arith.constant 1.000000e+00 : f32
    %168 = vector.broadcast %cst_43 : f32 to vector<8x128xf32>
    %169 = arith.addf %168, %167 : vector<8x128xf32>
    %170 = arith.divf %168, %169 : vector<8x128xf32>
    %171 = vector.extract_strided_slice %151 {offsets = [0, 256], sizes = [8, 128], strides = [1, 1]} : vector<8x384xf32> to vector<8x128xf32>
    %172 = vector.extract_strided_slice %154 {offsets = [0, 256], sizes = [8, 128], strides = [1, 1]} : vector<8x384xf32> to vector<8x128xf32>
    %173 = arith.mulf %162, %172 : vector<8x128xf32>
    %174 = arith.addf %171, %173 : vector<8x128xf32>
    %175 = math.tanh %174 : vector<8x128xf32>
    %cst_44 = arith.constant 1.000000e+00 : f32
    %176 = vector.broadcast %cst_44 : f32 to vector<8x128xf32>
    %177 = arith.subf %176, %170 : vector<8x128xf32>
    %178 = arith.mulf %177, %175 : vector<8x128xf32>
    %179 = arith.mulf %170, %149 : vector<8x128xf32>
    %180 = arith.addf %178, %179 : vector<8x128xf32>
    %181 = vector.extract_strided_slice %20 {offsets = [5, 0, 0], sizes = [1, 8, 384], strides = [1, 1, 1]} : vector<8x8x384xf32> to vector<1x8x384xf32>
    %182 = vector.shape_cast %181 : vector<1x8x384xf32> to vector<8x384xf32>
    %183 = arith.truncf %180 : vector<8x128xf32> to vector<8x128xbf16>
    %cst_45 = arith.constant dense<0.000000e+00> : vector<8x384xf32>
    %184 = tpu.matmul %183, %21, %cst_45 {dimension_numbers = #tpu.dot_dimension_numbers<[1], [0], [0], [1], [0, 0, 1, 1], [], []>} : vector<8x128xbf16>, vector<128x384xbf16>, vector<8x384xf32> -> vector<8x384xf32>
    %185 = arith.addf %184, %24 : vector<8x384xf32>
    %186 = vector.extract_strided_slice %182 {offsets = [0, 0], sizes = [8, 128], strides = [1, 1]} : vector<8x384xf32> to vector<8x128xf32>
    %187 = vector.extract_strided_slice %185 {offsets = [0, 0], sizes = [8, 128], strides = [1, 1]} : vector<8x384xf32> to vector<8x128xf32>
    %188 = arith.addf %186, %187 : vector<8x128xf32>
    %189 = arith.negf %188 : vector<8x128xf32>
    %190 = math.exp %189 : vector<8x128xf32>
    %cst_46 = arith.constant 1.000000e+00 : f32
    %191 = vector.broadcast %cst_46 : f32 to vector<8x128xf32>
    %192 = arith.addf %191, %190 : vector<8x128xf32>
    %193 = arith.divf %191, %192 : vector<8x128xf32>
    %194 = vector.extract_strided_slice %182 {offsets = [0, 128], sizes = [8, 128], strides = [1, 1]} : vector<8x384xf32> to vector<8x128xf32>
    %195 = vector.extract_strided_slice %185 {offsets = [0, 128], sizes = [8, 128], strides = [1, 1]} : vector<8x384xf32> to vector<8x128xf32>
    %196 = arith.addf %194, %195 : vector<8x128xf32>
    %197 = arith.negf %196 : vector<8x128xf32>
    %198 = math.exp %197 : vector<8x128xf32>
    %cst_47 = arith.constant 1.000000e+00 : f32
    %199 = vector.broadcast %cst_47 : f32 to vector<8x128xf32>
    %200 = arith.addf %199, %198 : vector<8x128xf32>
    %201 = arith.divf %199, %200 : vector<8x128xf32>
    %202 = vector.extract_strided_slice %182 {offsets = [0, 256], sizes = [8, 128], strides = [1, 1]} : vector<8x384xf32> to vector<8x128xf32>
    %203 = vector.extract_strided_slice %185 {offsets = [0, 256], sizes = [8, 128], strides = [1, 1]} : vector<8x384xf32> to vector<8x128xf32>
    %204 = arith.mulf %193, %203 : vector<8x128xf32>
    %205 = arith.addf %202, %204 : vector<8x128xf32>
    %206 = math.tanh %205 : vector<8x128xf32>
    %cst_48 = arith.constant 1.000000e+00 : f32
    %207 = vector.broadcast %cst_48 : f32 to vector<8x128xf32>
    %208 = arith.subf %207, %201 : vector<8x128xf32>
    %209 = arith.mulf %208, %206 : vector<8x128xf32>
    %210 = arith.mulf %201, %180 : vector<8x128xf32>
    %211 = arith.addf %209, %210 : vector<8x128xf32>
    %212 = vector.extract_strided_slice %20 {offsets = [6, 0, 0], sizes = [1, 8, 384], strides = [1, 1, 1]} : vector<8x8x384xf32> to vector<1x8x384xf32>
    %213 = vector.shape_cast %212 : vector<1x8x384xf32> to vector<8x384xf32>
    %214 = arith.truncf %211 : vector<8x128xf32> to vector<8x128xbf16>
    %cst_49 = arith.constant dense<0.000000e+00> : vector<8x384xf32>
    %215 = tpu.matmul %214, %21, %cst_49 {dimension_numbers = #tpu.dot_dimension_numbers<[1], [0], [0], [1], [0, 0, 1, 1], [], []>} : vector<8x128xbf16>, vector<128x384xbf16>, vector<8x384xf32> -> vector<8x384xf32>
    %216 = arith.addf %215, %24 : vector<8x384xf32>
    %217 = vector.extract_strided_slice %213 {offsets = [0, 0], sizes = [8, 128], strides = [1, 1]} : vector<8x384xf32> to vector<8x128xf32>
    %218 = vector.extract_strided_slice %216 {offsets = [0, 0], sizes = [8, 128], strides = [1, 1]} : vector<8x384xf32> to vector<8x128xf32>
    %219 = arith.addf %217, %218 : vector<8x128xf32>
    %220 = arith.negf %219 : vector<8x128xf32>
    %221 = math.exp %220 : vector<8x128xf32>
    %cst_50 = arith.constant 1.000000e+00 : f32
    %222 = vector.broadcast %cst_50 : f32 to vector<8x128xf32>
    %223 = arith.addf %222, %221 : vector<8x128xf32>
    %224 = arith.divf %222, %223 : vector<8x128xf32>
    %225 = vector.extract_strided_slice %213 {offsets = [0, 128], sizes = [8, 128], strides = [1, 1]} : vector<8x384xf32> to vector<8x128xf32>
    %226 = vector.extract_strided_slice %216 {offsets = [0, 128], sizes = [8, 128], strides = [1, 1]} : vector<8x384xf32> to vector<8x128xf32>
    %227 = arith.addf %225, %226 : vector<8x128xf32>
    %228 = arith.negf %227 : vector<8x128xf32>
    %229 = math.exp %228 : vector<8x128xf32>
    %cst_51 = arith.constant 1.000000e+00 : f32
    %230 = vector.broadcast %cst_51 : f32 to vector<8x128xf32>
    %231 = arith.addf %230, %229 : vector<8x128xf32>
    %232 = arith.divf %230, %231 : vector<8x128xf32>
    %233 = vector.extract_strided_slice %213 {offsets = [0, 256], sizes = [8, 128], strides = [1, 1]} : vector<8x384xf32> to vector<8x128xf32>
    %234 = vector.extract_strided_slice %216 {offsets = [0, 256], sizes = [8, 128], strides = [1, 1]} : vector<8x384xf32> to vector<8x128xf32>
    %235 = arith.mulf %224, %234 : vector<8x128xf32>
    %236 = arith.addf %233, %235 : vector<8x128xf32>
    %237 = math.tanh %236 : vector<8x128xf32>
    %cst_52 = arith.constant 1.000000e+00 : f32
    %238 = vector.broadcast %cst_52 : f32 to vector<8x128xf32>
    %239 = arith.subf %238, %232 : vector<8x128xf32>
    %240 = arith.mulf %239, %237 : vector<8x128xf32>
    %241 = arith.mulf %232, %211 : vector<8x128xf32>
    %242 = arith.addf %240, %241 : vector<8x128xf32>
    %243 = vector.extract_strided_slice %20 {offsets = [7, 0, 0], sizes = [1, 8, 384], strides = [1, 1, 1]} : vector<8x8x384xf32> to vector<1x8x384xf32>
    %244 = vector.shape_cast %243 : vector<1x8x384xf32> to vector<8x384xf32>
    %245 = arith.truncf %242 : vector<8x128xf32> to vector<8x128xbf16>
    %cst_53 = arith.constant dense<0.000000e+00> : vector<8x384xf32>
    %246 = tpu.matmul %245, %21, %cst_53 {dimension_numbers = #tpu.dot_dimension_numbers<[1], [0], [0], [1], [0, 0, 1, 1], [], []>} : vector<8x128xbf16>, vector<128x384xbf16>, vector<8x384xf32> -> vector<8x384xf32>
    %247 = arith.addf %246, %24 : vector<8x384xf32>
    %248 = vector.extract_strided_slice %244 {offsets = [0, 0], sizes = [8, 128], strides = [1, 1]} : vector<8x384xf32> to vector<8x128xf32>
    %249 = vector.extract_strided_slice %247 {offsets = [0, 0], sizes = [8, 128], strides = [1, 1]} : vector<8x384xf32> to vector<8x128xf32>
    %250 = arith.addf %248, %249 : vector<8x128xf32>
    %251 = arith.negf %250 : vector<8x128xf32>
    %252 = math.exp %251 : vector<8x128xf32>
    %cst_54 = arith.constant 1.000000e+00 : f32
    %253 = vector.broadcast %cst_54 : f32 to vector<8x128xf32>
    %254 = arith.addf %253, %252 : vector<8x128xf32>
    %255 = arith.divf %253, %254 : vector<8x128xf32>
    %256 = vector.extract_strided_slice %244 {offsets = [0, 128], sizes = [8, 128], strides = [1, 1]} : vector<8x384xf32> to vector<8x128xf32>
    %257 = vector.extract_strided_slice %247 {offsets = [0, 128], sizes = [8, 128], strides = [1, 1]} : vector<8x384xf32> to vector<8x128xf32>
    %258 = arith.addf %256, %257 : vector<8x128xf32>
    %259 = arith.negf %258 : vector<8x128xf32>
    %260 = math.exp %259 : vector<8x128xf32>
    %cst_55 = arith.constant 1.000000e+00 : f32
    %261 = vector.broadcast %cst_55 : f32 to vector<8x128xf32>
    %262 = arith.addf %261, %260 : vector<8x128xf32>
    %263 = arith.divf %261, %262 : vector<8x128xf32>
    %264 = vector.extract_strided_slice %244 {offsets = [0, 256], sizes = [8, 128], strides = [1, 1]} : vector<8x384xf32> to vector<8x128xf32>
    %265 = vector.extract_strided_slice %247 {offsets = [0, 256], sizes = [8, 128], strides = [1, 1]} : vector<8x384xf32> to vector<8x128xf32>
    %266 = arith.mulf %255, %265 : vector<8x128xf32>
    %267 = arith.addf %264, %266 : vector<8x128xf32>
    %268 = math.tanh %267 : vector<8x128xf32>
    %cst_56 = arith.constant 1.000000e+00 : f32
    %269 = vector.broadcast %cst_56 : f32 to vector<8x128xf32>
    %270 = arith.subf %269, %263 : vector<8x128xf32>
    %271 = arith.mulf %270, %268 : vector<8x128xf32>
    %272 = arith.mulf %263, %242 : vector<8x128xf32>
    %273 = arith.addf %271, %272 : vector<8x128xf32>
    %274 = arith.truncf %273 : vector<8x128xf32> to vector<8x128xbf16>
    %c0_57 = arith.constant 0 : index
    %c0_58 = arith.constant 0 : index
    %275 = vector.load %arg8[%c0_57, %c0_58] : memref<128x512xbf16, #tpu.memory_space<vmem>>, vector<128x512xbf16>
    %cst_59 = arith.constant dense<0.000000e+00> : vector<8x512xf32>
    %276 = tpu.matmul %274, %275, %cst_59 {dimension_numbers = #tpu.dot_dimension_numbers<[1], [0], [0], [1], [0, 0, 1, 1], [], []>} : vector<8x128xbf16>, vector<128x512xbf16>, vector<8x512xf32> -> vector<8x512xf32>
    %c0_60 = arith.constant 0 : index
    %c0_61 = arith.constant 0 : index
    %277 = vector.load %arg9[%c0_60, %c0_61] : memref<1x512xf32, #tpu.memory_space<vmem>>, vector<1x512xf32>
    %278 = vector.broadcast %277 : vector<1x512xf32> to vector<8x512xf32>
    %279 = arith.addf %276, %278 : vector<8x512xf32>
    %280 = vector.extract_strided_slice %279 {offsets = [0, 0], sizes = [8, 128], strides = [1, 1]} : vector<8x512xf32> to vector<8x128xf32>
    %c0_62 = arith.constant 0 : index
    %c0_63 = arith.constant 0 : index
    %281 = vector.load %arg17[%c0_62, %c0_63] : memref<8x128xf32, #tpu.memory_space<vmem>>, vector<8x128xf32>
    tpu.vector_store %arg17[%c0_62, %c0_63], %280 {strides = array<i32>} : memref<8x128xf32, #tpu.memory_space<vmem>>, vector<8x128xf32>,
    %282 = vector.extract_strided_slice %279 {offsets = [0, 128], sizes = [8, 384], strides = [1, 1]} : vector<8x512xf32> to vector<8x384xf32>
    %c0_64 = arith.constant 0 : index
    %c0_65 = arith.constant 0 : index
    %283 = vector.load %arg13[%c0_64, %c0_65] : memref<128x384xbf16, #tpu.memory_space<vmem>>, vector<128x384xbf16>
    %c0_66 = arith.constant 0 : index
    %c0_67 = arith.constant 0 : index
    %284 = vector.load %arg14[%c0_66, %c0_67] : memref<1x384xf32, #tpu.memory_space<vmem>>, vector<1x384xf32>
    %285 = vector.shape_cast %284 : vector<1x384xf32> to vector<1x384xf32>
    %286 = vector.broadcast %285 : vector<1x384xf32> to vector<8x384xf32>
    %287 = vector.extract_strided_slice %7 {offsets = [0, 0, 0], sizes = [1, 8, 384], strides = [1, 1, 1]} : vector<8x8x384xf32> to vector<1x8x384xf32>
    %288 = vector.shape_cast %287 : vector<1x8x384xf32> to vector<8x384xf32>
    %289 = arith.addf %288, %282 : vector<8x384xf32>
    %290 = arith.truncf %273 : vector<8x128xf32> to vector<8x128xbf16>
    %cst_68 = arith.constant dense<0.000000e+00> : vector<8x384xf32>
    %291 = tpu.matmul %290, %283, %cst_68 {dimension_numbers = #tpu.dot_dimension_numbers<[1], [0], [0], [1], [0, 0, 1, 1], [], []>} : vector<8x128xbf16>, vector<128x384xbf16>, vector<8x384xf32> -> vector<8x384xf32>
    %292 = arith.addf %291, %286 : vector<8x384xf32>
    %293 = vector.extract_strided_slice %289 {offsets = [0, 0], sizes = [8, 128], strides = [1, 1]} : vector<8x384xf32> to vector<8x128xf32>
    %294 = vector.extract_strided_slice %292 {offsets = [0, 0], sizes = [8, 128], strides = [1, 1]} : vector<8x384xf32> to vector<8x128xf32>
    %295 = arith.addf %293, %294 : vector<8x128xf32>
    %296 = arith.negf %295 : vector<8x128xf32>
    %297 = math.exp %296 : vector<8x128xf32>
    %cst_69 = arith.constant 1.000000e+00 : f32
    %298 = vector.broadcast %cst_69 : f32 to vector<8x128xf32>
    %299 = arith.addf %298, %297 : vector<8x128xf32>
    %300 = arith.divf %298, %299 : vector<8x128xf32>
    %301 = vector.extract_strided_slice %289 {offsets = [0, 128], sizes = [8, 128], strides = [1, 1]} : vector<8x384xf32> to vector<8x128xf32>
    %302 = vector.extract_strided_slice %292 {offsets = [0, 128], sizes = [8, 128], strides = [1, 1]} : vector<8x384xf32> to vector<8x128xf32>
    %303 = arith.addf %301, %302 : vector<8x128xf32>
    %304 = arith.negf %303 : vector<8x128xf32>
    %305 = math.exp %304 : vector<8x128xf32>
    %cst_70 = arith.constant 1.000000e+00 : f32
    %306 = vector.broadcast %cst_70 : f32 to vector<8x128xf32>
    %307 = arith.addf %306, %305 : vector<8x128xf32>
    %308 = arith.divf %306, %307 : vector<8x128xf32>
    %309 = vector.extract_strided_slice %289 {offsets = [0, 256], sizes = [8, 128], strides = [1, 1]} : vector<8x384xf32> to vector<8x128xf32>
    %310 = vector.extract_strided_slice %292 {offsets = [0, 256], sizes = [8, 128], strides = [1, 1]} : vector<8x384xf32> to vector<8x128xf32>
    %311 = arith.mulf %300, %310 : vector<8x128xf32>
    %312 = arith.addf %309, %311 : vector<8x128xf32>
    %313 = math.tanh %312 : vector<8x128xf32>
    %cst_71 = arith.constant 1.000000e+00 : f32
    %314 = vector.broadcast %cst_71 : f32 to vector<8x128xf32>
    %315 = arith.subf %314, %308 : vector<8x128xf32>
    %316 = arith.mulf %315, %313 : vector<8x128xf32>
    %317 = arith.mulf %308, %273 : vector<8x128xf32>
    %318 = arith.addf %316, %317 : vector<8x128xf32>
    %319 = vector.extract_strided_slice %7 {offsets = [1, 0, 0], sizes = [1, 8, 384], strides = [1, 1, 1]} : vector<8x8x384xf32> to vector<1x8x384xf32>
    %320 = vector.shape_cast %319 : vector<1x8x384xf32> to vector<8x384xf32>
    %321 = vector.extract_strided_slice %12 {offsets = [0, 0, 0], sizes = [1, 8, 384], strides = [1, 1, 1]} : vector<7x8x384xf32> to vector<1x8x384xf32>
    %322 = vector.shape_cast %321 : vector<1x8x384xf32> to vector<8x384xf32>
    %323 = arith.addf %320, %322 : vector<8x384xf32>
    %324 = arith.truncf %318 : vector<8x128xf32> to vector<8x128xbf16>
    %cst_72 = arith.constant dense<0.000000e+00> : vector<8x384xf32>
    %325 = tpu.matmul %324, %283, %cst_72 {dimension_numbers = #tpu.dot_dimension_numbers<[1], [0], [0], [1], [0, 0, 1, 1], [], []>} : vector<8x128xbf16>, vector<128x384xbf16>, vector<8x384xf32> -> vector<8x384xf32>
    %326 = arith.addf %325, %286 : vector<8x384xf32>
    %327 = vector.extract_strided_slice %323 {offsets = [0, 0], sizes = [8, 128], strides = [1, 1]} : vector<8x384xf32> to vector<8x128xf32>
    %328 = vector.extract_strided_slice %326 {offsets = [0, 0], sizes = [8, 128], strides = [1, 1]} : vector<8x384xf32> to vector<8x128xf32>
    %329 = arith.addf %327, %328 : vector<8x128xf32>
    %330 = arith.negf %329 : vector<8x128xf32>
    %331 = math.exp %330 : vector<8x128xf32>
    %cst_73 = arith.constant 1.000000e+00 : f32
    %332 = vector.broadcast %cst_73 : f32 to vector<8x128xf32>
    %333 = arith.addf %332, %331 : vector<8x128xf32>
    %334 = arith.divf %332, %333 : vector<8x128xf32>
    %335 = vector.extract_strided_slice %323 {offsets = [0, 128], sizes = [8, 128], strides = [1, 1]} : vector<8x384xf32> to vector<8x128xf32>
    %336 = vector.extract_strided_slice %326 {offsets = [0, 128], sizes = [8, 128], strides = [1, 1]} : vector<8x384xf32> to vector<8x128xf32>
    %337 = arith.addf %335, %336 : vector<8x128xf32>
    %338 = arith.negf %337 : vector<8x128xf32>
    %339 = math.exp %338 : vector<8x128xf32>
    %cst_74 = arith.constant 1.000000e+00 : f32
    %340 = vector.broadcast %cst_74 : f32 to vector<8x128xf32>
    %341 = arith.addf %340, %339 : vector<8x128xf32>
    %342 = arith.divf %340, %341 : vector<8x128xf32>
    %343 = vector.extract_strided_slice %323 {offsets = [0, 256], sizes = [8, 128], strides = [1, 1]} : vector<8x384xf32> to vector<8x128xf32>
    %344 = vector.extract_strided_slice %326 {offsets = [0, 256], sizes = [8, 128], strides = [1, 1]} : vector<8x384xf32> to vector<8x128xf32>
    %345 = arith.mulf %334, %344 : vector<8x128xf32>
    %346 = arith.addf %343, %345 : vector<8x128xf32>
    %347 = math.tanh %346 : vector<8x128xf32>
    %cst_75 = arith.constant 1.000000e+00 : f32
    %348 = vector.broadcast %cst_75 : f32 to vector<8x128xf32>
    %349 = arith.subf %348, %342 : vector<8x128xf32>
    %350 = arith.mulf %349, %347 : vector<8x128xf32>
    %351 = arith.mulf %342, %318 : vector<8x128xf32>
    %352 = arith.addf %350, %351 : vector<8x128xf32>
    %353 = vector.extract_strided_slice %7 {offsets = [2, 0, 0], sizes = [1, 8, 384], strides = [1, 1, 1]} : vector<8x8x384xf32> to vector<1x8x384xf32>
    %354 = vector.shape_cast %353 : vector<1x8x384xf32> to vector<8x384xf32>
    %355 = vector.extract_strided_slice %12 {offsets = [1, 0, 0], sizes = [1, 8, 384], strides = [1, 1, 1]} : vector<7x8x384xf32> to vector<1x8x384xf32>
    %356 = vector.shape_cast %355 : vector<1x8x384xf32> to vector<8x384xf32>
    %357 = arith.addf %354, %356 : vector<8x384xf32>
    %358 = arith.truncf %352 : vector<8x128xf32> to vector<8x128xbf16>
    %cst_76 = arith.constant dense<0.000000e+00> : vector<8x384xf32>
    %359 = tpu.matmul %358, %283, %cst_76 {dimension_numbers = #tpu.dot_dimension_numbers<[1], [0], [0], [1], [0, 0, 1, 1], [], []>} : vector<8x128xbf16>, vector<128x384xbf16>, vector<8x384xf32> -> vector<8x384xf32>
    %360 = arith.addf %359, %286 : vector<8x384xf32>
    %361 = vector.extract_strided_slice %357 {offsets = [0, 0], sizes = [8, 128], strides = [1, 1]} : vector<8x384xf32> to vector<8x128xf32>
    %362 = vector.extract_strided_slice %360 {offsets = [0, 0], sizes = [8, 128], strides = [1, 1]} : vector<8x384xf32> to vector<8x128xf32>
    %363 = arith.addf %361, %362 : vector<8x128xf32>
    %364 = arith.negf %363 : vector<8x128xf32>
    %365 = math.exp %364 : vector<8x128xf32>
    %cst_77 = arith.constant 1.000000e+00 : f32
    %366 = vector.broadcast %cst_77 : f32 to vector<8x128xf32>
    %367 = arith.addf %366, %365 : vector<8x128xf32>
    %368 = arith.divf %366, %367 : vector<8x128xf32>
    %369 = vector.extract_strided_slice %357 {offsets = [0, 128], sizes = [8, 128], strides = [1, 1]} : vector<8x384xf32> to vector<8x128xf32>
    %370 = vector.extract_strided_slice %360 {offsets = [0, 128], sizes = [8, 128], strides = [1, 1]} : vector<8x384xf32> to vector<8x128xf32>
    %371 = arith.addf %369, %370 : vector<8x128xf32>
    %372 = arith.negf %371 : vector<8x128xf32>
    %373 = math.exp %372 : vector<8x128xf32>
    %cst_78 = arith.constant 1.000000e+00 : f32
    %374 = vector.broadcast %cst_78 : f32 to vector<8x128xf32>
    %375 = arith.addf %374, %373 : vector<8x128xf32>
    %376 = arith.divf %374, %375 : vector<8x128xf32>
    %377 = vector.extract_strided_slice %357 {offsets = [0, 256], sizes = [8, 128], strides = [1, 1]} : vector<8x384xf32> to vector<8x128xf32>
    %378 = vector.extract_strided_slice %360 {offsets = [0, 256], sizes = [8, 128], strides = [1, 1]} : vector<8x384xf32> to vector<8x128xf32>
    %379 = arith.mulf %368, %378 : vector<8x128xf32>
    %380 = arith.addf %377, %379 : vector<8x128xf32>
    %381 = math.tanh %380 : vector<8x128xf32>
    %cst_79 = arith.constant 1.000000e+00 : f32
    %382 = vector.broadcast %cst_79 : f32 to vector<8x128xf32>
    %383 = arith.subf %382, %376 : vector<8x128xf32>
    %384 = arith.mulf %383, %381 : vector<8x128xf32>
    %385 = arith.mulf %376, %352 : vector<8x128xf32>
    %386 = arith.addf %384, %385 : vector<8x128xf32>
    %387 = vector.extract_strided_slice %7 {offsets = [3, 0, 0], sizes = [1, 8, 384], strides = [1, 1, 1]} : vector<8x8x384xf32> to vector<1x8x384xf32>
    %388 = vector.shape_cast %387 : vector<1x8x384xf32> to vector<8x384xf32>
    %389 = vector.extract_strided_slice %12 {offsets = [2, 0, 0], sizes = [1, 8, 384], strides = [1, 1, 1]} : vector<7x8x384xf32> to vector<1x8x384xf32>
    %390 = vector.shape_cast %389 : vector<1x8x384xf32> to vector<8x384xf32>
    %391 = arith.addf %388, %390 : vector<8x384xf32>
    %392 = arith.truncf %386 : vector<8x128xf32> to vector<8x128xbf16>
    %cst_80 = arith.constant dense<0.000000e+00> : vector<8x384xf32>
    %393 = tpu.matmul %392, %283, %cst_80 {dimension_numbers = #tpu.dot_dimension_numbers<[1], [0], [0], [1], [0, 0, 1, 1], [], []>} : vector<8x128xbf16>, vector<128x384xbf16>, vector<8x384xf32> -> vector<8x384xf32>
    %394 = arith.addf %393, %286 : vector<8x384xf32>
    %395 = vector.extract_strided_slice %391 {offsets = [0, 0], sizes = [8, 128], strides = [1, 1]} : vector<8x384xf32> to vector<8x128xf32>
    %396 = vector.extract_strided_slice %394 {offsets = [0, 0], sizes = [8, 128], strides = [1, 1]} : vector<8x384xf32> to vector<8x128xf32>
    %397 = arith.addf %395, %396 : vector<8x128xf32>
    %398 = arith.negf %397 : vector<8x128xf32>
    %399 = math.exp %398 : vector<8x128xf32>
    %cst_81 = arith.constant 1.000000e+00 : f32
    %400 = vector.broadcast %cst_81 : f32 to vector<8x128xf32>
    %401 = arith.addf %400, %399 : vector<8x128xf32>
    %402 = arith.divf %400, %401 : vector<8x128xf32>
    %403 = vector.extract_strided_slice %391 {offsets = [0, 128], sizes = [8, 128], strides = [1, 1]} : vector<8x384xf32> to vector<8x128xf32>
    %404 = vector.extract_strided_slice %394 {offsets = [0, 128], sizes = [8, 128], strides = [1, 1]} : vector<8x384xf32> to vector<8x128xf32>
    %405 = arith.addf %403, %404 : vector<8x128xf32>
    %406 = arith.negf %405 : vector<8x128xf32>
    %407 = math.exp %406 : vector<8x128xf32>
    %cst_82 = arith.constant 1.000000e+00 : f32
    %408 = vector.broadcast %cst_82 : f32 to vector<8x128xf32>
    %409 = arith.addf %408, %407 : vector<8x128xf32>
    %410 = arith.divf %408, %409 : vector<8x128xf32>
    %411 = vector.extract_strided_slice %391 {offsets = [0, 256], sizes = [8, 128], strides = [1, 1]} : vector<8x384xf32> to vector<8x128xf32>
    %412 = vector.extract_strided_slice %394 {offsets = [0, 256], sizes = [8, 128], strides = [1, 1]} : vector<8x384xf32> to vector<8x128xf32>
    %413 = arith.mulf %402, %412 : vector<8x128xf32>
    %414 = arith.addf %411, %413 : vector<8x128xf32>
    %415 = math.tanh %414 : vector<8x128xf32>
    %cst_83 = arith.constant 1.000000e+00 : f32
    %416 = vector.broadcast %cst_83 : f32 to vector<8x128xf32>
    %417 = arith.subf %416, %410 : vector<8x128xf32>
    %418 = arith.mulf %417, %415 : vector<8x128xf32>
    %419 = arith.mulf %410, %386 : vector<8x128xf32>
    %420 = arith.addf %418, %419 : vector<8x128xf32>
    %421 = vector.extract_strided_slice %7 {offsets = [4, 0, 0], sizes = [1, 8, 384], strides = [1, 1, 1]} : vector<8x8x384xf32> to vector<1x8x384xf32>
    %422 = vector.shape_cast %421 : vector<1x8x384xf32> to vector<8x384xf32>
    %423 = vector.extract_strided_slice %12 {offsets = [3, 0, 0], sizes = [1, 8, 384], strides = [1, 1, 1]} : vector<7x8x384xf32> to vector<1x8x384xf32>
    %424 = vector.shape_cast %423 : vector<1x8x384xf32> to vector<8x384xf32>
    %425 = arith.addf %422, %424 : vector<8x384xf32>
    %426 = arith.truncf %420 : vector<8x128xf32> to vector<8x128xbf16>
    %cst_84 = arith.constant dense<0.000000e+00> : vector<8x384xf32>
    %427 = tpu.matmul %426, %283, %cst_84 {dimension_numbers = #tpu.dot_dimension_numbers<[1], [0], [0], [1], [0, 0, 1, 1], [], []>} : vector<8x128xbf16>, vector<128x384xbf16>, vector<8x384xf32> -> vector<8x384xf32>
    %428 = arith.addf %427, %286 : vector<8x384xf32>
    %429 = vector.extract_strided_slice %425 {offsets = [0, 0], sizes = [8, 128], strides = [1, 1]} : vector<8x384xf32> to vector<8x128xf32>
    %430 = vector.extract_strided_slice %428 {offsets = [0, 0], sizes = [8, 128], strides = [1, 1]} : vector<8x384xf32> to vector<8x128xf32>
    %431 = arith.addf %429, %430 : vector<8x128xf32>
    %432 = arith.negf %431 : vector<8x128xf32>
    %433 = math.exp %432 : vector<8x128xf32>
    %cst_85 = arith.constant 1.000000e+00 : f32
    %434 = vector.broadcast %cst_85 : f32 to vector<8x128xf32>
    %435 = arith.addf %434, %433 : vector<8x128xf32>
    %436 = arith.divf %434, %435 : vector<8x128xf32>
    %437 = vector.extract_strided_slice %425 {offsets = [0, 128], sizes = [8, 128], strides = [1, 1]} : vector<8x384xf32> to vector<8x128xf32>
    %438 = vector.extract_strided_slice %428 {offsets = [0, 128], sizes = [8, 128], strides = [1, 1]} : vector<8x384xf32> to vector<8x128xf32>
    %439 = arith.addf %437, %438 : vector<8x128xf32>
    %440 = arith.negf %439 : vector<8x128xf32>
    %441 = math.exp %440 : vector<8x128xf32>
    %cst_86 = arith.constant 1.000000e+00 : f32
    %442 = vector.broadcast %cst_86 : f32 to vector<8x128xf32>
    %443 = arith.addf %442, %441 : vector<8x128xf32>
    %444 = arith.divf %442, %443 : vector<8x128xf32>
    %445 = vector.extract_strided_slice %425 {offsets = [0, 256], sizes = [8, 128], strides = [1, 1]} : vector<8x384xf32> to vector<8x128xf32>
    %446 = vector.extract_strided_slice %428 {offsets = [0, 256], sizes = [8, 128], strides = [1, 1]} : vector<8x384xf32> to vector<8x128xf32>
    %447 = arith.mulf %436, %446 : vector<8x128xf32>
    %448 = arith.addf %445, %447 : vector<8x128xf32>
    %449 = math.tanh %448 : vector<8x128xf32>
    %cst_87 = arith.constant 1.000000e+00 : f32
    %450 = vector.broadcast %cst_87 : f32 to vector<8x128xf32>
    %451 = arith.subf %450, %444 : vector<8x128xf32>
    %452 = arith.mulf %451, %449 : vector<8x128xf32>
    %453 = arith.mulf %444, %420 : vector<8x128xf32>
    %454 = arith.addf %452, %453 : vector<8x128xf32>
    %455 = vector.extract_strided_slice %7 {offsets = [5, 0, 0], sizes = [1, 8, 384], strides = [1, 1, 1]} : vector<8x8x384xf32> to vector<1x8x384xf32>
    %456 = vector.shape_cast %455 : vector<1x8x384xf32> to vector<8x384xf32>
    %457 = vector.extract_strided_slice %12 {offsets = [4, 0, 0], sizes = [1, 8, 384], strides = [1, 1, 1]} : vector<7x8x384xf32> to vector<1x8x384xf32>
    %458 = vector.shape_cast %457 : vector<1x8x384xf32> to vector<8x384xf32>
    %459 = arith.addf %456, %458 : vector<8x384xf32>
    %460 = arith.truncf %454 : vector<8x128xf32> to vector<8x128xbf16>
    %cst_88 = arith.constant dense<0.000000e+00> : vector<8x384xf32>
    %461 = tpu.matmul %460, %283, %cst_88 {dimension_numbers = #tpu.dot_dimension_numbers<[1], [0], [0], [1], [0, 0, 1, 1], [], []>} : vector<8x128xbf16>, vector<128x384xbf16>, vector<8x384xf32> -> vector<8x384xf32>
    %462 = arith.addf %461, %286 : vector<8x384xf32>
    %463 = vector.extract_strided_slice %459 {offsets = [0, 0], sizes = [8, 128], strides = [1, 1]} : vector<8x384xf32> to vector<8x128xf32>
    %464 = vector.extract_strided_slice %462 {offsets = [0, 0], sizes = [8, 128], strides = [1, 1]} : vector<8x384xf32> to vector<8x128xf32>
    %465 = arith.addf %463, %464 : vector<8x128xf32>
    %466 = arith.negf %465 : vector<8x128xf32>
    %467 = math.exp %466 : vector<8x128xf32>
    %cst_89 = arith.constant 1.000000e+00 : f32
    %468 = vector.broadcast %cst_89 : f32 to vector<8x128xf32>
    %469 = arith.addf %468, %467 : vector<8x128xf32>
    %470 = arith.divf %468, %469 : vector<8x128xf32>
    %471 = vector.extract_strided_slice %459 {offsets = [0, 128], sizes = [8, 128], strides = [1, 1]} : vector<8x384xf32> to vector<8x128xf32>
    %472 = vector.extract_strided_slice %462 {offsets = [0, 128], sizes = [8, 128], strides = [1, 1]} : vector<8x384xf32> to vector<8x128xf32>
    %473 = arith.addf %471, %472 : vector<8x128xf32>
    %474 = arith.negf %473 : vector<8x128xf32>
    %475 = math.exp %474 : vector<8x128xf32>
    %cst_90 = arith.constant 1.000000e+00 : f32
    %476 = vector.broadcast %cst_90 : f32 to vector<8x128xf32>
    %477 = arith.addf %476, %475 : vector<8x128xf32>
    %478 = arith.divf %476, %477 : vector<8x128xf32>
    %479 = vector.extract_strided_slice %459 {offsets = [0, 256], sizes = [8, 128], strides = [1, 1]} : vector<8x384xf32> to vector<8x128xf32>
    %480 = vector.extract_strided_slice %462 {offsets = [0, 256], sizes = [8, 128], strides = [1, 1]} : vector<8x384xf32> to vector<8x128xf32>
    %481 = arith.mulf %470, %480 : vector<8x128xf32>
    %482 = arith.addf %479, %481 : vector<8x128xf32>
    %483 = math.tanh %482 : vector<8x128xf32>
    %cst_91 = arith.constant 1.000000e+00 : f32
    %484 = vector.broadcast %cst_91 : f32 to vector<8x128xf32>
    %485 = arith.subf %484, %478 : vector<8x128xf32>
    %486 = arith.mulf %485, %483 : vector<8x128xf32>
    %487 = arith.mulf %478, %454 : vector<8x128xf32>
    %488 = arith.addf %486, %487 : vector<8x128xf32>
    %489 = vector.extract_strided_slice %7 {offsets = [6, 0, 0], sizes = [1, 8, 384], strides = [1, 1, 1]} : vector<8x8x384xf32> to vector<1x8x384xf32>
    %490 = vector.shape_cast %489 : vector<1x8x384xf32> to vector<8x384xf32>
    %491 = vector.extract_strided_slice %12 {offsets = [5, 0, 0], sizes = [1, 8, 384], strides = [1, 1, 1]} : vector<7x8x384xf32> to vector<1x8x384xf32>
    %492 = vector.shape_cast %491 : vector<1x8x384xf32> to vector<8x384xf32>
    %493 = arith.addf %490, %492 : vector<8x384xf32>
    %494 = arith.truncf %488 : vector<8x128xf32> to vector<8x128xbf16>
    %cst_92 = arith.constant dense<0.000000e+00> : vector<8x384xf32>
    %495 = tpu.matmul %494, %283, %cst_92 {dimension_numbers = #tpu.dot_dimension_numbers<[1], [0], [0], [1], [0, 0, 1, 1], [], []>} : vector<8x128xbf16>, vector<128x384xbf16>, vector<8x384xf32> -> vector<8x384xf32>
    %496 = arith.addf %495, %286 : vector<8x384xf32>
    %497 = vector.extract_strided_slice %493 {offsets = [0, 0], sizes = [8, 128], strides = [1, 1]} : vector<8x384xf32> to vector<8x128xf32>
    %498 = vector.extract_strided_slice %496 {offsets = [0, 0], sizes = [8, 128], strides = [1, 1]} : vector<8x384xf32> to vector<8x128xf32>
    %499 = arith.addf %497, %498 : vector<8x128xf32>
    %500 = arith.negf %499 : vector<8x128xf32>
    %501 = math.exp %500 : vector<8x128xf32>
    %cst_93 = arith.constant 1.000000e+00 : f32
    %502 = vector.broadcast %cst_93 : f32 to vector<8x128xf32>
    %503 = arith.addf %502, %501 : vector<8x128xf32>
    %504 = arith.divf %502, %503 : vector<8x128xf32>
    %505 = vector.extract_strided_slice %493 {offsets = [0, 128], sizes = [8, 128], strides = [1, 1]} : vector<8x384xf32> to vector<8x128xf32>
    %506 = vector.extract_strided_slice %496 {offsets = [0, 128], sizes = [8, 128], strides = [1, 1]} : vector<8x384xf32> to vector<8x128xf32>
    %507 = arith.addf %505, %506 : vector<8x128xf32>
    %508 = arith.negf %507 : vector<8x128xf32>
    %509 = math.exp %508 : vector<8x128xf32>
    %cst_94 = arith.constant 1.000000e+00 : f32
    %510 = vector.broadcast %cst_94 : f32 to vector<8x128xf32>
    %511 = arith.addf %510, %509 : vector<8x128xf32>
    %512 = arith.divf %510, %511 : vector<8x128xf32>
    %513 = vector.extract_strided_slice %493 {offsets = [0, 256], sizes = [8, 128], strides = [1, 1]} : vector<8x384xf32> to vector<8x128xf32>
    %514 = vector.extract_strided_slice %496 {offsets = [0, 256], sizes = [8, 128], strides = [1, 1]} : vector<8x384xf32> to vector<8x128xf32>
    %515 = arith.mulf %504, %514 : vector<8x128xf32>
    %516 = arith.addf %513, %515 : vector<8x128xf32>
    %517 = math.tanh %516 : vector<8x128xf32>
    %cst_95 = arith.constant 1.000000e+00 : f32
    %518 = vector.broadcast %cst_95 : f32 to vector<8x128xf32>
    %519 = arith.subf %518, %512 : vector<8x128xf32>
    %520 = arith.mulf %519, %517 : vector<8x128xf32>
    %521 = arith.mulf %512, %488 : vector<8x128xf32>
    %522 = arith.addf %520, %521 : vector<8x128xf32>
    %523 = vector.extract_strided_slice %7 {offsets = [7, 0, 0], sizes = [1, 8, 384], strides = [1, 1, 1]} : vector<8x8x384xf32> to vector<1x8x384xf32>
    %524 = vector.shape_cast %523 : vector<1x8x384xf32> to vector<8x384xf32>
    %525 = vector.extract_strided_slice %12 {offsets = [6, 0, 0], sizes = [1, 8, 384], strides = [1, 1, 1]} : vector<7x8x384xf32> to vector<1x8x384xf32>
    %526 = vector.shape_cast %525 : vector<1x8x384xf32> to vector<8x384xf32>
    %527 = arith.addf %524, %526 : vector<8x384xf32>
    %528 = arith.truncf %522 : vector<8x128xf32> to vector<8x128xbf16>
    %cst_96 = arith.constant dense<0.000000e+00> : vector<8x384xf32>
    %529 = tpu.matmul %528, %283, %cst_96 {dimension_numbers = #tpu.dot_dimension_numbers<[1], [0], [0], [1], [0, 0, 1, 1], [], []>} : vector<8x128xbf16>, vector<128x384xbf16>, vector<8x384xf32> -> vector<8x384xf32>
    %530 = arith.addf %529, %286 : vector<8x384xf32>
    %531 = vector.extract_strided_slice %527 {offsets = [0, 0], sizes = [8, 128], strides = [1, 1]} : vector<8x384xf32> to vector<8x128xf32>
    %532 = vector.extract_strided_slice %530 {offsets = [0, 0], sizes = [8, 128], strides = [1, 1]} : vector<8x384xf32> to vector<8x128xf32>
    %533 = arith.addf %531, %532 : vector<8x128xf32>
    %534 = arith.negf %533 : vector<8x128xf32>
    %535 = math.exp %534 : vector<8x128xf32>
    %cst_97 = arith.constant 1.000000e+00 : f32
    %536 = vector.broadcast %cst_97 : f32 to vector<8x128xf32>
    %537 = arith.addf %536, %535 : vector<8x128xf32>
    %538 = arith.divf %536, %537 : vector<8x128xf32>
    %539 = vector.extract_strided_slice %527 {offsets = [0, 128], sizes = [8, 128], strides = [1, 1]} : vector<8x384xf32> to vector<8x128xf32>
    %540 = vector.extract_strided_slice %530 {offsets = [0, 128], sizes = [8, 128], strides = [1, 1]} : vector<8x384xf32> to vector<8x128xf32>
    %541 = arith.addf %539, %540 : vector<8x128xf32>
    %542 = arith.negf %541 : vector<8x128xf32>
    %543 = math.exp %542 : vector<8x128xf32>
    %cst_98 = arith.constant 1.000000e+00 : f32
    %544 = vector.broadcast %cst_98 : f32 to vector<8x128xf32>
    %545 = arith.addf %544, %543 : vector<8x128xf32>
    %546 = arith.divf %544, %545 : vector<8x128xf32>
    %547 = vector.extract_strided_slice %527 {offsets = [0, 256], sizes = [8, 128], strides = [1, 1]} : vector<8x384xf32> to vector<8x128xf32>
    %548 = vector.extract_strided_slice %530 {offsets = [0, 256], sizes = [8, 128], strides = [1, 1]} : vector<8x384xf32> to vector<8x128xf32>
    %549 = arith.mulf %538, %548 : vector<8x128xf32>
    %550 = arith.addf %547, %549 : vector<8x128xf32>
    %551 = math.tanh %550 : vector<8x128xf32>
    %cst_99 = arith.constant 1.000000e+00 : f32
    %552 = vector.broadcast %cst_99 : f32 to vector<8x128xf32>
    %553 = arith.subf %552, %546 : vector<8x128xf32>
    %554 = arith.mulf %553, %551 : vector<8x128xf32>
    %555 = arith.mulf %546, %522 : vector<8x128xf32>
    %556 = arith.addf %554, %555 : vector<8x128xf32>
    %557 = vector.shape_cast %318 : vector<8x128xf32> to vector<1x8x128xf32>
    %558 = vector.shape_cast %352 : vector<8x128xf32> to vector<1x8x128xf32>
    %559 = vector.shape_cast %386 : vector<8x128xf32> to vector<1x8x128xf32>
    %560 = vector.shape_cast %420 : vector<8x128xf32> to vector<1x8x128xf32>
    %561 = vector.shape_cast %454 : vector<8x128xf32> to vector<1x8x128xf32>
    %562 = vector.shape_cast %488 : vector<8x128xf32> to vector<1x8x128xf32>
    %563 = vector.shape_cast %522 : vector<8x128xf32> to vector<1x8x128xf32>
    %564 = vector.shape_cast %556 : vector<8x128xf32> to vector<1x8x128xf32>
    %565 = tpu.concatenate %557, %558, %559, %560, %561, %562, %563, %564 in 0 : vector<1x8x128xf32>, vector<1x8x128xf32>, vector<1x8x128xf32>, vector<1x8x128xf32>, vector<1x8x128xf32>, vector<1x8x128xf32>, vector<1x8x128xf32>, vector<1x8x128xf32> -> vector<8x8x128xf32>
    %566 = vector.shape_cast %565 : vector<8x8x128xf32> to vector<64x128xf32>
    %567 = arith.truncf %566 : vector<64x128xf32> to vector<64x128xbf16>
    %c0_100 = arith.constant 0 : index
    %c0_101 = arith.constant 0 : index
    %568 = vector.load %arg15[%c0_100, %c0_101] : memref<128x128xbf16, #tpu.memory_space<vmem>>, vector<128x128xbf16>
    %cst_102 = arith.constant dense<0.000000e+00> : vector<64x128xf32>
    %569 = tpu.matmul %567, %568, %cst_102 {dimension_numbers = #tpu.dot_dimension_numbers<[1], [0], [0], [1], [0, 0, 1, 1], [], []>} : vector<64x128xbf16>, vector<128x128xbf16>, vector<64x128xf32> -> vector<64x128xf32>
    %c0_103 = arith.constant 0 : index
    %c0_104 = arith.constant 0 : index
    %570 = vector.load %arg16[%c0_103, %c0_104] : memref<1x128xf32, #tpu.memory_space<vmem>>, vector<1x128xf32>
    %571 = vector.broadcast %570 : vector<1x128xf32> to vector<64x128xf32>
    %572 = arith.addf %569, %571 : vector<64x128xf32>
    %573 = vector.shape_cast %572 : vector<64x128xf32> to vector<8x8x128xf32>
    %574 = vector.extract_strided_slice %573 {offsets = [0, 0, 0], sizes = [1, 8, 128], strides = [1, 1, 1]} : vector<8x8x128xf32> to vector<1x8x128xf32>
    %575 = vector.shape_cast %574 : vector<1x8x128xf32> to vector<8x128xf32>
    %c0_105 = arith.constant 0 : index
    %c0_106 = arith.constant 0 : index
    %c0_107 = arith.constant 0 : index
    %576 = vector.load %arg18[%c0_105, %c0_106, %c0_107] : memref<8x8x128xf32, #tpu.memory_space<vmem>>, vector<8x1x128xf32>
    %577 = vector.shape_cast %576 : vector<8x1x128xf32> to vector<8x128xf32>
    %578 = vector.shape_cast %575 : vector<8x128xf32> to vector<8x1x128xf32>
    tpu.vector_store %arg18[%c0_105, %c0_106, %c0_107], %578 {strides = array<i32>} : memref<8x8x128xf32, #tpu.memory_space<vmem>>, vector<8x1x128xf32>,
    %579 = vector.extract_strided_slice %573 {offsets = [1, 0, 0], sizes = [1, 8, 128], strides = [1, 1, 1]} : vector<8x8x128xf32> to vector<1x8x128xf32>
    %580 = vector.shape_cast %579 : vector<1x8x128xf32> to vector<8x128xf32>
    %c0_108 = arith.constant 0 : index
    %c1 = arith.constant 1 : index
    %c0_109 = arith.constant 0 : index
    %581 = vector.load %arg18[%c0_108, %c1, %c0_109] : memref<8x8x128xf32, #tpu.memory_space<vmem>>, vector<8x1x128xf32>
    %582 = vector.shape_cast %581 : vector<8x1x128xf32> to vector<8x128xf32>
    %583 = vector.shape_cast %580 : vector<8x128xf32> to vector<8x1x128xf32>
    tpu.vector_store %arg18[%c0_108, %c1, %c0_109], %583 {strides = array<i32>} : memref<8x8x128xf32, #tpu.memory_space<vmem>>, vector<8x1x128xf32>,
    %584 = vector.extract_strided_slice %573 {offsets = [2, 0, 0], sizes = [1, 8, 128], strides = [1, 1, 1]} : vector<8x8x128xf32> to vector<1x8x128xf32>
    %585 = vector.shape_cast %584 : vector<1x8x128xf32> to vector<8x128xf32>
    %c0_110 = arith.constant 0 : index
    %c2 = arith.constant 2 : index
    %c0_111 = arith.constant 0 : index
    %586 = vector.load %arg18[%c0_110, %c2, %c0_111] : memref<8x8x128xf32, #tpu.memory_space<vmem>>, vector<8x1x128xf32>
    %587 = vector.shape_cast %586 : vector<8x1x128xf32> to vector<8x128xf32>
    %588 = vector.shape_cast %585 : vector<8x128xf32> to vector<8x1x128xf32>
    tpu.vector_store %arg18[%c0_110, %c2, %c0_111], %588 {strides = array<i32>} : memref<8x8x128xf32, #tpu.memory_space<vmem>>, vector<8x1x128xf32>,
    %589 = vector.extract_strided_slice %573 {offsets = [3, 0, 0], sizes = [1, 8, 128], strides = [1, 1, 1]} : vector<8x8x128xf32> to vector<1x8x128xf32>
    %590 = vector.shape_cast %589 : vector<1x8x128xf32> to vector<8x128xf32>
    %c0_112 = arith.constant 0 : index
    %c3 = arith.constant 3 : index
    %c0_113 = arith.constant 0 : index
    %591 = vector.load %arg18[%c0_112, %c3, %c0_113] : memref<8x8x128xf32, #tpu.memory_space<vmem>>, vector<8x1x128xf32>
    %592 = vector.shape_cast %591 : vector<8x1x128xf32> to vector<8x128xf32>
    %593 = vector.shape_cast %590 : vector<8x128xf32> to vector<8x1x128xf32>
    tpu.vector_store %arg18[%c0_112, %c3, %c0_113], %593 {strides = array<i32>} : memref<8x8x128xf32, #tpu.memory_space<vmem>>, vector<8x1x128xf32>,
    %594 = vector.extract_strided_slice %573 {offsets = [4, 0, 0], sizes = [1, 8, 128], strides = [1, 1, 1]} : vector<8x8x128xf32> to vector<1x8x128xf32>
    %595 = vector.shape_cast %594 : vector<1x8x128xf32> to vector<8x128xf32>
    %c0_114 = arith.constant 0 : index
    %c4 = arith.constant 4 : index
    %c0_115 = arith.constant 0 : index
    %596 = vector.load %arg18[%c0_114, %c4, %c0_115] : memref<8x8x128xf32, #tpu.memory_space<vmem>>, vector<8x1x128xf32>
    %597 = vector.shape_cast %596 : vector<8x1x128xf32> to vector<8x128xf32>
    %598 = vector.shape_cast %595 : vector<8x128xf32> to vector<8x1x128xf32>
    tpu.vector_store %arg18[%c0_114, %c4, %c0_115], %598 {strides = array<i32>} : memref<8x8x128xf32, #tpu.memory_space<vmem>>, vector<8x1x128xf32>,
    %599 = vector.extract_strided_slice %573 {offsets = [5, 0, 0], sizes = [1, 8, 128], strides = [1, 1, 1]} : vector<8x8x128xf32> to vector<1x8x128xf32>
    %600 = vector.shape_cast %599 : vector<1x8x128xf32> to vector<8x128xf32>
    %c0_116 = arith.constant 0 : index
    %c5 = arith.constant 5 : index
    %c0_117 = arith.constant 0 : index
    %601 = vector.load %arg18[%c0_116, %c5, %c0_117] : memref<8x8x128xf32, #tpu.memory_space<vmem>>, vector<8x1x128xf32>
    %602 = vector.shape_cast %601 : vector<8x1x128xf32> to vector<8x128xf32>
    %603 = vector.shape_cast %600 : vector<8x128xf32> to vector<8x1x128xf32>
    tpu.vector_store %arg18[%c0_116, %c5, %c0_117], %603 {strides = array<i32>} : memref<8x8x128xf32, #tpu.memory_space<vmem>>, vector<8x1x128xf32>,
    %604 = vector.extract_strided_slice %573 {offsets = [6, 0, 0], sizes = [1, 8, 128], strides = [1, 1, 1]} : vector<8x8x128xf32> to vector<1x8x128xf32>
    %605 = vector.shape_cast %604 : vector<1x8x128xf32> to vector<8x128xf32>
    %c0_118 = arith.constant 0 : index
    %c6 = arith.constant 6 : index
    %c0_119 = arith.constant 0 : index
    %606 = vector.load %arg18[%c0_118, %c6, %c0_119] : memref<8x8x128xf32, #tpu.memory_space<vmem>>, vector<8x1x128xf32>
    %607 = vector.shape_cast %606 : vector<8x1x128xf32> to vector<8x128xf32>
    %608 = vector.shape_cast %605 : vector<8x128xf32> to vector<8x1x128xf32>
    tpu.vector_store %arg18[%c0_118, %c6, %c0_119], %608 {strides = array<i32>} : memref<8x8x128xf32, #tpu.memory_space<vmem>>, vector<8x1x128xf32>,
    %609 = vector.extract_strided_slice %573 {offsets = [7, 0, 0], sizes = [1, 8, 128], strides = [1, 1, 1]} : vector<8x8x128xf32> to vector<1x8x128xf32>
    %610 = vector.shape_cast %609 : vector<1x8x128xf32> to vector<8x128xf32>
    %c0_120 = arith.constant 0 : index
    %c7 = arith.constant 7 : index
    %c0_121 = arith.constant 0 : index
    %611 = vector.load %arg18[%c0_120, %c7, %c0_121] : memref<8x8x128xf32, #tpu.memory_space<vmem>>, vector<8x1x128xf32>
    %612 = vector.shape_cast %611 : vector<8x1x128xf32> to vector<8x128xf32>
    %613 = vector.shape_cast %610 : vector<8x128xf32> to vector<8x1x128xf32>
    tpu.vector_store %arg18[%c0_120, %c7, %c0_121], %613 {strides = array<i32>} : memref<8x8x128xf32, #tpu.memory_space<vmem>>, vector<8x1x128xf32>,
    return
  }
  func.func @transform_0(%arg0: i32) -> (i32, i32, i32) {
    %c0_i32 = arith.constant 0 : i32
    %c0_i32_0 = arith.constant 0 : i32
    %c0_i32_1 = arith.constant 0 : i32
    return %c0_i32, %arg0, %c0_i32_0 : i32, i32, i32
  }
  func.func @transform_1(%arg0: i32) -> (i32, i32, i32) {
    %c0_i32 = arith.constant 0 : i32
    %c0_i32_0 = arith.constant 0 : i32
    %c0_i32_1 = arith.constant 0 : i32
    return %c0_i32, %arg0, %c0_i32_0 : i32, i32, i32
  }
  func.func @transform_2(%arg0: i32) -> (i32, i32, i32) {
    %c0_i32 = arith.constant 0 : i32
    %c0_i32_0 = arith.constant 0 : i32
    %c0_i32_1 = arith.constant 0 : i32
    return %c0_i32, %arg0, %c0_i32_0 : i32, i32, i32
  }
  func.func @transform_3(%arg0: i32) -> (i32, i32) {
    %c0_i32 = arith.constant 0 : i32
    %c0_i32_0 = arith.constant 0 : i32
    %c0_i32_1 = arith.constant 0 : i32
    return %c0_i32, %c0_i32_0 : i32, i32
  }
  func.func @transform_4(%arg0: i32) -> (i32, i32) {
    %c0_i32 = arith.constant 0 : i32
    %c0_i32_0 = arith.constant 0 : i32
    %c0_i32_1 = arith.constant 0 : i32
    return %c0_i32, %c0_i32_0 : i32, i32
  }
  func.func @transform_5(%arg0: i32) -> (i32, i32) {
    %c0_i32 = arith.constant 0 : i32
    %c0_i32_0 = arith.constant 0 : i32
    %c0_i32_1 = arith.constant 0 : i32
    return %c0_i32, %c0_i32_0 : i32, i32
  }
  func.func @transform_6(%arg0: i32) -> (i32, i32) {
    %c0_i32 = arith.constant 0 : i32
    %c0_i32_0 = arith.constant 0 : i32
    %c0_i32_1 = arith.constant 0 : i32
    return %c0_i32, %c0_i32_0 : i32, i32
  }
  func.func @transform_7(%arg0: i32) -> (i32, i32) {
    %c0_i32 = arith.constant 0 : i32
    %c0_i32_0 = arith.constant 0 : i32
    %c0_i32_1 = arith.constant 0 : i32
    return %c0_i32, %c0_i32_0 : i32, i32
  }
  func.func @transform_8(%arg0: i32) -> (i32, i32) {
    %c0_i32 = arith.constant 0 : i32
    %c0_i32_0 = arith.constant 0 : i32
    %c0_i32_1 = arith.constant 0 : i32
    return %c0_i32, %c0_i32_0 : i32, i32
  }
  func.func @transform_9(%arg0: i32) -> (i32, i32) {
    %c0_i32 = arith.constant 0 : i32
    %c0_i32_0 = arith.constant 0 : i32
    %c0_i32_1 = arith.constant 0 : i32
    return %c0_i32, %c0_i32_0 : i32, i32
  }
  func.func @transform_10(%arg0: i32) -> (i32, i32) {
    %c0_i32 = arith.constant 0 : i32
    %c0_i32_0 = arith.constant 0 : i32
    %c0_i32_1 = arith.constant 0 : i32
    return %c0_i32, %c0_i32_0 : i32, i32
  }
  func.func @transform_11(%arg0: i32) -> (i32, i32) {
    %c0_i32 = arith.constant 0 : i32
    %c0_i32_0 = arith.constant 0 : i32
    %c0_i32_1 = arith.constant 0 : i32
    return %c0_i32, %c0_i32_0 : i32, i32
  }
  func.func @transform_12(%arg0: i32) -> (i32, i32) {
    %c0_i32 = arith.constant 0 : i32
    %c0_i32_0 = arith.constant 0 : i32
    %c0_i32_1 = arith.constant 0 : i32
    return %c0_i32, %c0_i32_0 : i32, i32
  }
  func.func @transform_13(%arg0: i32) -> (i32, i32) {
    %c0_i32 = arith.constant 0 : i32
    %c0_i32_0 = arith.constant 0 : i32
    %c0_i32_1 = arith.constant 0 : i32
    return %c0_i32, %c0_i32_0 : i32, i32
  }
  func.func @transform_14(%arg0: i32) -> (i32, i32) {
    %c0_i32 = arith.constant 0 : i32
    %c0_i32_0 = arith.constant 0 : i32
    %c0_i32_1 = arith.constant 0 : i32
    return %c0_i32, %c0_i32_0 : i32, i32
  }
  func.func @transform_15(%arg0: i32) -> (i32, i32) {
    %c0_i32 = arith.constant 0 : i32
    %c0_i32_0 = arith.constant 0 : i32
    %c0_i32_1 = arith.constant 0 : i32
    return %c0_i32, %c0_i32_0 : i32, i32
  }
  func.func @transform_16(%arg0: i32) -> (i32, i32) {
    %c0_i32 = arith.constant 0 : i32
    %c0_i32_0 = arith.constant 0 : i32
    return %arg0, %c0_i32 : i32, i32
  }
  func.func @transform_17(%arg0: i32) -> (i32, i32, i32) {
    %c0_i32 = arith.constant 0 : i32
    %c0_i32_0 = arith.constant 0 : i32
    %c0_i32_1 = arith.constant 0 : i32
    return %arg0, %c0_i32, %c0_i32_0 : i32, i32, i32
  }
}

</mosaic_0001>

<bundles_post_ra>
// kernel: seq2seq_forward.1
= control target key start
LH: loop header
LB: loop body
LE: loop exit
PB: predicated region body
PF: predicated region fallthrough
CT: control target
= control target key end

     0   :  { %s6870_s0 = inlined_call_operand.vmem [shape: bf16[8,8,16], index: 0, kind: input, shape index: {}]   ;;  %s6871_s1 = inlined_call_operand.vmem [shape: bf16[8,8,16], index: 1, kind: input, shape index: {}]   ;;  %s6872_s2 = inlined_call_operand.vmem [shape: bf16[8,8,16], index: 2, kind: input, shape index: {}]   ;;  %s6873_s3 = inlined_call_operand.vmem [shape: bf16[16,384], index: 3, kind: input, shape index: {}]   ;;  %s6874_s4 = inlined_call_operand.hbm [shape: bf16[128,384], index: 4, kind: input, shape index: {}]   ;;  %s6875_s5 = inlined_call_operand.hbm [shape: f32[1,384], index: 5, kind: input, shape index: {}]   ;;  %s6876_s6 = inlined_call_operand.hbm [shape: f32[1,384], index: 6, kind: input, shape index: {}]   ;;  %s6877_s7 = inlined_call_operand.vmem [shape: bf16[128,512], index: 7, kind: input, shape index: {}]   ;;  %s6878_s8 = inlined_call_operand.hbm [shape: f32[1,512], index: 8, kind: input, shape index: {}]   ;;  %s6879_s9 = inlined_call_operand.hbm [shape: bf16[16,384], index: 9, kind: input, shape index: {}]   ;;  %s6880_s10 = inlined_call_operand.hbm [shape: bf16[16,384], index: 10, kind: input, shape index: {}]   ;;  %s6881_s11 = inlined_call_operand.hbm [shape: f32[1,384], index: 11, kind: input, shape index: {}]   ;;  %s6882_s12 = inlined_call_operand.hbm [shape: bf16[128,384], index: 12, kind: input, shape index: {}]   ;;  %s6883_s13 = inlined_call_operand.hbm [shape: f32[1,384], index: 13, kind: input, shape index: {}]   ;;  %s6884_s14 = inlined_call_operand.vmem [shape: bf16[128,128], index: 14, kind: input, shape index: {}]   ;;  %s6885_s15 = inlined_call_operand.hbm [shape: f32[1,128], index: 15, kind: input, shape index: {}]   ;;  %s6886_s16 = inlined_call_operand.hbm [shape: f32[8,128], index: 16, kind: output, shape index: {0}]   ;;  %s6887_s17 = inlined_call_operand.hbm [shape: f32[8,8,128], index: 17, kind: output, shape index: {1}]  }
   0x1   :  { %6914 = sst [smem:[#allocation69_spill]] %s6870_s0 }
   0x2   :  { %6915 = sst [smem:[#allocation70_spill]] %s6871_s1 }
   0x3   :  { %23 = vsyncpa [#allocation3], 0 }
   0x4   :  { %24 = vsyncpa [#allocation6], 0 }
   0x5   :  { %25 = vsyncpa [#allocation9], 0 }
   0x6   :  { %26 = vsyncpa [#allocation12], 0 }
   0x7   :  { %27 = vsyncpa [#allocation15], 0 }
   0x8   :  { %28 = vsyncpa [#allocation18], 0 }
   0x9   :  { %29 = vsyncpa [#allocation4], 0 }
   0xa   :  { %30 = vsyncpa [#allocation21], 0  ;;  %s5204_s24 = smov [#allocation5]   ;;  %s5205_s26 = smov [#allocation8]  }
   0xb   :  { %s57_s25 = sshll.u32 %s5204_s24, 4  ;;  %s79_s27 = sshll.u32 %s5205_s26, 4  ;;  %s58_s25 = int_to_ptr.vmem [resolvable:$true] %s57_s25  ;;  %s80_s27 = int_to_ptr.vmem [resolvable:$true] %s79_s27 }
   0xc   :  { %s4924_s0 = scalar_lea.hbm %s6875_s5, 48 }
   0xd   :  { %p4925_p0 = scmp.ne.s32.totalorder %s6875_s5, %s4924_s0  ;;  %p4928_p1 = scmp.lt.u32.totalorder %s4924_s0, %s6875_s5 }
   0xf   :  { %p4930_p2 = pnand %p4928_p1, %p4925_p0 }
  0x11   :  { %4933 = shalt.err (!%p4930_p2)
}
  0x12   :  { %s4934_s20 = scalar_lea.vmem %s58_s25, 48  ;;  %s4938_s21 = scalar_lea.vmem %s58_s25, 64 }
  0x13   :  { %p4935_p3 = scmp.ne.s32.totalorder %s58_s25, %s4934_s20  ;;  %p4939_p4 = scmp.lt.s32.totalorder %s58_s25, %s58_s25 }
  0x14   :  { %p4940_p5 = scmp.lt.s32.totalorder %s4938_s21, %s4934_s20 }
  0x16   :  { %p4941_p6 = por %p4940_p5, %p4939_p4 }
  0x18   :  { %p4942_p7 = pnand %p4941_p6, %p4935_p3 }
  0x1a   :  { %4945 = shalt.err (!%p4942_p7)
}
  0x1b   :  { %60 = dma.hbm_to_vmem [thread:$0]  %s6875_s5, 48, %s58_s25, [#allocation6]  }
  0x1c   :  { %s4946_s28 = scalar_lea.hbm %s6878_s8, 64 }
  0x1d   :  { %p4947_p8 = scmp.ne.s32.totalorder %s6878_s8, %s4946_s28  ;;  %p4950_p9 = scmp.lt.u32.totalorder %s4946_s28, %s6878_s8 }
  0x1f   :  { %p4952_p10 = pnand %p4950_p9, %p4947_p8 }
  0x21   :  { %4955 = shalt.err (!%p4952_p10)
}
  0x22   :  { %s4956_s19 = scalar_lea.vmem %s80_s27, 64  ;;  %p4961_p12 = scmp.lt.s32.totalorder %s80_s27, %s80_s27 }
  0x23   :  { %p4957_p11 = scmp.ne.s32.totalorder %s80_s27, %s4956_s19  ;;  %p4962_p13 = scmp.lt.s32.totalorder %s4956_s19, %s4956_s19 }
  0x25   :  { %p4963_p0 = por %p4962_p13, %p4961_p12 }
  0x27   :  { %p4964_p1 = pnand %p4963_p0, %p4957_p11 }
  0x29   :  { %4967 = shalt.err (!%p4964_p1)
}
  0x2a   :  { %82 = dma.hbm_to_vmem [thread:$0]  %s6878_s8, 64, %s80_s27, [#allocation9]  }
  0x2b   :  { %s5206_s1 = smov [#allocation11]   ;;  %s5207_s21 = smov [#allocation14]  }
  0x2c   :  { %s100_s20 = sshll.u32 %s5206_s1, 4  ;;  %s122_s22 = sshll.u32 %s5207_s21, 4  ;;  %s101_s20 = int_to_ptr.vmem [resolvable:$true] %s100_s20  ;;  %s5338_s22 = int_to_ptr.vmem [resolvable:$true] %s122_s22 }
  0x2d   :  { %s4968_s26 = scalar_lea.hbm %s6880_s10, 384 }
  0x2e   :  { %p4969_p2 = scmp.ne.s32.totalorder %s6880_s10, %s4968_s26  ;;  %p4972_p3 = scmp.lt.u32.totalorder %s4968_s26, %s6880_s10 }
  0x30   :  { %p4974_p4 = pnand %p4972_p3, %p4969_p2 }
  0x32   :  { %4977 = shalt.err (!%p4974_p4)
}
  0x33   :  { %s4978_s8 = scalar_lea.vmem %s101_s20, 384  ;;  %p4983_p6 = scmp.lt.s32.totalorder %s101_s20, %s101_s20 }
  0x34   :  { %p4979_p5 = scmp.ne.s32.totalorder %s101_s20, %s4978_s8  ;;  %p4984_p7 = scmp.lt.s32.totalorder %s4978_s8, %s4978_s8 }
  0x36   :  { %p4985_p8 = por %p4984_p7, %p4983_p6 }
  0x38   :  { %p4986_p9 = pnand %p4985_p8, %p4979_p5 }
  0x3a   :  { %4989 = shalt.err (!%p4986_p9)
}
  0x3b   :  { %s5208_s27 = smov 192   ;;  %s5209_s18 = smov 12  }
  0x3c   :  { %106 = dma.hbm_to_vmem [thread:$0]  %s6880_s10, 384, %s101_s20, [#allocation12], %s5208_s27, %s5208_s27, %s5209_s18  }
  0x3d   :  { %s4990_s21 = scalar_lea.hbm %s6882_s12, 3072 }
  0x3e   :  { %p4991_p10 = scmp.ne.s32.totalorder %s6882_s12, %s4990_s21  ;;  %p4994_p11 = scmp.lt.u32.totalorder %s4990_s21, %s6882_s12 }
  0x40   :  { %p4996_p12 = pnand %p4994_p11, %p4991_p10 }
  0x42   :  { %4999 = shalt.err (!%p4996_p12)
}
  0x43   :  { %s5000_s29 = scalar_lea.vmem %s5338_s22, 3072  ;;  %p5005_p0 = scmp.lt.s32.totalorder %s5338_s22, %s5338_s22 }
  0x44   :  { %p5001_p13 = scmp.ne.s32.totalorder %s5338_s22, %s5000_s29  ;;  %p5006_p1 = scmp.lt.s32.totalorder %s5000_s29, %s5000_s29 }
  0x46   :  { %p5007_p2 = por %p5006_p1, %p5005_p0 }
  0x48   :  { %p5008_p3 = pnand %p5007_p2, %p5001_p13 }
  0x4a   :  { %5011 = shalt.err (!%p5008_p3)
}
  0x4b   :  { %128 = dma.hbm_to_vmem [thread:$0]  %s6882_s12, 3072, %s5338_s22, [#allocation15], %s5208_s27, %s5208_s27, %s5209_s18  }
  0x4c   :  { %s5210_s0 = smov [#allocation2]   ;;  %s5211_s8 = smov [#allocation7]  }
  0x4d   :  { %s44_s30 = sshll.u32 %s5210_s0, 4  ;;  %s67_s19 = sshll.u32 %s5211_s8, 4  ;;  %s45_s30 = int_to_ptr.vmem [resolvable:$true] %s44_s30  ;;  %s68_s19 = int_to_ptr.vmem [resolvable:$true] %s67_s19 }
  0x4e   :  { %s5012_s1 = scalar_lea.hbm %s6874_s4, 3072 }
  0x4f   :  { %p5013_p4 = scmp.ne.s32.totalorder %s6874_s4, %s5012_s1  ;;  %p5016_p5 = scmp.lt.u32.totalorder %s5012_s1, %s6874_s4 }
  0x51   :  { %p5018_p6 = pnand %p5016_p5, %p5013_p4 }
  0x53   :  { %5021 = shalt.err (!%p5018_p6)
}
  0x54   :  { %s5022_s12 = scalar_lea.vmem %s45_s30, 3072  ;;  %p5027_p8 = scmp.lt.s32.totalorder %s45_s30, %s45_s30 }
  0x55   :  { %p5023_p7 = scmp.ne.s32.totalorder %s45_s30, %s5022_s12  ;;  %p5028_p9 = scmp.lt.s32.totalorder %s5022_s12, %s5022_s12 }
  0x57   :  { %p5029_p10 = por %p5028_p9, %p5027_p8 }
  0x59   :  { %p5030_p11 = pnand %p5029_p10, %p5023_p7 }
  0x5b   :  { %5033 = shalt.err (!%p5030_p11)
}
  0x5c   :  { %50 = dma.hbm_to_vmem [thread:$0]  %s6874_s4, 3072, %s45_s30, [#allocation3], %s5208_s27, %s5208_s27, %s5209_s18  }
  0x5d   :  { %s5034_s20 = scalar_lea.hbm %s6876_s6, 48 }
  0x5e   :  { %p5035_p12 = scmp.ne.s32.totalorder %s6876_s6, %s5034_s20  ;;  %p5038_p13 = scmp.lt.u32.totalorder %s5034_s20, %s6876_s6 }
  0x60   :  { %p5040_p0 = pnand %p5038_p13, %p5035_p12 }
  0x62   :  { %5043 = shalt.err (!%p5040_p0)
}
  0x63   :  { %s5044_s1 = scalar_lea.vmem %s68_s19, 48  ;;  %s5048_s21 = scalar_lea.vmem %s68_s19, 64 }
  0x64   :  { %p5045_p1 = scmp.ne.s32.totalorder %s68_s19, %s5044_s1  ;;  %p5049_p2 = scmp.lt.s32.totalorder %s68_s19, %s68_s19 }
  0x65   :  { %p5050_p3 = scmp.lt.s32.totalorder %s5048_s21, %s5044_s1 }
  0x67   :  { %p5051_p4 = por %p5050_p3, %p5049_p2 }
  0x69   :  { %p5052_p5 = pnand %p5051_p4, %p5045_p1 }
  0x6b   :  { %5055 = shalt.err (!%p5052_p5)
}
  0x6c   :  { %70 = dma.hbm_to_vmem [thread:$0]  %s6876_s6, 48, %s68_s19, [#allocation6]  }
  0x6d   :  { %s5212_s23 = smov [#allocation10]   ;;  %s5213_s26 = smov [#allocation13]  }
  0x6e   :  { %s88_s24 = sshll.u32 %s5212_s23, 4  ;;  %s113_s12 = sshll.u32 %s5213_s26, 4  ;;  %s89_s24 = int_to_ptr.vmem [resolvable:$true] %s88_s24  ;;  %s114_s12 = int_to_ptr.vmem [resolvable:$true] %s113_s12 }
  0x6f   :  { %s5056_s29 = scalar_lea.hbm %s6879_s9, 384 }
  0x70   :  { %p5057_p6 = scmp.ne.s32.totalorder %s6879_s9, %s5056_s29  ;;  %p5060_p7 = scmp.lt.u32.totalorder %s5056_s29, %s6879_s9 }
  0x72   :  { %p5062_p8 = pnand %p5060_p7, %p5057_p6 }
  0x74   :  { %5065 = shalt.err (!%p5062_p8)
}
  0x75   :  { %s5066_s6 = scalar_lea.vmem %s89_s24, 384  ;;  %p5071_p10 = scmp.lt.s32.totalorder %s89_s24, %s89_s24 }
  0x76   :  { %p5067_p9 = scmp.ne.s32.totalorder %s89_s24, %s5066_s6  ;;  %p5072_p11 = scmp.lt.s32.totalorder %s5066_s6, %s5066_s6 }
  0x78   :  { %p5073_p12 = por %p5072_p11, %p5071_p10 }
  0x7a   :  { %p5074_p13 = pnand %p5073_p12, %p5067_p9 }
  0x7c   :  { %5077 = shalt.err (!%p5074_p13)
}
  0x7d   :  { %94 = dma.hbm_to_vmem [thread:$0]  %s6879_s9, 384, %s89_s24, [#allocation9], %s5208_s27, %s5208_s27, %s5209_s18  }
  0x7e   :  { %s5078_s21 = scalar_lea.hbm %s6881_s11, 48 }
  0x7f   :  { %p5079_p0 = scmp.ne.s32.totalorder %s6881_s11, %s5078_s21  ;;  %p5082_p1 = scmp.lt.u32.totalorder %s5078_s21, %s6881_s11 }
  0x81   :  { %p5084_p2 = pnand %p5082_p1, %p5079_p0 }
  0x83   :  { %5087 = shalt.err (!%p5084_p2)
}
  0x84   :  { %s5088_s22 = scalar_lea.vmem %s114_s12, 48  ;;  %s5092_s28 = scalar_lea.vmem %s114_s12, 64 }
  0x85   :  { %p5089_p3 = scmp.ne.s32.totalorder %s114_s12, %s5088_s22  ;;  %p5093_p4 = scmp.lt.s32.totalorder %s114_s12, %s114_s12 }
  0x86   :  { %p5094_p5 = scmp.lt.s32.totalorder %s5092_s28, %s5088_s22 }
  0x88   :  { %p5095_p6 = por %p5094_p5, %p5093_p4 }
  0x8a   :  { %p5096_p7 = pnand %p5095_p6, %p5089_p3 }
  0x8c   :  { %5099 = shalt.err (!%p5096_p7)
}
  0x8d   :  { %116 = dma.hbm_to_vmem [thread:$0]  %s6881_s11, 48, %s114_s12, [#allocation12]  }
  0x8e   :  { %s5214_s18 = smov [#allocation16]   ;;  %s5215_s29 = smov [#allocation17]  }
  0x8f   :  { %s135_s24 = sshll.u32 %s5214_s18, 4  ;;  %s147_s10 = sshll.u32 %s5215_s29, 4  ;;  %s136_s24 = int_to_ptr.vmem [resolvable:$true] %s135_s24  ;;  %s148_s10 = int_to_ptr.vmem [resolvable:$true] %s147_s10 }
  0x90   :  { %s5100_s8 = scalar_lea.hbm %s6883_s13, 48 }
  0x91   :  { %p5101_p8 = scmp.ne.s32.totalorder %s6883_s13, %s5100_s8  ;;  %p5104_p9 = scmp.lt.u32.totalorder %s5100_s8, %s6883_s13 }
  0x93   :  { %p5106_p10 = pnand %p5104_p9, %p5101_p8 }
  0x95   :  { %5109 = shalt.err (!%p5106_p10)
}
  0x96   :  { %s5110_s11 = scalar_lea.vmem %s136_s24, 48  ;;  %s5114_s12 = scalar_lea.vmem %s136_s24, 64 }
  0x97   :  { %p5111_p11 = scmp.ne.s32.totalorder %s136_s24, %s5110_s11  ;;  %p5115_p12 = scmp.lt.s32.totalorder %s136_s24, %s136_s24 }
  0x98   :  { %p5116_p13 = scmp.lt.s32.totalorder %s5114_s12, %s5110_s11 }
  0x9a   :  { %p5117_p0 = por %p5116_p13, %p5115_p12 }
  0x9c   :  { %p5118_p1 = pnand %p5117_p0, %p5111_p11 }
  0x9e   :  { %5121 = shalt.err (!%p5118_p1)
}
  0x9f   :  { %138 = dma.hbm_to_vmem [thread:$0]  %s6883_s13, 48, %s136_s24, [#allocation15]  }
  0xa0   :  { %s5122_s23 = scalar_lea.hbm %s6885_s15, 16 }
  0xa1   :  { %p5123_p2 = scmp.ne.s32.totalorder %s6885_s15, %s5122_s23  ;;  %p5126_p3 = scmp.lt.u32.totalorder %s5122_s23, %s6885_s15 }
  0xa3   :  { %p5128_p4 = pnand %p5126_p3, %p5123_p2 }
  0xa5   :  { %5131 = shalt.err (!%p5128_p4)
}
  0xa6   :  { %s5132_s27 = scalar_lea.vmem %s148_s10, 16  ;;  %s5136_s18 = scalar_lea.vmem %s148_s10, 32 }
  0xa7   :  { %p5133_p5 = scmp.ne.s32.totalorder %s148_s10, %s5132_s27  ;;  %p5137_p6 = scmp.lt.s32.totalorder %s148_s10, %s148_s10 }
  0xa8   :  { %p5138_p7 = scmp.lt.s32.totalorder %s5136_s18, %s5132_s27 }
  0xaa   :  { %p5139_p8 = por %p5138_p7, %p5137_p6 }
  0xac   :  { %p5140_p9 = pnand %p5139_p8, %p5133_p5 }
  0xae   :  { %5143 = shalt.err (!%p5140_p9)
}
  0xaf   :  { %150 = dma.hbm_to_vmem [thread:$0]  %s6885_s15, 16, %s148_s10, [#allocation18]  }
  0xb0   :  { %5188 = dma.done.wait [#allocation3], 3072  }
  0xb1   :  { %5189 = vsyncadd [#allocation3], 4294964224 }
  0xb2   :  { %5190 = dma.done.wait [#allocation6], 96  }
  0xb3   :  { %5191 = vsyncadd [#allocation6], 4294967200 }
  0xb4   :  { %5192 = dma.done.wait [#allocation9], 448  }
  0xb5   :  { %5193 = vsyncadd [#allocation9], 4294966848 }
  0xb6   :  { %5194 = dma.done.wait [#allocation12], 432  }
  0xb7   :  { %5195 = vsyncadd [#allocation12], 4294966864 }
  0xb8   :  { %5196 = dma.done.wait [#allocation15], 3120  }
  0xb9   :  { %5197 = vsyncadd [#allocation15], 4294964176 }
  0xba   :  { %5198 = dma.done.wait [#allocation18], 16  }
  0xbb   :  { %5199 = vsyncadd [#allocation18], 4294967280  ;;  %v6890_v0 = vmov 0   ;;  %v4596_v1 = vld [vmem:[#allocation11 + $0x4] ss:$12 sps:$4 sm:$0xff]   ;;  %s6916_s10 = sld [smem:[#allocation70_spill]]  ;;  %v196_v47 = vlaneseq }
  0xbc   :  { %292 = vmatprep.mubr.bf16.mxu0 %v6890_v0  ;;  %302 = vmatprep.mubr.bf16.mxu1 %v6890_v0  ;;  %v4598_v2 = vld [vmem:[#allocation11] ss:$12 sps:$4 sm:$0xff]   ;;  %vm247_vm0 = vcmask 130048   ;;  %v4601_v5 = vld [vmem:[#allocation11 + $0x8] ss:$12 sps:$4 sm:$0xff]   ;;  %s6918_s13 = sld [smem:[#allocation69_spill]] }
  0xbd   :  { %260 = vmatprep.subr.bf16.mxu0 %v4596_v1  ;;  %4574 = vmatprep.subr.bf16.mxu1 %v4596_v1  ;;  %v4602_v6 = vld [vmem:[#allocation10 + $0x8] ss:$12 sps:$4 sm:$0xff]   ;;  %v5474_v9 = vld [vmem:[%s6872_s2 + $0x8] sm:$0xff]   ;;  %v4611_v11 = vld [vmem:[%s6873_s3 + $0x4] ss:$12 sps:$4 sm:$0xff]   ;;  %v6892_v36 = vmov 0.0  }
  0xbe   :  { %261 = vmatpush1.bf16.msra.mxu0 %v4598_v2  ;;  %4575 = vmatpush1.bf16.msra.mxu1 %v4598_v2  ;;  %v4603_v7 = vld [vmem:[%s6872_s2] sm:$0xff]   ;;  %v5479_v10 = vld [vmem:[%s6872_s2 + $0x10] sm:$0xff]   ;;  %v5501_v16 = vld [vmem:[%s6872_s2 + $0x18] ss:$0 sps:$4 sm:$0xff]   ;;  %vm5218_vm1 = vmmov 0   ;;  %v5672_v48 = vshrl.u32 %v196_v47, 7 }
  0xbf   :  { %4200 = vmatprep.subr.bf16.mxu1 %v4601_v5  ;;  %4210 = vmatprep.subr.bf16.mxu0 %v4602_v6  ;;  %v4609_v12 = vld [vmem:[%s6873_s3] ss:$12 sps:$4 sm:$0xff]   ;;  %v4614_v13 = vld [vmem:[#allocation10 + $0x4] ss:$12 sps:$4 sm:$0xff]   ;;  %v4630_v21 = vld [vmem:[%s6873_s3 + $0x8] ss:$12 sps:$4 sm:$0xff]  }
  0xc0   :  { %v5493_v14 = vld [vmem:[#allocation2 + $0x4] ss:$12 sps:$4 sm:$0xff]   ;;  %v4612_v18 = vld [vmem:[#allocation10] ss:$12 sps:$4 sm:$0xff]   ;;  %v5516_v20 = vld [vmem:[#allocation2 + $0x1c] ss:$12 sps:$4 sm:$0xff]  }
  0xc1   :  { %v4599_v3 = vld [vmem:[%s6916_s10] sm:$0xff]   ;;  %v4600_v4 = vld [vmem:[%s6916_s10 + $0x8] sm:$0xff]   ;;  %v4604_v8 = vld [vmem:[%s6916_s10 + $0x10] sm:$0xff]   ;;  %6917 = vst [vmem:[#allocation30_spill] sm:$0xff] %v5493_v14  ;;  %v5675_v49 = vsub.s32 0, %v5672_v48  ;;  %v5678_v51 = vsub.s32 1, %v5672_v48 }
  0xc2   :  { %3838 = vmatmul.mubr.msk.bf16.vlgmr.msra.gmra.mrb[0].mxu0 %vm247_vm0, %v4599_v3  ;;  %3839 = vmatmul.mubr.msk.bf16.vlgmr.msra.gmra.mrb[0].mxu1 %vm247_vm0, %v4600_v4  ;;  %v4607_v15 = vld [vmem:[%s6916_s10 + $0x18] sm:$0xff]   ;;  %v5512_v17 = vld [vmem:[%s6918_s13] sm:$0xff]   ;;  %v4622_v24 = vld [vmem:[%s6918_s13 + $0x8] sm:$0xff]   ;;  %6923 = vst [vmem:[#allocation35_spill] sm:$0xff] %v5672_v48 }
  0xc3   :  { %4201 = vmatpush3.bf16.msra.mxu1 %v4601_v5  ;;  %4211 = vmatpush3.bf16.msra.mxu0 %v4602_v6  ;;  %v5514_v19 = vld [vmem:[#allocation2] ss:$12 sps:$4 sm:$0xff]   ;;  %v5525_v22 = vld [vmem:[#allocation2 + $0x18] ss:$12 sps:$4 sm:$0xff]   ;;  %v5536_v25 = vld [vmem:[#allocation2 + $0x30] ss:$12 sps:$4 sm:$0xff]  }
  0xc4   :  { %312 = vmatprep.mubr.bf16.mxu1 %v6890_v0  ;;  %4212 = vmatprep.mubr.msk.bf16.mxu0 %vm247_vm0, %v4603_v7  ;;  %v5529_v23 = vld [vmem:[#allocation2 + $0x34] ss:$12 sps:$4 sm:$0xff]   ;;  %v5539_v26 = vld [vmem:[#allocation2 + $0x4c] ss:$12 sps:$4 sm:$0xff]   ;;  %v5545_v28 = vld [vmem:[#allocation2 + $0x64] ss:$12 sps:$4 sm:$0xff]  }
  0xc5   :  { %667 = vmatprep.subr.bf16.mxu0 %v4611_v11  ;;  %455 = vmatprep.subr.bf16.mxu1 %v4614_v13  ;;  %v5541_v27 = vld [vmem:[#allocation2 + $0x48] ss:$12 sps:$4 sm:$0xff]   ;;  %v5554_v30 = vld [vmem:[#allocation2 + $0x60] ss:$12 sps:$4 sm:$0xff]   ;;  %v5560_v32 = vld [vmem:[#allocation2 + $0x78] ss:$12 sps:$4 sm:$0xff]  }
  0xc6   :  { %v4629_v29 = vld [vmem:[%s6918_s13 + $0x10] sm:$0xff]   ;;  %v5556_v31 = vld [vmem:[#allocation2 + $0x7c] ss:$12 sps:$4 sm:$0xff]   ;;  %v5576_v37 = vld [vmem:[#allocation2 + $0xac] ss:$12 sps:$4 sm:$0xff]   ;;  %6924 = vst [vmem:[#allocation36_spill] sm:$0xff] %v5675_v49 }
  0xc7   :  { %v5564_v33 = vld [vmem:[#allocation2 + $0x94] ss:$12 sps:$4 sm:$0xff]   ;;  %v4637_v34 = vld [vmem:[%s6918_s13 + $0x18] sm:$0xff]   ;;  %6919 = vst [vmem:[#allocation31_spill] sm:$0xff] %v5576_v37  ;;  %6925 = vst [vmem:[#allocation37_spill] sm:$0xff] %v5678_v51 }
  0xc8   :  { %v5573_v35 = vld [vmem:[#allocation2 + $0x90] ss:$12 sps:$4 sm:$0xff]   ;;  %v5580_v38 = vld [vmem:[#allocation2 + $0xa8] ss:$12 sps:$4 sm:$0xff]   ;;  %v5612_v40 = vld [vmem:[#allocation2 + $0x20] ss:$12 sps:$4 sm:$0xff]  }
  0xc9   :  { %6920 = vst [vmem:[#allocation32_spill] sm:$0xff] %v5580_v38  ;;  %v5606_v39 = vld [vmem:[#allocation2 + $0x8] ss:$12 sps:$4 sm:$0xff]   ;;  %v5619_v41 = vld [vmem:[#allocation2 + $0x38] ss:$12 sps:$4 sm:$0xff]  }
  0xca   :  { %3840 = vmatmul.mubr.msk.bf16.gmra.mrb[4].mxu1 %vm247_vm0, %v4604_v8  ;;  %4213 = vmatmul.mubr.msk.bf16.vlgmr.msra.gmra.mrb[4].mxu0 %vm247_vm0, %v5474_v9  ;;  %v5626_v42 = vld [vmem:[#allocation2 + $0x50] ss:$12 sps:$4 sm:$0xff]   ;;  %v5634_v43 = vld [vmem:[#allocation2 + $0x68] ss:$12 sps:$4 sm:$0xff]   ;;  %v5640_v44 = vld [vmem:[#allocation2 + $0x80] ss:$12 sps:$4 sm:$0xff]  }
  0xcb   :  { %322 = vmatprep.mubr.bf16.mxu1 %v6890_v0  ;;  %4216 = vmatprep.mubr.msk.bf16.mxu0 %vm247_vm0, %v5479_v10  ;;  %v5644_v45 = vld [vmem:[#allocation2 + $0x98] ss:$12 sps:$4 sm:$0xff]   ;;  %v5648_v46 = vld [vmem:[#allocation2 + $0xb0] ss:$12 sps:$4 sm:$0xff]  }
  0xcc   :  { %668 = vmatpush1.bf16.msra.mxu0 %v4609_v12  ;;  %6921 = vst [vmem:[#allocation33_spill] sm:$0xff] %v5644_v45  ;;  %6922 = vst [vmem:[#allocation34_spill] sm:$0xff] %v5648_v46  ;;  %v194_v50 = vld [vmem:[#allocation13] sm:$0x7] }
  0xcd   :  { %982 = vmatprep.subr.bf16.mxu0 %v5493_v14  ;;  %v5681_v52 = vrot.slane %v194_v50, %v5675_v49  ;;  %v5684_v53 = vrot.slane %v194_v50, %v5678_v51 }
  0xcf   :  { %6926 = vst [vmem:[#allocation38_spill] sm:$0xff] %v5681_v52  ;;  %6927 = vst [vmem:[#allocation39_spill] sm:$0xff] %v5684_v53 }
  0xd2   :  { %3841 = vmatmul.mubr.msk.bf16.gmra.mrb[8].mxu1 %vm247_vm0, %v4607_v15  ;;  %4217 = vmatmul.mubr.msk.bf16.gmra.mrb[8].mxu0 %vm247_vm0, %v5501_v16 }
  0xd3   :  { %4202 = vmatprep.mubr.msk.bf16.mxu1 %vm247_vm0, %v4599_v3  ;;  %699 = vmatprep.mubr.bf16.mxu0 %v6890_v0 }
  0xda   :  { %4203 = vmatmul.mubr.msk.bf16.vlgmr.msra.gmra.mrb[12].mxu1 %vm247_vm0, %v4600_v4  ;;  %3868 = vmatmul.mubr.msk.bf16.vlgmr.msra.gmra.mrb[12].mxu0 %vm247_vm0, %v5512_v17 }
  0xdb   :  { %456 = vmatpush1.bf16.msra.mxu1 %v4612_v18  ;;  %983 = vmatpush1.bf16.msra.mxu0 %v5514_v19 }
  0xdc   :  { %984 = vmatprep.subr.bf16.mxu0 %v5516_v20  ;;  %4206 = vmatprep.mubr.msk.bf16.mxu1 %vm247_vm0, %v4604_v8 }
  0xdd   :  { %709 = vmatprep.mubr.bf16.mxu0 %v6890_v0  ;;  %4220 = vmatprep.subr.bf16.mxu1 %v4630_v21 }
  0xdf   :  { %985 = vmatpush1.bf16.msra.mxu0 %v5525_v22 }
  0xe0   :  { %986 = vmatprep.subr.bf16.mxu0 %v5529_v23 }
  0xe2   :  { %4207 = vmatmul.mubr.msk.bf16.gmra.mrb[16].mxu1 %vm247_vm0, %v4607_v15  ;;  %3869 = vmatmul.mubr.msk.bf16.gmra.mrb[16].mxu0 %vm247_vm0, %v4622_v24 }
  0xe3   :  { %987 = vmatpush1.bf16.msra.mxu0 %v5536_v25  ;;  %487 = vmatprep.mubr.bf16.mxu1 %v6890_v0 }
  0xe4   :  { %988 = vmatprep.subr.bf16.mxu0 %v5539_v26  ;;  %719 = vmatprep.mubr.bf16.mxu0 %v6890_v0 }
  0xe7   :  { %989 = vmatpush1.bf16.msra.mxu0 %v5541_v27 }
  0xe8   :  { %990 = vmatprep.subr.bf16.mxu0 %v5545_v28 }
  0xea   :  { %3853 = vmatmul.mubr.msk.bf16.vlgmr.msra.gmra.mrb[20].mxu1 %vm247_vm0, %v4603_v7  ;;  %3870 = vmatmul.mubr.msk.bf16.gmra.mrb[20].mxu0 %vm247_vm0, %v4629_v29 }
  0xeb   :  { %4221 = vmatpush3.bf16.msra.mxu1 %v4630_v21  ;;  %991 = vmatpush1.bf16.msra.mxu0 %v5554_v30 }
  0xec   :  { %992 = vmatprep.subr.bf16.mxu0 %v5556_v31  ;;  %497 = vmatprep.mubr.bf16.mxu1 %v6890_v0 }
  0xed   :  { %729 = vmatprep.mubr.bf16.mxu0 %v6890_v0  ;;  %4230 = vmatprep.subr.bf16.mxu1 %v6892_v36 }
  0xef   :  { %993 = vmatpush1.bf16.msra.mxu0 %v5560_v32 }
  0xf0   :  { %994 = vmatprep.subr.bf16.mxu0 %v5564_v33 }
  0xf2   :  { %3854 = vmatmul.mubr.msk.bf16.gmra.mrb[24].mxu1 %vm247_vm0, %v5474_v9  ;;  %3871 = vmatmul.mubr.msk.bf16.gmra.mrb[24].mxu0 %vm247_vm0, %v4637_v34 }
  0xf3   :  { %995 = vmatpush1.bf16.msra.mxu0 %v5573_v35  ;;  %507 = vmatprep.mubr.bf16.mxu1 %v6890_v0 }
  0xf4   :  { %996 = vmatprep.subr.bf16.mxu0 %v5576_v37  ;;  %1014 = vmatprep.mubr.bf16.mxu0 %v6890_v0 }
  0xf7   :  { %997 = vmatpush1.bf16.msra.mxu0 %v5580_v38 }
  0xf8   :  { %1085 = vmatprep.subr.bf16.mxu0 %v5493_v14 }
  0xfa   :  { %3855 = vmatmul.mubr.msk.bf16.gmra.mrb[28].mxu1 %vm247_vm0, %v5479_v10  ;;  %1015 = vmatmul.mubr.bf16.vlgmr.msra.gmra.mrb[28].mxu0 %v6890_v0 }
  0xfb   :  { %517 = vmatprep.mubr.bf16.mxu1 %v6890_v0  ;;  %1086 = vmatpush1.bf16.msra.mxu0 %v5514_v19 }
  0xfc   :  { %1087 = vmatprep.subr.bf16.mxu0 %v5516_v20  ;;  %1117 = vmatprep.mubr.bf16.mxu0 %v6890_v0 }
  0xff   :  { %1088 = vmatpush1.bf16.msra.mxu0 %v5525_v22 }
 0x100   :  { %1089 = vmatprep.subr.bf16.mxu0 %v5529_v23 }
 0x102   :  { %3856 = vmatmul.mubr.msk.bf16.gmra.mrb[32].mxu1 %vm247_vm0, %v5501_v16 }
 0x103   :  { %4222 = vmatprep.mubr.msk.bf16.mxu1 %vm247_vm0, %v5512_v17  ;;  %1090 = vmatpush1.bf16.msra.mxu0 %v5536_v25 }
 0x104   :  { %1091 = vmatprep.subr.bf16.mxu0 %v5539_v26 }
 0x107   :  { %1092 = vmatpush1.bf16.msra.mxu0 %v5541_v27 }
 0x108   :  { %1093 = vmatprep.subr.bf16.mxu0 %v5545_v28 }
 0x10a   :  { %4223 = vmatmul.mubr.msk.bf16.vlgmr.msra.gmra.mrb[36].mxu1 %vm247_vm0, %v4622_v24 }
 0x10b   :  { %4231 = vmatpush3.bf16.msra.mxu1 %v5606_v39  ;;  %4226 = vmatprep.mubr.msk.bf16.mxu1 %vm247_vm0, %v4629_v29 }
 0x10c   :  { %4232 = vmatprep.subr.bf16.mxu1 %v6892_v36  ;;  %1094 = vmatpush1.bf16.msra.mxu0 %v5554_v30 }
 0x10d   :  { %1095 = vmatprep.subr.bf16.mxu0 %v5556_v31 }
 0x10f   :  { %4233 = vmatpush3.bf16.msra.mxu1 %v5612_v40 }
 0x110   :  { %4234 = vmatprep.subr.bf16.mxu1 %v6892_v36  ;;  %1096 = vmatpush1.bf16.msra.mxu0 %v5560_v32 }
 0x111   :  { %1097 = vmatprep.subr.bf16.mxu0 %v5564_v33 }
 0x112   :  { %4227 = vmatmul.mubr.msk.bf16.gmra.mrb[40].mxu1 %vm247_vm0, %v4637_v34  ;;  %v5724_v34 = vsub.s32 2, %v5672_v48 }
 0x113   :  { %4235 = vmatpush3.bf16.msra.mxu1 %v5619_v41  ;;  %4246 = vmatprep.mubr.msk.bf16.mxu1 %vm5218_vm1, %v6892_v36 }
 0x114   :  { %4236 = vmatprep.subr.bf16.mxu1 %v6892_v36  ;;  %1098 = vmatpush1.bf16.msra.mxu0 %v5573_v35  ;;  %6930 = vst [vmem:[#allocation42_spill] sm:$0xff] %v5724_v34 }
 0x115   :  { %1099 = vmatprep.subr.bf16.mxu0 %v5576_v37 }
 0x117   :  { %4237 = vmatpush3.bf16.msra.mxu1 %v5626_v42 }
 0x118   :  { %4238 = vmatprep.subr.bf16.mxu1 %v6892_v36  ;;  %1100 = vmatpush1.bf16.msra.mxu0 %v5580_v38 }
 0x119   :  { %1188 = vmatprep.subr.bf16.mxu0 %v5493_v14 }
 0x11b   :  { %4239 = vmatpush3.bf16.msra.mxu1 %v5634_v43 }
 0x11c   :  { %4240 = vmatprep.subr.bf16.mxu1 %v6892_v36 }
 0x11f   :  { %4241 = vmatpush3.bf16.msra.mxu1 %v5640_v44 }
 0x120   :  { %4242 = vmatprep.subr.bf16.mxu1 %v6892_v36 }
 0x123   :  { %4243 = vmatpush3.bf16.msra.mxu1 %v5644_v45 }
 0x124   :  { %4244 = vmatprep.subr.bf16.mxu1 %v6892_v36 }
 0x127   :  { %4245 = vmatpush3.bf16.msra.mxu1 %v5648_v46 }
 0x128   :  { %4250 = vmatprep.subr.bf16.mxu1 %v6892_v36 }
 0x12a   :  { %4247 = vmatmul.mubr.bf16.vlgmr.msra.gmra.mrb[44].mxu1 %v6890_v0 }
 0x12b   :  { %4251 = vmatpush3.bf16.msra.mxu1 %v5606_v39  ;;  %4266 = vmatprep.mubr.msk.bf16.mxu1 %vm5218_vm1, %v6892_v36 }
 0x12c   :  { %4252 = vmatprep.subr.bf16.mxu1 %v6892_v36 }
 0x12f   :  { %4253 = vmatpush3.bf16.msra.mxu1 %v5612_v40 }
 0x130   :  { %4254 = vmatprep.subr.bf16.mxu1 %v6892_v36 }
 0x133   :  { %4255 = vmatpush3.bf16.msra.mxu1 %v5619_v41 }
 0x134   :  { %4256 = vmatprep.subr.bf16.mxu1 %v6892_v36 }
 0x137   :  { %4257 = vmatpush3.bf16.msra.mxu1 %v5626_v42 }
 0x138   :  { %4258 = vmatprep.subr.bf16.mxu1 %v6892_v36 }
 0x13b   :  { %4259 = vmatpush3.bf16.msra.mxu1 %v5634_v43 }
 0x13c   :  { %4260 = vmatprep.subr.bf16.mxu1 %v6892_v36 }
 0x13f   :  { %4261 = vmatpush3.bf16.msra.mxu1 %v5640_v44 }
 0x140   :  { %4262 = vmatprep.subr.bf16.mxu1 %v6892_v36 }
 0x143   :  { %4263 = vmatpush3.bf16.msra.mxu1 %v5644_v45 }
 0x144   :  { %4264 = vmatprep.subr.bf16.mxu1 %v6892_v36 }
 0x147   :  { %4265 = vmatpush3.bf16.msra.mxu1 %v5648_v46 }
 0x148   :  { %4270 = vmatprep.subr.bf16.mxu1 %v6892_v36 }
 0x195   :  { %v304_v54 = vpop.f32.mrb[0].mxu1  ;;  %v5686_v55 = vpop.f32.mrb[0].mxu0 }
 0x196   :  { %6928 = vst [vmem:[#allocation40_spill] sm:$0xff] %v5686_v55  ;;  %v5689_v56 = vadd.f32 %v304_v54, %v5681_v52  ;;  %v306_v57 = vpop.f32.mrb[1].mxu1  ;;  %v5691_v58 = vpop.f32.mrb[1].mxu0 }
 0x197   :  { %6929 = vst [vmem:[#allocation41_spill] sm:$0xff] %v5691_v58  ;;  %v5694_v59 = vadd.f32 %v306_v57, %v5684_v53  ;;  %v308_v60 = vpop.f32.mrb[2].mxu1  ;;  %v298_v61 = vpop.f32.mrb[2].mxu0 }
 0x198   :  { %v5697_v62 = vadd.f32 %v308_v60, %v5681_v52  ;;  %v310_v63 = vpop.f32.mrb[3].mxu1  ;;  %v5700_v1 = vadd.f32 %v298_v61, %v5681_v52  ;;  %v300_v2 = vpop.f32.mrb[3].mxu0 }
 0x199   :  { %v5703_v3 = vadd.f32 %v310_v63, %v5684_v53  ;;  %v5706_v4 = vadd.f32 %v300_v2, %v5684_v53 }
 0x19d   :  { %v314_v5 = vpop.f32.mrb[4].mxu1  ;;  %v4214_v6 = vpop.f32.mrb[4].mxu0 }
 0x19e   :  { %v5709_v7 = vadd.f32 %v314_v5, %v5681_v52  ;;  %v316_v8 = vpop.f32.mrb[5].mxu1  ;;  %v560_v9 = vpop.f32.mrb[5].mxu0 }
 0x19f   :  { %v5712_v10 = vadd.f32 %v316_v8, %v5684_v53  ;;  %v318_v11 = vpop.f32.mrb[6].mxu1  ;;  %v4215_v12 = vpop.f32.mrb[6].mxu0  ;;  %v5735_v8 = vld [vmem:[#allocation5] sm:$0x7] }
 0x1a0   :  { %v5715_v13 = vadd.f32 %v318_v11, %v5681_v52  ;;  %v320_v15 = vpop.f32.mrb[7].mxu1  ;;  %v563_v16 = vpop.f32.mrb[7].mxu0  ;;  %v5738_v11 = vrot.slane %v194_v50, %v5724_v34 }
 0x1a1   :  { %v5718_v17 = vadd.f32 %v320_v15, %v5684_v53  ;;  %v5742_v15 = vrot.slane %v5735_v8, %v5675_v49 }
 0x1a2   :  { %6931 = vst [vmem:[#allocation43_spill] sm:$0xff] %v5738_v11 }
 0x1a5   :  { %v324_v18 = vpop.f32.mrb[8].mxu1  ;;  %v4218_v21 = vpop.f32.mrb[8].mxu0 }
 0x1a6   :  { %v5721_v24 = vadd.f32 %v324_v18, %v5681_v52  ;;  %v326_v29 = vpop.f32.mrb[9].mxu1  ;;  %v576_v47 = vpop.f32.mrb[9].mxu0 }
 0x1a7   :  { %v5727_v54 = vadd.f32 %v326_v29, %v5684_v53  ;;  %v328_v57 = vpop.f32.mrb[10].mxu1  ;;  %v4219_v60 = vpop.f32.mrb[10].mxu0 }
 0x1a8   :  { %v5730_v61 = vadd.f32 %v328_v57, %v5681_v52  ;;  %v330_v63 = vpop.f32.mrb[11].mxu1  ;;  %v579_v2 = vpop.f32.mrb[11].mxu0  ;;  %v5748_v57 = vrot.slane %v5735_v8, %v5678_v51 }
 0x1a9   :  { %v5733_v5 = vadd.f32 %v330_v63, %v5684_v53 }
 0x1ad   :  { %v4204_v18 = vpop.f32.mrb[12].mxu1  ;;  %v5744_v29 = vpop.f32.mrb[12].mxu0 }
 0x1ae   :  { %v376_v60 = vadd.f32 %v4204_v18, %v5738_v11  ;;  %v5751_v63 = vpop.f32.mrb[13].mxu1  ;;  %v5753_v0 = vpop.f32.mrb[13].mxu0 }
 0x1af   :  { %6932 = vst [vmem:[#allocation44_spill] sm:$0xff] %v5751_v63  ;;  %v4205_v36 = vpop.f32.mrb[14].mxu1  ;;  %v705_v50 = vpop.f32.mrb[14].mxu0 }
 0x1b0   :  { %v379_v55 = vadd.f32 %v4205_v36, %v5738_v11  ;;  %v370_v52 = vpop.f32.mrb[15].mxu1  ;;  %v5756_v58 = vadd.f32 %v563_v16, %v376_v60  ;;  %v5759_v53 = vadd.f32 %v705_v50, %v5742_v15  ;;  %v707_v48 = vpop.f32.mrb[15].mxu0 }
 0x1b1   :  { %v371_v14 = vadd.f32 %v370_v52, %v5738_v11  ;;  %v5763_v46 = vadd.f32 %v707_v48, %v5748_v57 }
 0x1b2   :  { %6933 = vst [vmem:[#allocation45_spill] sm:$0xff] %v5756_v58  ;;  %v5765_v18 = vadd.f32 %v4214_v6, %v379_v55 }
 0x1b3   :  { %v5767_v63 = vadd.f32 %v560_v9, %v371_v14 }
 0x1b4   :  { %6934 = vst [vmem:[#allocation46_spill] sm:$0xff] %v5765_v18 }
 0x1b5   :  { %6935 = vst [vmem:[#allocation47_spill] sm:$0xff] %v5767_v63  ;;  %v4208_v38 = vpop.f32.mrb[16].mxu1  ;;  %v711_v37 = vpop.f32.mrb[16].mxu0 }
 0x1b6   :  { %v392_v36 = vadd.f32 %v4208_v38, %v5738_v11  ;;  %v383_v45 = vpop.f32.mrb[17].mxu1  ;;  %v5771_v16 = vadd.f32 %v711_v37, %v5742_v15  ;;  %v713_v60 = vpop.f32.mrb[17].mxu0 }
 0x1b7   :  { %v384_v50 = vadd.f32 %v383_v45, %v5738_v11  ;;  %v4209_v58 = vpop.f32.mrb[18].mxu1  ;;  %v5775_v52 = vadd.f32 %v713_v60, %v5748_v57  ;;  %v715_v48 = vpop.f32.mrb[18].mxu0 }
 0x1b8   :  { %v395_v55 = vadd.f32 %v4209_v58, %v5738_v11  ;;  %v386_v14 = vpop.f32.mrb[19].mxu1  ;;  %v5778_v6 = vadd.f32 %v579_v2, %v392_v36  ;;  %v5781_v9 = vadd.f32 %v715_v48, %v5742_v15  ;;  %v717_v38 = vpop.f32.mrb[19].mxu0 }
 0x1b9   :  { %6936 = vst [vmem:[#allocation48_spill] sm:$0xff] %v5775_v52  ;;  %v5783_v18 = vadd.f32 %v4215_v12, %v384_v50  ;;  %v387_v37 = vadd.f32 %v386_v14, %v5738_v11  ;;  %v5787_v45 = vadd.f32 %v717_v38, %v5748_v57 }
 0x1ba   :  { %6937 = vst [vmem:[#allocation49_spill] sm:$0xff] %v5778_v6  ;;  %v5789_v63 = vadd.f32 %v4218_v21, %v395_v55 }
 0x1bb   :  { %6938 = vst [vmem:[#allocation50_spill] sm:$0xff] %v5783_v18  ;;  %v5791_v60 = vadd.f32 %v576_v47, %v387_v37 }
 0x1bc   :  { %6939 = vst [vmem:[#allocation51_spill] sm:$0xff] %v5789_v63 }
 0x1bd   :  { %6940 = vst [vmem:[#allocation52_spill] sm:$0xff] %v5791_v60  ;;  %v489_v52 = vpop.f32.mrb[20].mxu1  ;;  %v721_v58 = vpop.f32.mrb[20].mxu0 }
 0x1be   :  { %v5794_v2 = vadd.f32 %v489_v52, %v5700_v1  ;;  %v491_v36 = vpop.f32.mrb[21].mxu1  ;;  %v5797_v48 = vadd.f32 %v721_v58, %v5742_v15  ;;  %v723_v12 = vpop.f32.mrb[21].mxu0 }
 0x1bf   :  { %v5800_v50 = vadd.f32 %v491_v36, %v5706_v4  ;;  %v493_v14 = vpop.f32.mrb[22].mxu1  ;;  %v5803_v38 = vadd.f32 %v723_v12, %v5748_v57  ;;  %v725_v21 = vpop.f32.mrb[22].mxu0 }
 0x1c0   :  { %6941 = vst [vmem:[#allocation53_spill] sm:$0xff] %v5794_v2  ;;  %v5806_v47 = vadd.f32 %v493_v14, %v5689_v56  ;;  %v495_v55 = vpop.f32.mrb[23].mxu1  ;;  %v5809_v1 = vadd.f32 %v725_v21, %v5742_v15  ;;  %v727_v52 = vpop.f32.mrb[23].mxu0 }
 0x1c1   :  { %6942 = vst [vmem:[#allocation54_spill] sm:$0xff] %v5800_v50  ;;  %v5812_v37 = vadd.f32 %v495_v55, %v5694_v59  ;;  %v5815_v58 = vadd.f32 %v727_v52, %v5748_v57  ;;  %v837_v52 = vld [vmem:[#allocation7] sm:$0x7] }
 0x1c2   :  { %6943 = vst [vmem:[#allocation55_spill] sm:$0xff] %v5806_v47 }
 0x1c3   :  { %6944 = vst [vmem:[#allocation56_spill] sm:$0xff] %v5812_v37 }
 0x1c5   :  { %v499_v4 = vpop.f32.mrb[24].mxu1  ;;  %v731_v36 = vpop.f32.mrb[24].mxu0 }
 0x1c6   :  { %v5818_v12 = vadd.f32 %v499_v4, %v5697_v62  ;;  %v501_v63 = vpop.f32.mrb[25].mxu1  ;;  %v5821_v56 = vadd.f32 %v731_v36, %v5742_v15  ;;  %v733_v14 = vpop.f32.mrb[25].mxu0 }
 0x1c7   :  { %v5824_v21 = vadd.f32 %v501_v63, %v5703_v3  ;;  %v503_v6 = vpop.f32.mrb[26].mxu1  ;;  %v5827_v59 = vadd.f32 %v733_v14, %v5748_v57  ;;  %v735_v55 = vpop.f32.mrb[26].mxu0  ;;  %v5842_v63 = vrot.slane %v837_v52, %v5675_v49  ;;  %v5845_v14 = vrot.slane %v837_v52, %v5678_v51 }
 0x1c8   :  { %6945 = vst [vmem:[#allocation57_spill] sm:$0xff] %v5818_v12  ;;  %v5830_v60 = vadd.f32 %v503_v6, %v5709_v7  ;;  %v505_v18 = vpop.f32.mrb[27].mxu1  ;;  %v5833_v62 = vadd.f32 %v735_v55, %v5742_v15  ;;  %v737_v4 = vpop.f32.mrb[27].mxu0  ;;  %v702_v6 = vadd.f32 %v5744_v29, %v5742_v15 }
 0x1c9   :  { %6946 = vst [vmem:[#allocation58_spill] sm:$0xff] %v5824_v21  ;;  %v5836_v36 = vadd.f32 %v505_v18, %v5712_v10  ;;  %v5839_v3 = vadd.f32 %v737_v4, %v5748_v57  ;;  %v704_v4 = vadd.f32 %v5753_v0, %v5748_v57 }
 0x1ca   :  { %6947 = vst [vmem:[#allocation59_spill] sm:$0xff] %v5830_v60 }
 0x1cb   :  { %6948 = vst [vmem:[#allocation60_spill] sm:$0xff] %v5836_v36  ;;  %6949 = vst [vmem:[#allocation61_spill] sm:$0xff] %v5839_v3 }
 0x1cd   :  { %v509_v21 = vpop.f32.mrb[28].mxu1  ;;  %v1016_v7 = vpop.f32.mrb[28].mxu0 }
 0x1ce   :  { %v5850_v55 = vadd.f32 %v509_v21, %v5715_v13  ;;  %v1017_v10 = vadd.f32 %v1016_v7, %v5842_v63  ;;  %v511_v18 = vpop.f32.mrb[29].mxu1  ;;  %v1018_v36 = vpop.f32.mrb[29].mxu0 }
 0x1cf   :  { %v5856_v60 = vadd.f32 %v511_v18, %v5718_v17  ;;  %v1019_v12 = vadd.f32 %v1018_v36, %v5845_v14  ;;  %v513_v37 = vpop.f32.mrb[30].mxu1  ;;  %v1020_v47 = vpop.f32.mrb[30].mxu0 }
 0x1d0   :  { %6950 = vst [vmem:[#allocation62_spill] sm:$0xff] %v5850_v55  ;;  %v1063_v50 = vadd.f32 %v1017_v10, %v702_v6  ;;  %v5860_v15 = vadd.f32 %v513_v37, %v5721_v24  ;;  %v515_v13 = vpop.f32.mrb[31].mxu1  ;;  %v1021_v29 = vpop.f32.mrb[31].mxu0  ;;  %v615_v24 = vrot.slane %v5735_v8, %v5724_v34 }
 0x1d1   :  { %6951 = vst [vmem:[#allocation63_spill] sm:$0xff] %v5856_v60  ;;  %v1070_v21 = vadd.f32 %v1019_v12, %v704_v4  ;;  %v5863_v7 = vadd.f32 %v515_v13, %v5727_v54 }
 0x1d2   :  { %6952 = vst [vmem:[#allocation64_spill] sm:$0xff] %v5860_v15  ;;  %v3900_v54 = vmul.f32 -1.442695, %v1063_v50 }
 0x1d3   :  { %6953 = vst [vmem:[#allocation65_spill] sm:$0xff] %v5863_v7 }
 0x1d4   :  { %4740 = vpow2.f32 %v3900_v54  ;;  %v5888_v54 = vrot.slane %v837_v52, %v5724_v34 }
 0x1d5   :  { %v519_v55 = vpop.f32.mrb[32].mxu1 }
 0x1d6   :  { %v5866_v0 = vadd.f32 %v519_v55, %v5730_v61  ;;  %v521_v17 = vpop.f32.mrb[33].mxu1 }
 0x1d7   :  { %v5869_v57 = vadd.f32 %v521_v17, %v5733_v5  ;;  %v523_v36 = vpop.f32.mrb[34].mxu1 }
 0x1d8   :  { %6954 = vst [vmem:[#allocation66_spill] sm:$0xff] %v5866_v0  ;;  %v524_v47 = vpop.f32.mrb[35].mxu1 }
 0x1d9   :  { %6955 = vst [vmem:[#allocation67_spill] sm:$0xff] %v5869_v57 }
 0x1dd   :  { %v4224_v37 = vpop.f32.mrb[36].mxu1 }
 0x1de   :  { %v5873_v6 = vadd.f32 %v4224_v37, %v615_v24  ;;  %v774_v12 = vpop.f32.mrb[37].mxu1  ;;  %v3901_v37 = vmul.f32 -1.442695, %v1070_v21  ;;  %v4741_v50 = vpop.eup %4740 }
 0x1df   :  { %v4225_v10 = vpop.f32.mrb[38].mxu1  ;;  %v775_v15 = vadd.f32 %v774_v12, %v615_v24 }
 0x1e0   :  { %v5875_v18 = vadd.f32 %v4225_v10, %v615_v24  ;;  %v777_v4 = vpop.f32.mrb[39].mxu1  ;;  %4742 = vpow2.f32 %v3901_v37  ;;  %v1067_v10 = vadd.f32 1.0, %v4741_v50 }
 0x1e1   :  { %v5877_v61 = vadd.f32 %v777_v4, %v615_v24 }
 0x1e2   :  { %4744 = vrcp.f32 %v1067_v10 }
 0x1e5   :  { %v4228_v55 = vpop.f32.mrb[40].mxu1 }
 0x1e6   :  { %v5879_v5 = vadd.f32 %v4228_v55, %v615_v24  ;;  %v790_v13 = vpop.f32.mrb[41].mxu1 }
 0x1e7   :  { %v5881_v29 = vadd.f32 %v790_v13, %v615_v24  ;;  %v4229_v17 = vpop.f32.mrb[42].mxu1 }
 0x1e8   :  { %v5883_v8 = vadd.f32 %v4229_v17, %v615_v24  ;;  %v793_v36 = vpop.f32.mrb[43].mxu1 }
 0x1e9   :  { %v5885_v47 = vadd.f32 %v793_v36, %v615_v24 }
 0x1ea   :  { %6956 = vst [vmem:[#allocation68_spill] sm:$0xff] %v5883_v8  ;;  %v4743_v4 = vpop.eup %4742 }
 0x1eb   :  { %v1074_v55 = vadd.f32 1.0, %v4743_v4 }
 0x1ec   :  { %v4745_v7 = vpop.eup %4744 }
 0x1ed   :  { %4746 = vrcp.f32 %v1074_v55 }
 0x1f7   :  { %v4747_v37 = vpop.eup %4746 }
 0x1f8   :  { %v1080_v50 = vsub.f32 1.0, %v4747_v37  ;;  %v1082_v11 = vmul.f32 0.0, %v4747_v37 }
 0x1fd   :  { %v1057_v57 = vpop.f32.mrb[44].mxu1 }
 0x1fe   :  { %v1058_v13 = vadd.f32 %v1057_v57, %v5888_v54  ;;  %v4248_v0 = vpop.f32.mrb[45].mxu1  ;;  %v6963_v57 = vld [vmem:[#allocation30_spill] sm:$0xff] }
 0x1ff   :  { %v1060_v17 = vpop.f32.mrb[46].mxu1  ;;  %v6962_v0 = vld [vmem:[#allocation34_spill] sm:$0xff] }
 0x200   :  { %v1077_v36 = vmul.f32 %v4745_v7, %v1058_v13  ;;  %v4249_v60 = vpop.f32.mrb[47].mxu1  ;;  %v6961_v7 = vld [vmem:[#allocation32_spill] sm:$0xff] }
 0x201   :  { %v6957_v60 = vmov 0.0  }
 0x202   :  { %v1078_v21 = vadd.f32 %v1077_v36, %v775_v15  ;;  %v6958_v15 = vmov 0  }
 0x204   :  { %4748 = vtanh.f32 %v1078_v21 }
 0x20e   :  { %v4749_v10 = vpop.eup %4748 }
 0x20f   :  { %v1081_v2 = vmul.f32 %v4749_v10, %v1080_v50 }
 0x211   :  { %v5891_v52 = vadd.f32 %v1082_v11, %v1081_v2  ;;  %v6959_v11 = vld [vmem:[#allocation33_spill] sm:$0xff]  ;;  %v6960_v2 = vld [vmem:[#allocation31_spill] sm:$0xff] }
 0x213   :  { %v1084_v4 = vpack.c.bf16 %v5891_v52, %v5891_v52 }
 0x215   :  { %1118 = vmatmul.mubr.bf16.vlgmr.msra.gmra.mrb[32].mxu0 %v1084_v4  ;;  %4267 = vmatmul.mubr.bf16.vlgmr.msra.gmra.mrb[48].mxu1 %v1084_v4 }
 0x216   :  { %1189 = vmatpush1.bf16.msra.mxu0 %v5514_v19  ;;  %4271 = vmatpush3.bf16.msra.mxu1 %v5606_v39 }
 0x217   :  { %1190 = vmatprep.subr.bf16.mxu0 %v5516_v20  ;;  %4272 = vmatprep.subr.bf16.mxu1 %v6957_v60 }
 0x218   :  { %1220 = vmatprep.mubr.bf16.mxu0 %v6958_v15  ;;  %4286 = vmatprep.mubr.msk.bf16.mxu1 %vm5218_vm1, %v6957_v60 }
 0x21a   :  { %1191 = vmatpush1.bf16.msra.mxu0 %v5525_v22  ;;  %4273 = vmatpush3.bf16.msra.mxu1 %v5612_v40 }
 0x21b   :  { %1192 = vmatprep.subr.bf16.mxu0 %v5529_v23  ;;  %4274 = vmatprep.subr.bf16.mxu1 %v6957_v60 }
 0x21e   :  { %1193 = vmatpush1.bf16.msra.mxu0 %v5536_v25  ;;  %4275 = vmatpush3.bf16.msra.mxu1 %v5619_v41 }
 0x21f   :  { %1194 = vmatprep.subr.bf16.mxu0 %v5539_v26  ;;  %4276 = vmatprep.subr.bf16.mxu1 %v6957_v60 }
 0x222   :  { %1195 = vmatpush1.bf16.msra.mxu0 %v5541_v27  ;;  %4277 = vmatpush3.bf16.msra.mxu1 %v5626_v42 }
 0x223   :  { %1196 = vmatprep.subr.bf16.mxu0 %v5545_v28  ;;  %4278 = vmatprep.subr.bf16.mxu1 %v6957_v60 }
 0x226   :  { %1197 = vmatpush1.bf16.msra.mxu0 %v5554_v30  ;;  %4279 = vmatpush3.bf16.msra.mxu1 %v5634_v43 }
 0x227   :  { %1198 = vmatprep.subr.bf16.mxu0 %v5556_v31  ;;  %4280 = vmatprep.subr.bf16.mxu1 %v6957_v60 }
 0x22a   :  { %1199 = vmatpush1.bf16.msra.mxu0 %v5560_v32  ;;  %4281 = vmatpush3.bf16.msra.mxu1 %v5640_v44 }
 0x22b   :  { %1200 = vmatprep.subr.bf16.mxu0 %v5564_v33  ;;  %4282 = vmatprep.subr.bf16.mxu1 %v6957_v60 }
 0x22e   :  { %1201 = vmatpush1.bf16.msra.mxu0 %v5573_v35  ;;  %4283 = vmatpush3.bf16.msra.mxu1 %v6959_v11 }
 0x22f   :  { %1202 = vmatprep.subr.bf16.mxu0 %v6960_v2  ;;  %4284 = vmatprep.subr.bf16.mxu1 %v6957_v60 }
 0x232   :  { %1203 = vmatpush1.bf16.msra.mxu0 %v6961_v7  ;;  %4285 = vmatpush3.bf16.msra.mxu1 %v6962_v0 }
 0x233   :  { %1291 = vmatprep.subr.bf16.mxu0 %v6963_v57  ;;  %4290 = vmatprep.subr.bf16.mxu1 %v6957_v60 }
 0x2e8   :  { %v1119_v24 = vpop.f32.mrb[32].mxu0  ;;  %v1160_v12 = vpop.f32.mrb[48].mxu1 }
 0x2e9   :  { %v1120_v55 = vadd.f32 %v1119_v24, %v5842_v63  ;;  %v1121_v13 = vpop.f32.mrb[33].mxu0  ;;  %v4268_v17 = vpop.f32.mrb[49].mxu1 }
 0x2ea   :  { %v1122_v36 = vadd.f32 %v1121_v13, %v5845_v14  ;;  %v1123_v21 = vpop.f32.mrb[34].mxu0  ;;  %v1163_v37 = vpop.f32.mrb[50].mxu1  ;;  %v1161_v17 = vadd.f32 %v1160_v12, %v5888_v54 }
 0x2eb   :  { %v1166_v50 = vadd.f32 %v1120_v55, %v5759_v53  ;;  %v1124_v10 = vpop.f32.mrb[35].mxu0  ;;  %v4269_v4 = vpop.f32.mrb[51].mxu1 }
 0x2ec   :  { %v1173_v51 = vadd.f32 %v1122_v36, %v5763_v46 }
 0x2ed   :  { %v3902_v34 = vmul.f32 -1.442695, %v1166_v50 }
 0x2ee   :  { %v3903_v57 = vmul.f32 -1.442695, %v1173_v51 }
 0x2ef   :  { %4750 = vpow2.f32 %v3902_v34 }
 0x2f0   :  { %4752 = vpow2.f32 %v3903_v57 }
 0x2f9   :  { %v4751_v49 = vpop.eup %4750 }
 0x2fa   :  { %v1170_v8 = vadd.f32 1.0, %v4751_v49  ;;  %v4753_v24 = vpop.eup %4752 }
 0x2fb   :  { %v1177_v3 = vadd.f32 1.0, %v4753_v24 }
 0x2fc   :  { %4754 = vrcp.f32 %v1170_v8  ;;  %v6964_v8 = vld [vmem:[#allocation48_spill] sm:$0xff] }
 0x2fd   :  { %4756 = vrcp.f32 %v1177_v3 }
 0x306   :  { %v4755_v13 = vpop.eup %4754 }
 0x307   :  { %v1180_v21 = vmul.f32 %v4755_v13, %v1161_v17  ;;  %v4757_v55 = vpop.eup %4756 }
 0x308   :  { %v1183_v37 = vsub.f32 1.0, %v4757_v55  ;;  %v1185_v51 = vmul.f32 %v4757_v55, %v5891_v52 }
 0x309   :  { %v1181_v53 = vadd.f32 %v1180_v21, %v5877_v61 }
 0x30b   :  { %4758 = vtanh.f32 %v1181_v53 }
 0x315   :  { %v4759_v46 = vpop.eup %4758 }
 0x316   :  { %v1184_v36 = vmul.f32 %v4759_v46, %v1183_v37 }
 0x318   :  { %v5937_v34 = vadd.f32 %v1185_v51, %v1184_v36 }
 0x31a   :  { %v1187_v49 = vpack.c.bf16 %v5937_v34, %v5937_v34 }
 0x31c   :  { %1221 = vmatmul.mubr.bf16.vlgmr.msra.gmra.mrb[36].mxu0 %v1187_v49  ;;  %4287 = vmatmul.mubr.bf16.vlgmr.msra.gmra.mrb[52].mxu1 %v1187_v49 }
 0x31d   :  { %1292 = vmatpush1.bf16.msra.mxu0 %v5514_v19  ;;  %4291 = vmatpush3.bf16.msra.mxu1 %v5606_v39  ;;  %v5974_v19 = vld [vmem:[#allocation2 + $0x4] ss:$12 sps:$4 sm:$0xff]  }
 0x31e   :  { %1293 = vmatprep.subr.bf16.mxu0 %v5516_v20  ;;  %4292 = vmatprep.subr.bf16.mxu1 %v6957_v60 }
 0x31f   :  { %1323 = vmatprep.mubr.bf16.mxu0 %v6958_v15  ;;  %4306 = vmatprep.mubr.msk.bf16.mxu1 %vm5218_vm1, %v6957_v60 }
 0x321   :  { %1294 = vmatpush1.bf16.msra.mxu0 %v5525_v22  ;;  %4293 = vmatpush3.bf16.msra.mxu1 %v5612_v40 }
 0x322   :  { %1295 = vmatprep.subr.bf16.mxu0 %v5529_v23  ;;  %4294 = vmatprep.subr.bf16.mxu1 %v6957_v60 }
 0x325   :  { %1296 = vmatpush1.bf16.msra.mxu0 %v5536_v25  ;;  %4295 = vmatpush3.bf16.msra.mxu1 %v5619_v41 }
 0x326   :  { %1297 = vmatprep.subr.bf16.mxu0 %v5539_v26  ;;  %4296 = vmatprep.subr.bf16.mxu1 %v6957_v60 }
 0x329   :  { %1298 = vmatpush1.bf16.msra.mxu0 %v5541_v27  ;;  %4297 = vmatpush3.bf16.msra.mxu1 %v5626_v42 }
 0x32a   :  { %1299 = vmatprep.subr.bf16.mxu0 %v5545_v28  ;;  %4298 = vmatprep.subr.bf16.mxu1 %v6957_v60 }
 0x32d   :  { %1300 = vmatpush1.bf16.msra.mxu0 %v5554_v30  ;;  %4299 = vmatpush3.bf16.msra.mxu1 %v5634_v43 }
 0x32e   :  { %1301 = vmatprep.subr.bf16.mxu0 %v5556_v31  ;;  %4300 = vmatprep.subr.bf16.mxu1 %v6957_v60 }
 0x331   :  { %1302 = vmatpush1.bf16.msra.mxu0 %v5560_v32  ;;  %4301 = vmatpush3.bf16.msra.mxu1 %v5640_v44 }
 0x332   :  { %1303 = vmatprep.subr.bf16.mxu0 %v5564_v33  ;;  %4302 = vmatprep.subr.bf16.mxu1 %v6957_v60 }
 0x335   :  { %1304 = vmatpush1.bf16.msra.mxu0 %v5573_v35  ;;  %4303 = vmatpush3.bf16.msra.mxu1 %v6959_v11 }
 0x336   :  { %1305 = vmatprep.subr.bf16.mxu0 %v6960_v2  ;;  %4304 = vmatprep.subr.bf16.mxu1 %v6957_v60 }
 0x339   :  { %1306 = vmatpush1.bf16.msra.mxu0 %v6961_v7  ;;  %4305 = vmatpush3.bf16.msra.mxu1 %v6962_v0 }
 0x33a   :  { %1394 = vmatprep.subr.bf16.mxu0 %v5974_v19  ;;  %4310 = vmatprep.subr.bf16.mxu1 %v6957_v60 }
 0x3ef   :  { %v1222_v20 = vpop.f32.mrb[36].mxu0  ;;  %v1263_v22 = vpop.f32.mrb[52].mxu1 }
 0x3f0   :  { %v1223_v23 = vadd.f32 %v1222_v20, %v5842_v63  ;;  %v1224_v25 = vpop.f32.mrb[37].mxu0  ;;  %v4288_v26 = vpop.f32.mrb[53].mxu1  ;;  %v1264_v17 = vadd.f32 %v1263_v22, %v5888_v54  ;;  %v5989_v20 = vld [vmem:[#allocation2] ss:$12 sps:$4 sm:$0xff]  }
 0x3f1   :  { %v1225_v27 = vadd.f32 %v1224_v25, %v5845_v14  ;;  %v1226_v28 = vpop.f32.mrb[38].mxu0  ;;  %v1266_v30 = vpop.f32.mrb[54].mxu1  ;;  %v6004_v22 = vld [vmem:[#allocation2 + $0x34] ss:$12 sps:$4 sm:$0xff]   ;;  %v6012_v25 = vld [vmem:[#allocation2 + $0x4c] ss:$12 sps:$4 sm:$0xff]  }
 0x3f2   :  { %v1269_v31 = vadd.f32 %v1223_v23, %v5771_v16  ;;  %v1227_v3 = vpop.f32.mrb[39].mxu0  ;;  %v4289_v61 = vpop.f32.mrb[55].mxu1  ;;  %v6008_v23 = vld [vmem:[#allocation2 + $0x30] ss:$12 sps:$4 sm:$0xff]   ;;  %v6016_v26 = vld [vmem:[#allocation2 + $0x48] ss:$12 sps:$4 sm:$0xff]  }
 0x3f3   :  { %v1276_v52 = vadd.f32 %v1225_v27, %v6964_v8  ;;  %v6020_v27 = vld [vmem:[#allocation2 + $0x64] ss:$12 sps:$4 sm:$0xff]   ;;  %v6024_v28 = vld [vmem:[#allocation2 + $0x60] ss:$12 sps:$4 sm:$0xff]   ;;  %v6028_v30 = vld [vmem:[#allocation2 + $0x7c] ss:$12 sps:$4 sm:$0xff]  }
 0x3f4   :  { %v3904_v12 = vmul.f32 -1.442695, %v1269_v31 }
 0x3f5   :  { %v3905_v50 = vmul.f32 -1.442695, %v1276_v52 }
 0x3f6   :  { %4760 = vpow2.f32 %v3904_v12 }
 0x3f7   :  { %4762 = vpow2.f32 %v3905_v50 }
 0x400   :  { %v4761_v10 = vpop.eup %4760 }
 0x401   :  { %v1273_v4 = vadd.f32 1.0, %v4761_v10  ;;  %v4763_v57 = vpop.eup %4762 }
 0x402   :  { %v1280_v24 = vadd.f32 1.0, %v4763_v57 }
 0x403   :  { %4764 = vrcp.f32 %v1273_v4 }
 0x404   :  { %4766 = vrcp.f32 %v1280_v24 }
 0x40d   :  { %v4765_v13 = vpop.eup %4764 }
 0x40e   :  { %v1283_v21 = vmul.f32 %v4765_v13, %v1264_v17  ;;  %v4767_v53 = vpop.eup %4766 }
 0x40f   :  { %v1286_v55 = vsub.f32 1.0, %v4767_v53  ;;  %v1288_v36 = vmul.f32 %v4767_v53, %v5937_v34  ;;  %v6000_v34 = vld [vmem:[#allocation2 + $0x18] ss:$12 sps:$4 sm:$0xff]  }
 0x410   :  { %v1284_v16 = vadd.f32 %v1283_v21, %v5873_v6  ;;  %v5993_v6 = vld [vmem:[#allocation2 + $0x1c] ss:$12 sps:$4 sm:$0xff]  }
 0x412   :  { %4768 = vtanh.f32 %v1284_v16 }
 0x41c   :  { %v4769_v37 = vpop.eup %4768 }
 0x41d   :  { %v1287_v46 = vmul.f32 %v4769_v37, %v1286_v55 }
 0x41f   :  { %v5985_v51 = vadd.f32 %v1288_v36, %v1287_v46 }
 0x421   :  { %v1290_v49 = vpack.c.bf16 %v5985_v51, %v5985_v51 }
 0x423   :  { %1324 = vmatmul.mubr.bf16.vlgmr.msra.gmra.mrb[40].mxu0 %v1290_v49  ;;  %4307 = vmatmul.mubr.bf16.vlgmr.msra.gmra.mrb[56].mxu1 %v1290_v49 }
 0x424   :  { %1395 = vmatpush1.bf16.msra.mxu0 %v5989_v20  ;;  %4311 = vmatpush3.bf16.msra.mxu1 %v5606_v39 }
 0x425   :  { %1396 = vmatprep.subr.bf16.mxu0 %v5993_v6  ;;  %4312 = vmatprep.subr.bf16.mxu1 %v6957_v60 }
 0x426   :  { %1426 = vmatprep.mubr.bf16.mxu0 %v6958_v15  ;;  %4326 = vmatprep.mubr.msk.bf16.mxu1 %vm5218_vm1, %v6957_v60 }
 0x428   :  { %1397 = vmatpush1.bf16.msra.mxu0 %v6000_v34  ;;  %4313 = vmatpush3.bf16.msra.mxu1 %v5612_v40 }
 0x429   :  { %1398 = vmatprep.subr.bf16.mxu0 %v6004_v22  ;;  %4314 = vmatprep.subr.bf16.mxu1 %v6957_v60 }
 0x42c   :  { %1399 = vmatpush1.bf16.msra.mxu0 %v6008_v23  ;;  %4315 = vmatpush3.bf16.msra.mxu1 %v5619_v41 }
 0x42d   :  { %1400 = vmatprep.subr.bf16.mxu0 %v6012_v25  ;;  %4316 = vmatprep.subr.bf16.mxu1 %v6957_v60 }
 0x430   :  { %1401 = vmatpush1.bf16.msra.mxu0 %v6016_v26  ;;  %4317 = vmatpush3.bf16.msra.mxu1 %v5626_v42 }
 0x431   :  { %1402 = vmatprep.subr.bf16.mxu0 %v6020_v27  ;;  %4318 = vmatprep.subr.bf16.mxu1 %v6957_v60 }
 0x434   :  { %1403 = vmatpush1.bf16.msra.mxu0 %v6024_v28  ;;  %4319 = vmatpush3.bf16.msra.mxu1 %v5634_v43 }
 0x435   :  { %1404 = vmatprep.subr.bf16.mxu0 %v6028_v30  ;;  %4320 = vmatprep.subr.bf16.mxu1 %v6957_v60 }
 0x438   :  { %1405 = vmatpush1.bf16.msra.mxu0 %v5560_v32  ;;  %4321 = vmatpush3.bf16.msra.mxu1 %v5640_v44 }
 0x439   :  { %1406 = vmatprep.subr.bf16.mxu0 %v5564_v33  ;;  %4322 = vmatprep.subr.bf16.mxu1 %v6957_v60 }
 0x43c   :  { %1407 = vmatpush1.bf16.msra.mxu0 %v5573_v35  ;;  %4323 = vmatpush3.bf16.msra.mxu1 %v6959_v11 }
 0x43d   :  { %1408 = vmatprep.subr.bf16.mxu0 %v6960_v2  ;;  %4324 = vmatprep.subr.bf16.mxu1 %v6957_v60 }
 0x440   :  { %1409 = vmatpush1.bf16.msra.mxu0 %v6961_v7  ;;  %4325 = vmatpush3.bf16.msra.mxu1 %v6962_v0 }
 0x441   :  { %1497 = vmatprep.subr.bf16.mxu0 %v5974_v19  ;;  %4330 = vmatprep.subr.bf16.mxu1 %v6957_v60 }
 0x4f6   :  { %v1325_v32 = vpop.f32.mrb[40].mxu0  ;;  %v1366_v33 = vpop.f32.mrb[56].mxu1 }
 0x4f7   :  { %v1326_v31 = vadd.f32 %v1325_v32, %v5842_v63  ;;  %v1327_v3 = vpop.f32.mrb[41].mxu0  ;;  %v4308_v35 = vpop.f32.mrb[57].mxu1  ;;  %v1367_v21 = vadd.f32 %v1366_v33, %v5888_v54 }
 0x4f8   :  { %v1328_v61 = vadd.f32 %v1327_v3, %v5845_v14  ;;  %v1329_v8 = vpop.f32.mrb[42].mxu0  ;;  %v1369_v2 = vpop.f32.mrb[58].mxu1 }
 0x4f9   :  { %v1372_v52 = vadd.f32 %v1326_v31, %v5781_v9  ;;  %v1330_v12 = vpop.f32.mrb[43].mxu0  ;;  %v4309_v7 = vpop.f32.mrb[59].mxu1 }
 0x4fa   :  { %v1379_v50 = vadd.f32 %v1328_v61, %v5787_v45 }
 0x4fb   :  { %v3906_v10 = vmul.f32 -1.442695, %v1372_v52 }
 0x4fc   :  { %v3907_v4 = vmul.f32 -1.442695, %v1379_v50 }
 0x4fd   :  { %4770 = vpow2.f32 %v3906_v10 }
 0x4fe   :  { %4772 = vpow2.f32 %v3907_v4 }
 0x507   :  { %v4771_v57 = vpop.eup %4770 }
 0x508   :  { %v1376_v24 = vadd.f32 1.0, %v4771_v57  ;;  %v4773_v17 = vpop.eup %4772 }
 0x509   :  { %v1383_v13 = vadd.f32 1.0, %v4773_v17 }
 0x50a   :  { %4774 = vrcp.f32 %v1376_v24 }
 0x50b   :  { %4776 = vrcp.f32 %v1383_v13 }
 0x514   :  { %v4775_v16 = vpop.eup %4774 }
 0x515   :  { %v1386_v53 = vmul.f32 %v4775_v16, %v1367_v21  ;;  %v4777_v55 = vpop.eup %4776 }
 0x516   :  { %v1389_v37 = vsub.f32 1.0, %v4777_v55  ;;  %v1391_v36 = vmul.f32 %v4777_v55, %v5985_v51 }
 0x517   :  { %v1387_v9 = vadd.f32 %v1386_v53, %v5875_v18 }
 0x519   :  { %4778 = vtanh.f32 %v1387_v9 }
 0x523   :  { %v4779_v45 = vpop.eup %4778 }
 0x524   :  { %v1390_v46 = vmul.f32 %v4779_v45, %v1389_v37  ;;  %v6112_v37 = vld [vmem:[#allocation2 + $0x8] ss:$12 sps:$4 sm:$0xff]   ;;  %v6127_v45 = vld [vmem:[#allocation2 + $0x38] ss:$12 sps:$4 sm:$0xff]  }
 0x526   :  { %v6051_v49 = vadd.f32 %v1391_v36, %v1390_v46  ;;  %v6133_v46 = vld [vmem:[#allocation2 + $0x50] ss:$12 sps:$4 sm:$0xff]   ;;  %v6139_v36 = vld [vmem:[#allocation2 + $0x68] ss:$12 sps:$4 sm:$0xff]  }
 0x528   :  { %v1393_v32 = vpack.c.bf16 %v6051_v49, %v6051_v49 }
 0x52a   :  { %1427 = vmatmul.mubr.bf16.vlgmr.msra.gmra.mrb[44].mxu0 %v1393_v32  ;;  %4327 = vmatmul.mubr.bf16.vlgmr.msra.gmra.mrb[60].mxu1 %v1393_v32  ;;  %v6151_v32 = vld [vmem:[#allocation2 + $0x98] ss:$12 sps:$4 sm:$0xff]  }
 0x52b   :  { %1498 = vmatpush1.bf16.msra.mxu0 %v5989_v20  ;;  %4331 = vmatpush3.bf16.msra.mxu1 %v5606_v39  ;;  %v6078_v39 = vld [vmem:[#allocation2 + $0x78] ss:$12 sps:$4 sm:$0xff]  }
 0x52c   :  { %1499 = vmatprep.subr.bf16.mxu0 %v5993_v6  ;;  %4332 = vmatprep.subr.bf16.mxu1 %v6957_v60 }
 0x52d   :  { %1529 = vmatprep.mubr.bf16.mxu0 %v6958_v15  ;;  %4346 = vmatprep.mubr.msk.bf16.mxu1 %vm5218_vm1, %v6957_v60 }
 0x52f   :  { %1500 = vmatpush1.bf16.msra.mxu0 %v6000_v34  ;;  %4333 = vmatpush3.bf16.msra.mxu1 %v5612_v40  ;;  %v6082_v40 = vld [vmem:[#allocation2 + $0x94] ss:$12 sps:$4 sm:$0xff]  }
 0x530   :  { %1501 = vmatprep.subr.bf16.mxu0 %v6004_v22  ;;  %4334 = vmatprep.subr.bf16.mxu1 %v6957_v60 }
 0x533   :  { %1502 = vmatpush1.bf16.msra.mxu0 %v6008_v23  ;;  %4335 = vmatpush3.bf16.msra.mxu1 %v5619_v41  ;;  %v6086_v41 = vld [vmem:[#allocation2 + $0x90] ss:$12 sps:$4 sm:$0xff]  }
 0x534   :  { %1503 = vmatprep.subr.bf16.mxu0 %v6012_v25  ;;  %4336 = vmatprep.subr.bf16.mxu1 %v6957_v60 }
 0x537   :  { %1504 = vmatpush1.bf16.msra.mxu0 %v6016_v26  ;;  %4337 = vmatpush3.bf16.msra.mxu1 %v5626_v42  ;;  %v6090_v42 = vld [vmem:[#allocation2 + $0xac] ss:$12 sps:$4 sm:$0xff]  }
 0x538   :  { %1505 = vmatprep.subr.bf16.mxu0 %v6020_v27  ;;  %4338 = vmatprep.subr.bf16.mxu1 %v6957_v60 }
 0x53b   :  { %1506 = vmatpush1.bf16.msra.mxu0 %v6024_v28  ;;  %4339 = vmatpush3.bf16.msra.mxu1 %v5634_v43  ;;  %v6094_v43 = vld [vmem:[#allocation2 + $0xa8] ss:$12 sps:$4 sm:$0xff]  }
 0x53c   :  { %1507 = vmatprep.subr.bf16.mxu0 %v6028_v30  ;;  %4340 = vmatprep.subr.bf16.mxu1 %v6957_v60 }
 0x53f   :  { %1508 = vmatpush1.bf16.msra.mxu0 %v6078_v39  ;;  %4341 = vmatpush3.bf16.msra.mxu1 %v5640_v44 }
 0x540   :  { %1509 = vmatprep.subr.bf16.mxu0 %v6082_v40  ;;  %4342 = vmatprep.subr.bf16.mxu1 %v6957_v60 }
 0x543   :  { %1510 = vmatpush1.bf16.msra.mxu0 %v6086_v41  ;;  %4343 = vmatpush3.bf16.msra.mxu1 %v6959_v11 }
 0x544   :  { %1511 = vmatprep.subr.bf16.mxu0 %v6090_v42  ;;  %4344 = vmatprep.subr.bf16.mxu1 %v6957_v60 }
 0x547   :  { %1512 = vmatpush1.bf16.msra.mxu0 %v6094_v43  ;;  %4345 = vmatpush3.bf16.msra.mxu1 %v6962_v0 }
 0x548   :  { %1600 = vmatprep.subr.bf16.mxu0 %v5974_v19  ;;  %4350 = vmatprep.subr.bf16.mxu1 %v6957_v60 }
 0x5fd   :  { %v1428_v44 = vpop.f32.mrb[44].mxu0  ;;  %v1469_v18 = vpop.f32.mrb[60].mxu1 }
 0x5fe   :  { %v1429_v11 = vadd.f32 %v1428_v44, %v5842_v63  ;;  %v1430_v51 = vpop.f32.mrb[45].mxu0  ;;  %v4328_v33 = vpop.f32.mrb[61].mxu1  ;;  %v1470_v57 = vadd.f32 %v1469_v18, %v5888_v54  ;;  %v6157_v44 = vld [vmem:[#allocation2 + $0xb0] ss:$12 sps:$4 sm:$0xff]  }
 0x5ff   :  { %v1431_v31 = vadd.f32 %v1430_v51, %v5845_v14  ;;  %v1432_v3 = vpop.f32.mrb[46].mxu0  ;;  %v1472_v35 = vpop.f32.mrb[62].mxu1 }
 0x600   :  { %v1475_v61 = vadd.f32 %v1429_v11, %v5797_v48  ;;  %v1433_v8 = vpop.f32.mrb[47].mxu0  ;;  %v4329_v2 = vpop.f32.mrb[63].mxu1 }
 0x601   :  { %v1482_v0 = vadd.f32 %v1431_v31, %v5803_v38 }
 0x602   :  { %v3908_v52 = vmul.f32 -1.442695, %v1475_v61 }
 0x603   :  { %v3909_v12 = vmul.f32 -1.442695, %v1482_v0 }
 0x604   :  { %4780 = vpow2.f32 %v3908_v52 }
 0x605   :  { %4782 = vpow2.f32 %v3909_v12 }
 0x60e   :  { %v4781_v7 = vpop.eup %4780 }
 0x60f   :  { %v1479_v50 = vadd.f32 1.0, %v4781_v7  ;;  %v4783_v10 = vpop.eup %4782 }
 0x610   :  { %v1486_v4 = vadd.f32 1.0, %v4783_v10 }
 0x611   :  { %4784 = vrcp.f32 %v1479_v50 }
 0x612   :  { %4786 = vrcp.f32 %v1486_v4 }
 0x61b   :  { %v4785_v24 = vpop.eup %4784 }
 0x61c   :  { %v1489_v17 = vmul.f32 %v4785_v24, %v1470_v57  ;;  %v4787_v13 = vpop.eup %4786 }
 0x61d   :  { %v1492_v21 = vsub.f32 1.0, %v4787_v13  ;;  %v1494_v53 = vmul.f32 %v4787_v13, %v6051_v49  ;;  %v6145_v49 = vld [vmem:[#allocation2 + $0x80] ss:$12 sps:$4 sm:$0xff]  }
 0x61e   :  { %v1490_v48 = vadd.f32 %v1489_v17, %v5881_v29  ;;  %v6121_v29 = vld [vmem:[#allocation2 + $0x20] ss:$12 sps:$4 sm:$0xff]  }
 0x620   :  { %4788 = vtanh.f32 %v1490_v48 }
 0x62a   :  { %v4789_v38 = vpop.eup %4788 }
 0x62b   :  { %v1493_v16 = vmul.f32 %v4789_v38, %v1492_v21 }
 0x62d   :  { %v6107_v9 = vadd.f32 %v1494_v53, %v1493_v16 }
 0x62f   :  { %v1496_v55 = vpack.c.bf16 %v6107_v9, %v6107_v9 }
 0x631   :  { %1530 = vmatmul.mubr.bf16.vlgmr.msra.gmra.mrb[48].mxu0 %v1496_v55  ;;  %4347 = vmatmul.mubr.bf16.vlgmr.msra.gmra.mrb[64].mxu1 %v1496_v55 }
 0x632   :  { %1601 = vmatpush1.bf16.msra.mxu0 %v5989_v20  ;;  %4351 = vmatpush3.bf16.msra.mxu1 %v6112_v37 }
 0x633   :  { %1602 = vmatprep.subr.bf16.mxu0 %v5993_v6  ;;  %4352 = vmatprep.subr.bf16.mxu1 %v6957_v60 }
 0x634   :  { %1632 = vmatprep.mubr.bf16.mxu0 %v6958_v15  ;;  %4366 = vmatprep.mubr.msk.bf16.mxu1 %vm5218_vm1, %v6957_v60 }
 0x636   :  { %1603 = vmatpush1.bf16.msra.mxu0 %v6000_v34  ;;  %4353 = vmatpush3.bf16.msra.mxu1 %v6121_v29 }
 0x637   :  { %1604 = vmatprep.subr.bf16.mxu0 %v6004_v22  ;;  %4354 = vmatprep.subr.bf16.mxu1 %v6957_v60 }
 0x63a   :  { %1605 = vmatpush1.bf16.msra.mxu0 %v6008_v23  ;;  %4355 = vmatpush3.bf16.msra.mxu1 %v6127_v45 }
 0x63b   :  { %1606 = vmatprep.subr.bf16.mxu0 %v6012_v25  ;;  %4356 = vmatprep.subr.bf16.mxu1 %v6957_v60 }
 0x63e   :  { %1607 = vmatpush1.bf16.msra.mxu0 %v6016_v26  ;;  %4357 = vmatpush3.bf16.msra.mxu1 %v6133_v46 }
 0x63f   :  { %1608 = vmatprep.subr.bf16.mxu0 %v6020_v27  ;;  %4358 = vmatprep.subr.bf16.mxu1 %v6957_v60 }
 0x642   :  { %1609 = vmatpush1.bf16.msra.mxu0 %v6024_v28  ;;  %4359 = vmatpush3.bf16.msra.mxu1 %v6139_v36 }
 0x643   :  { %1610 = vmatprep.subr.bf16.mxu0 %v6028_v30  ;;  %4360 = vmatprep.subr.bf16.mxu1 %v6957_v60 }
 0x646   :  { %1611 = vmatpush1.bf16.msra.mxu0 %v6078_v39  ;;  %4361 = vmatpush3.bf16.msra.mxu1 %v6145_v49 }
 0x647   :  { %1612 = vmatprep.subr.bf16.mxu0 %v6082_v40  ;;  %4362 = vmatprep.subr.bf16.mxu1 %v6957_v60 }
 0x64a   :  { %1613 = vmatpush1.bf16.msra.mxu0 %v6086_v41  ;;  %4363 = vmatpush3.bf16.msra.mxu1 %v6151_v32 }
 0x64b   :  { %1614 = vmatprep.subr.bf16.mxu0 %v6090_v42  ;;  %4364 = vmatprep.subr.bf16.mxu1 %v6957_v60 }
 0x64e   :  { %1615 = vmatpush1.bf16.msra.mxu0 %v6094_v43  ;;  %4365 = vmatpush3.bf16.msra.mxu1 %v6157_v44 }
 0x64f   :  { %1703 = vmatprep.subr.bf16.mxu0 %v5974_v19  ;;  %4370 = vmatprep.subr.bf16.mxu1 %v6957_v60 }
 0x704   :  { %v1531_v18 = vpop.f32.mrb[48].mxu0  ;;  %v1572_v11 = vpop.f32.mrb[64].mxu1 }
 0x705   :  { %v1532_v51 = vadd.f32 %v1531_v18, %v5842_v63  ;;  %v1533_v33 = vpop.f32.mrb[49].mxu0  ;;  %v4348_v31 = vpop.f32.mrb[65].mxu1  ;;  %v1573_v57 = vadd.f32 %v1572_v11, %v5888_v54  ;;  %v4657_v11 = vld [vmem:[%s6877_s7 + $0xc] ss:$16 sps:$4 sm:$0xff]  }
 0x706   :  { %v1534_v3 = vadd.f32 %v1533_v33, %v5845_v14  ;;  %v1535_v35 = vpop.f32.mrb[50].mxu0  ;;  %v1575_v61 = vpop.f32.mrb[66].mxu1  ;;  %v4655_v33 = vld [vmem:[%s6877_s7 + $0x8] ss:$16 sps:$4 sm:$0xff]   ;;  %v4660_v31 = vld [vmem:[%s6877_s7 + $0x24] ss:$16 sps:$4 sm:$0xff]  }
 0x707   :  { %v1578_v8 = vadd.f32 %v1532_v51, %v5809_v1  ;;  %v1536_v2 = vpop.f32.mrb[51].mxu0  ;;  %v4349_v0 = vpop.f32.mrb[67].mxu1  ;;  %v4652_v51 = vld [vmem:[%s6877_s7] ss:$16 sps:$4 sm:$0xff]   ;;  %v4661_v61 = vld [vmem:[%s6877_s7 + $0x28] ss:$16 sps:$4 sm:$0xff]  }
 0x708   :  { %v1585_v52 = vadd.f32 %v1534_v3, %v5815_v58  ;;  %v4663_v3 = vld [vmem:[%s6877_s7 + $0x2c] ss:$16 sps:$4 sm:$0xff]   ;;  %v4658_v35 = vld [vmem:[%s6877_s7 + $0x20] ss:$16 sps:$4 sm:$0xff]  }
 0x709   :  { %v3910_v12 = vmul.f32 -1.442695, %v1578_v8  ;;  %v4666_v8 = vld [vmem:[%s6877_s7 + $0x44] ss:$16 sps:$4 sm:$0xff]   ;;  %v4669_v2 = vld [vmem:[%s6877_s7 + $0x4c] ss:$16 sps:$4 sm:$0xff]  }
 0x70a   :  { %v3911_v19 = vmul.f32 -1.442695, %v1585_v52  ;;  %v4664_v0 = vld [vmem:[%s6877_s7 + $0x40] ss:$16 sps:$4 sm:$0xff]   ;;  %v4667_v52 = vld [vmem:[%s6877_s7 + $0x48] ss:$16 sps:$4 sm:$0xff]  }
 0x70b   :  { %4790 = vpow2.f32 %v3910_v12  ;;  %v4672_v12 = vld [vmem:[%s6877_s7 + $0x64] ss:$16 sps:$4 sm:$0xff]  }
 0x70c   :  { %4792 = vpow2.f32 %v3911_v19  ;;  %v4675_v19 = vld [vmem:[%s6877_s7 + $0x6c] ss:$16 sps:$4 sm:$0xff]  }
 0x715   :  { %v4791_v7 = vpop.eup %4790 }
 0x716   :  { %v1582_v50 = vadd.f32 1.0, %v4791_v7  ;;  %v4793_v10 = vpop.eup %4792  ;;  %v4670_v7 = vld [vmem:[%s6877_s7 + $0x60] ss:$16 sps:$4 sm:$0xff]  }
 0x717   :  { %v1589_v4 = vadd.f32 1.0, %v4793_v10  ;;  %v4678_v10 = vld [vmem:[%s6877_s7 + $0x84] ss:$16 sps:$4 sm:$0xff]  }
 0x718   :  { %4794 = vrcp.f32 %v1582_v50  ;;  %v4673_v50 = vld [vmem:[%s6877_s7 + $0x68] ss:$16 sps:$4 sm:$0xff]  }
 0x719   :  { %4796 = vrcp.f32 %v1589_v4  ;;  %v4681_v4 = vld [vmem:[%s6877_s7 + $0x8c] ss:$16 sps:$4 sm:$0xff]  }
 0x722   :  { %v4795_v24 = vpop.eup %4794 }
 0x723   :  { %v1592_v17 = vmul.f32 %v4795_v24, %v1573_v57  ;;  %v4797_v48 = vpop.eup %4796  ;;  %v4676_v57 = vld [vmem:[%s6877_s7 + $0x80] ss:$16 sps:$4 sm:$0xff]   ;;  %v4679_v24 = vld [vmem:[%s6877_s7 + $0x88] ss:$16 sps:$4 sm:$0xff]  }
 0x724   :  { %v1595_v13 = vsub.f32 1.0, %v4797_v48  ;;  %v1597_v38 = vmul.f32 %v4797_v48, %v6107_v9  ;;  %v4685_v48 = vld [vmem:[%s6877_s7 + $0xa8] ss:$16 sps:$4 sm:$0xff]  }
 0x725   :  { %v1593_v1 = vadd.f32 %v1592_v17, %v5885_v47  ;;  %v4684_v17 = vld [vmem:[%s6877_s7 + $0xa4] ss:$16 sps:$4 sm:$0xff]  }
 0x727   :  { %4798 = vtanh.f32 %v1593_v1  ;;  %v4682_v1 = vld [vmem:[%s6877_s7 + $0xa0] ss:$16 sps:$4 sm:$0xff]  }
 0x731   :  { %v4799_v58 = vpop.eup %4798 }
 0x732   :  { %v1596_v21 = vmul.f32 %v4799_v58, %v1595_v13  ;;  %v4687_v13 = vld [vmem:[%s6877_s7 + $0xac] ss:$16 sps:$4 sm:$0xff]   ;;  %v4690_v58 = vld [vmem:[%s6877_s7 + $0xc4] ss:$16 sps:$4 sm:$0xff]  }
 0x734   :  { %v6169_v16 = vadd.f32 %v1597_v38, %v1596_v21  ;;  %v4693_v21 = vld [vmem:[%s6877_s7 + $0xcc] ss:$16 sps:$4 sm:$0xff]   ;;  %v4688_v38 = vld [vmem:[%s6877_s7 + $0xc0] ss:$16 sps:$4 sm:$0xff]  }
 0x736   :  { %v1599_v53 = vpack.c.bf16 %v6169_v16, %v6169_v16 }
 0x738   :  { %1633 = vmatmul.mubr.bf16.vlgmr.msra.gmra.mrb[52].mxu0 %v1599_v53  ;;  %4367 = vmatmul.mubr.bf16.vlgmr.msra.gmra.mrb[68].mxu1 %v1599_v53  ;;  %v4696_v53 = vld [vmem:[%s6877_s7 + $0xe4] ss:$16 sps:$4 sm:$0xff]  }
 0x739   :  { %1704 = vmatpush1.bf16.msra.mxu0 %v5989_v20  ;;  %4371 = vmatpush3.bf16.msra.mxu1 %v6112_v37 }
 0x73a   :  { %1705 = vmatprep.subr.bf16.mxu0 %v5993_v6  ;;  %4372 = vmatprep.subr.bf16.mxu1 %v6957_v60 }
 0x73b   :  { %1735 = vmatprep.mubr.bf16.mxu0 %v6958_v15  ;;  %4386 = vmatprep.mubr.msk.bf16.mxu1 %vm5218_vm1, %v6957_v60 }
 0x73d   :  { %1706 = vmatpush1.bf16.msra.mxu0 %v6000_v34  ;;  %4373 = vmatpush3.bf16.msra.mxu1 %v6121_v29 }
 0x73e   :  { %1707 = vmatprep.subr.bf16.mxu0 %v6004_v22  ;;  %4374 = vmatprep.subr.bf16.mxu1 %v6957_v60 }
 0x741   :  { %1708 = vmatpush1.bf16.msra.mxu0 %v6008_v23  ;;  %4375 = vmatpush3.bf16.msra.mxu1 %v6127_v45 }
 0x742   :  { %1709 = vmatprep.subr.bf16.mxu0 %v6012_v25  ;;  %4376 = vmatprep.subr.bf16.mxu1 %v6957_v60 }
 0x745   :  { %1710 = vmatpush1.bf16.msra.mxu0 %v6016_v26  ;;  %4377 = vmatpush3.bf16.msra.mxu1 %v6133_v46 }
 0x746   :  { %1711 = vmatprep.subr.bf16.mxu0 %v6020_v27  ;;  %4378 = vmatprep.subr.bf16.mxu1 %v6957_v60 }
 0x749   :  { %1712 = vmatpush1.bf16.msra.mxu0 %v6024_v28  ;;  %4379 = vmatpush3.bf16.msra.mxu1 %v6139_v36 }
 0x74a   :  { %1713 = vmatprep.subr.bf16.mxu0 %v6028_v30  ;;  %4380 = vmatprep.subr.bf16.mxu1 %v6957_v60 }
 0x74d   :  { %1714 = vmatpush1.bf16.msra.mxu0 %v6078_v39  ;;  %4381 = vmatpush3.bf16.msra.mxu1 %v6145_v49 }
 0x74e   :  { %1715 = vmatprep.subr.bf16.mxu0 %v6082_v40  ;;  %4382 = vmatprep.subr.bf16.mxu1 %v6957_v60 }
 0x751   :  { %1716 = vmatpush1.bf16.msra.mxu0 %v6086_v41  ;;  %4383 = vmatpush3.bf16.msra.mxu1 %v6151_v32 }
 0x752   :  { %1717 = vmatprep.subr.bf16.mxu0 %v6090_v42  ;;  %4384 = vmatprep.subr.bf16.mxu1 %v6957_v60 }
 0x755   :  { %1718 = vmatpush1.bf16.msra.mxu0 %v6094_v43  ;;  %4385 = vmatpush3.bf16.msra.mxu1 %v6157_v44 }
 0x756   :  { %2061 = vmatprep.subr.bf16.mxu1 %v4657_v11 }
 0x80b   :  { %v1634_v47 = vpop.f32.mrb[52].mxu0  ;;  %v1675_v20 = vpop.f32.mrb[68].mxu1 }
 0x80c   :  { %v1635_v6 = vadd.f32 %v1634_v47, %v5842_v63  ;;  %v1636_v34 = vpop.f32.mrb[53].mxu0  ;;  %v4368_v22 = vpop.f32.mrb[69].mxu1  ;;  %v1676_v37 = vadd.f32 %v1675_v20, %v5888_v54  ;;  %v4699_v47 = vld [vmem:[%s6877_s7 + $0xec] ss:$16 sps:$4 sm:$0xff]   ;;  %v4694_v20 = vld [vmem:[%s6877_s7 + $0xe0] ss:$16 sps:$4 sm:$0xff]  }
 0x80d   :  { %v1637_v23 = vadd.f32 %v1636_v34, %v5845_v14  ;;  %v1638_v25 = vpop.f32.mrb[54].mxu0  ;;  %v1678_v26 = vpop.f32.mrb[70].mxu1  ;;  %v6315_v34 = vld [vmem:[#allocation14 + $0x4] ss:$12 sps:$4 sm:$0xff]  }
 0x80e   :  { %v1681_v27 = vadd.f32 %v1635_v6, %v5821_v56  ;;  %v1639_v28 = vpop.f32.mrb[55].mxu0  ;;  %v4369_v30 = vpop.f32.mrb[71].mxu1  ;;  %v4697_v6 = vld [vmem:[%s6877_s7 + $0xe8] ss:$16 sps:$4 sm:$0xff]  }
 0x80f   :  { %v1688_v39 = vadd.f32 %v1637_v23, %v5827_v59 }
 0x810   :  { %v3912_v40 = vmul.f32 -1.442695, %v1681_v27 }
 0x811   :  { %v3913_v41 = vmul.f32 -1.442695, %v1688_v39 }
 0x812   :  { %4800 = vpow2.f32 %v3912_v40 }
 0x813   :  { %4802 = vpow2.f32 %v3913_v41 }
 0x81c   :  { %v4801_v42 = vpop.eup %4800 }
 0x81d   :  { %v1685_v43 = vadd.f32 1.0, %v4801_v42  ;;  %v4803_v9 = vpop.eup %4802 }
 0x81e   :  { %v1692_v55 = vadd.f32 1.0, %v4803_v9 }
 0x81f   :  { %4804 = vrcp.f32 %v1685_v43  ;;  %v6965_v43 = vld [vmem:[#allocation61_spill] sm:$0xff] }
 0x820   :  { %4806 = vrcp.f32 %v1692_v55 }
 0x829   :  { %v4805_v29 = vpop.eup %4804 }
 0x82a   :  { %v1695_v45 = vmul.f32 %v4805_v29, %v1676_v37  ;;  %v4807_v46 = vpop.eup %4806 }
 0x82b   :  { %v1698_v36 = vsub.f32 1.0, %v4807_v46  ;;  %v1700_v32 = vmul.f32 %v4807_v46, %v6169_v16  ;;  %v4691_v16 = vld [vmem:[%s6877_s7 + $0xc8] ss:$16 sps:$4 sm:$0xff]  }
 0x82c   :  { %v1696_v56 = vadd.f32 %v1695_v45, %v5879_v5  ;;  %v4654_v5 = vld [vmem:[%s6877_s7 + $0x4] ss:$16 sps:$4 sm:$0xff]  }
 0x82d   :  { %2020 = vmatprep.subr.bf16.mxu0 %v4654_v5 }
 0x82e   :  { %4808 = vtanh.f32 %v1696_v56 }
 0x838   :  { %v4809_v59 = vpop.eup %4808 }
 0x839   :  { %v1699_v49 = vmul.f32 %v4809_v59, %v1698_v36  ;;  %v6966_v59 = vld [vmem:[#allocation68_spill] sm:$0xff] }
 0x83b   :  { %v6213_v44 = vadd.f32 %v1700_v32, %v1699_v49 }
 0x83d   :  { %v1702_v18 = vpack.c.bf16 %v6213_v44, %v6213_v44 }
 0x83f   :  { %1736 = vmatmul.mubr.bf16.vlgmr.msra.gmra.mrb[56].mxu0 %v1702_v18  ;;  %4387 = vmatmul.mubr.bf16.vlgmr.msra.gmra.mrb[72].mxu1 %v1702_v18 }
 0x840   :  { %2052 = vmatprep.mubr.bf16.mxu0 %v6958_v15  ;;  %2093 = vmatprep.mubr.bf16.mxu1 %v6958_v15 }
 0x841   :  { %2021 = vmatpush1.bf16.msra.mxu0 %v4652_v51  ;;  %2062 = vmatpush1.bf16.msra.mxu1 %v4655_v33  ;;  %v6328_v33 = vld [vmem:[#allocation14] ss:$12 sps:$4 sm:$0xff]  }
 0x842   :  { %2022 = vmatprep.subr.bf16.mxu0 %v4660_v31  ;;  %2063 = vmatprep.subr.bf16.mxu1 %v4663_v3  ;;  %v6330_v31 = vld [vmem:[#allocation14 + $0x8] ss:$12 sps:$4 sm:$0xff]  }
 0x843   :  { %v6334_v3 = vld [vmem:[#allocation14 + $0x1c] ss:$12 sps:$4 sm:$0xff]  }
 0x845   :  { %2023 = vmatpush1.bf16.msra.mxu0 %v4658_v35  ;;  %2064 = vmatpush1.bf16.msra.mxu1 %v4661_v61  ;;  %v6338_v35 = vld [vmem:[#allocation14 + $0x18] ss:$12 sps:$4 sm:$0xff]   ;;  %v6344_v61 = vld [vmem:[#allocation14 + $0x34] ss:$12 sps:$4 sm:$0xff]  }
 0x846   :  { %2024 = vmatprep.subr.bf16.mxu0 %v4666_v8  ;;  %2065 = vmatprep.subr.bf16.mxu1 %v4669_v2  ;;  %v6351_v8 = vld [vmem:[#allocation14 + $0x30] ss:$12 sps:$4 sm:$0xff]   ;;  %v6353_v2 = vld [vmem:[#allocation14 + $0x38] ss:$12 sps:$4 sm:$0xff]  }
 0x849   :  { %2025 = vmatpush1.bf16.msra.mxu0 %v4664_v0  ;;  %2066 = vmatpush1.bf16.msra.mxu1 %v4667_v52  ;;  %v6357_v0 = vld [vmem:[#allocation14 + $0x4c] ss:$12 sps:$4 sm:$0xff]   ;;  %v6361_v52 = vld [vmem:[#allocation14 + $0x48] ss:$12 sps:$4 sm:$0xff]  }
 0x84a   :  { %2026 = vmatprep.subr.bf16.mxu0 %v4672_v12  ;;  %2067 = vmatprep.subr.bf16.mxu1 %v4675_v19  ;;  %v6363_v12 = vld [vmem:[#allocation14 + $0x50] ss:$12 sps:$4 sm:$0xff]  }
 0x84b   :  { %v6367_v19 = vld [vmem:[#allocation14 + $0x64] ss:$12 sps:$4 sm:$0xff]  }
 0x84d   :  { %2027 = vmatpush1.bf16.msra.mxu0 %v4670_v7  ;;  %2068 = vmatpush1.bf16.msra.mxu1 %v4673_v50  ;;  %v6371_v7 = vld [vmem:[#allocation14 + $0x60] ss:$12 sps:$4 sm:$0xff]   ;;  %v6373_v50 = vld [vmem:[#allocation14 + $0x68] ss:$12 sps:$4 sm:$0xff]  }
 0x84e   :  { %2028 = vmatprep.subr.bf16.mxu0 %v4678_v10  ;;  %2069 = vmatprep.subr.bf16.mxu1 %v4681_v4  ;;  %v6377_v10 = vld [vmem:[#allocation14 + $0x7c] ss:$12 sps:$4 sm:$0xff]   ;;  %v6381_v4 = vld [vmem:[#allocation14 + $0x78] ss:$12 sps:$4 sm:$0xff]  }
 0x851   :  { %2029 = vmatpush1.bf16.msra.mxu0 %v4676_v57  ;;  %2070 = vmatpush1.bf16.msra.mxu1 %v4679_v24  ;;  %v6383_v57 = vld [vmem:[#allocation14 + $0x80] ss:$12 sps:$4 sm:$0xff]  }
 0x852   :  { %2030 = vmatprep.subr.bf16.mxu0 %v4684_v17  ;;  %2071 = vmatprep.subr.bf16.mxu1 %v4687_v13  ;;  %v6387_v24 = vld [vmem:[#allocation14 + $0x94] ss:$12 sps:$4 sm:$0xff]   ;;  %v6391_v17 = vld [vmem:[#allocation14 + $0x90] ss:$12 sps:$4 sm:$0xff]  }
 0x853   :  { %v6401_v13 = vld [vmem:[#allocation14 + $0xa8] ss:$12 sps:$4 sm:$0xff]  }
 0x855   :  { %2031 = vmatpush1.bf16.msra.mxu0 %v4682_v1  ;;  %2072 = vmatpush1.bf16.msra.mxu1 %v4685_v48  ;;  %v6393_v1 = vld [vmem:[#allocation14 + $0x98] ss:$12 sps:$4 sm:$0xff]  }
 0x856   :  { %2032 = vmatprep.subr.bf16.mxu0 %v4690_v58  ;;  %2073 = vmatprep.subr.bf16.mxu1 %v4693_v21  ;;  %v6397_v48 = vld [vmem:[#allocation14 + $0xac] ss:$12 sps:$4 sm:$0xff]   ;;  %v6403_v58 = vld [vmem:[#allocation14 + $0xb0] ss:$12 sps:$4 sm:$0xff]   ;;  %v1838_v21 = vld [vmem:[#allocation8] sm:$0xf] }
 0x859   :  { %2033 = vmatpush1.bf16.msra.mxu0 %v4688_v38  ;;  %2074 = vmatpush1.bf16.msra.mxu1 %v4691_v16  ;;  %v6967_v38 = vld [vmem:[#allocation35_spill] sm:$0xff] }
 0x85a   :  { %2034 = vmatprep.subr.bf16.mxu0 %v4696_v53  ;;  %2075 = vmatprep.subr.bf16.mxu1 %v4699_v47  ;;  %v1854_v16 = vsub.s32 3, %v6967_v38  ;;  %v6968_v53 = vld [vmem:[#allocation36_spill] sm:$0xff] }
 0x85b   :  { %v1843_v47 = vrot.slane %v1838_v21, %v6968_v53 }
 0x85d   :  { %2035 = vmatpush1.bf16.msra.mxu0 %v4694_v20  ;;  %2076 = vmatpush1.bf16.msra.mxu1 %v4697_v6  ;;  %v6969_v20 = vld [vmem:[#allocation42_spill] sm:$0xff] }
 0x85e   :  { %2283 = vmatprep.subr.bf16.mxu0 %v6315_v34  ;;  %4390 = vmatprep.subr.bf16.mxu1 %v6957_v60  ;;  %v1851_v6 = vrot.slane %v1838_v21, %v6969_v20 }
 0x912   :  { %v1737_v22 = vpop.f32.mrb[56].mxu0  ;;  %v1778_v23 = vpop.f32.mrb[72].mxu1 }
 0x913   :  { %v1738_v25 = vadd.f32 %v1737_v22, %v5842_v63  ;;  %v1739_v26 = vpop.f32.mrb[57].mxu0  ;;  %v4388_v27 = vpop.f32.mrb[73].mxu1  ;;  %v1779_v46 = vadd.f32 %v1778_v23, %v5888_v54  ;;  %v6970_v22 = vld [vmem:[#allocation37_spill] sm:$0xff] }
 0x914   :  { %v1740_v28 = vadd.f32 %v1739_v26, %v5845_v14  ;;  %v1741_v30 = vpop.f32.mrb[58].mxu0  ;;  %v1781_v39 = vpop.f32.mrb[74].mxu1  ;;  %v1847_v23 = vrot.slane %v1838_v21, %v6970_v22 }
 0x915   :  { %v1784_v40 = vadd.f32 %v1738_v25, %v5833_v62  ;;  %v1742_v41 = vpop.f32.mrb[59].mxu0  ;;  %v4389_v42 = vpop.f32.mrb[75].mxu1  ;;  %v1855_v25 = vrot.slane %v1838_v21, %v1854_v16  ;;  %v6972_v30 = vld [vmem:[#allocation41_spill] sm:$0xff] }
 0x916   :  { %v1791_v9 = vadd.f32 %v1740_v28, %v6965_v43  ;;  %v6971_v28 = vld [vmem:[#allocation39_spill] sm:$0xff] }
 0x917   :  { %v3914_v55 = vmul.f32 -1.442695, %v1784_v40  ;;  %v297_v39 = vadd.f32 %v6972_v30, %v6971_v28 }
 0x918   :  { %v3915_v37 = vmul.f32 -1.442695, %v1791_v9  ;;  %v6973_v9 = vld [vmem:[#allocation38_spill] sm:$0xff] }
 0x919   :  { %4810 = vpow2.f32 %v3914_v55  ;;  %v6974_v55 = vld [vmem:[#allocation40_spill] sm:$0xff] }
 0x91a   :  { %4812 = vpow2.f32 %v3915_v37  ;;  %v295_v37 = vadd.f32 %v6974_v55, %v6973_v9 }
 0x923   :  { %v4811_v29 = vpop.eup %4810 }
 0x924   :  { %v1788_v45 = vadd.f32 1.0, %v4811_v29  ;;  %v4813_v63 = vpop.eup %4812  ;;  %v6975_v29 = vld [vmem:[#allocation43_spill] sm:$0xff] }
 0x925   :  { %v1795_v56 = vadd.f32 1.0, %v4813_v63 }
 0x926   :  { %4814 = vrcp.f32 %v1788_v45  ;;  %v6976_v45 = vld [vmem:[#allocation44_spill] sm:$0xff] }
 0x927   :  { %4816 = vrcp.f32 %v1795_v56  ;;  %v368_v63 = vadd.f32 %v6976_v45, %v6975_v29 }
 0x930   :  { %v4815_v14 = vpop.eup %4814 }
 0x931   :  { %v1798_v36 = vmul.f32 %v4815_v14, %v1779_v46  ;;  %v4817_v49 = vpop.eup %4816 }
 0x932   :  { %v1801_v32 = vsub.f32 1.0, %v4817_v49  ;;  %v1803_v11 = vmul.f32 %v4817_v49, %v6213_v44  ;;  %v6340_v44 = vld [vmem:[#allocation14 + $0x20] ss:$12 sps:$4 sm:$0xff]  }
 0x933   :  { %v1799_v62 = vadd.f32 %v1798_v36, %v6966_v59 }
 0x935   :  { %4818 = vtanh.f32 %v1799_v62 }
 0x93f   :  { %v4819_v18 = vpop.eup %4818 }
 0x940   :  { %v1802_v5 = vmul.f32 %v4819_v18, %v1801_v32 }
 0x942   :  { %v6326_v51 = vadd.f32 %v1803_v11, %v1802_v5  ;;  %v2135_v5 = vld [vmem:[#allocation16] sm:$0x7] }
 0x943   :  { %v6457_v11 = vrot.slane %v2135_v5, %v6968_v53  ;;  %v6465_v9 = vrot.slane %v2135_v5, %v6969_v20 }
 0x944   :  { %v1805_v54 = vpack.c.bf16 %v6326_v51, %v6326_v51 }
 0x946   :  { %2053 = vmatmul.mubr.bf16.vlgmr.msra.gmra.mrb[60].mxu0 %v1805_v54  ;;  %2094 = vmatmul.mubr.bf16.vlgmr.msra.gmra.mrb[76].mxu1 %v1805_v54 }
 0x947   :  { %2284 = vmatpush1.bf16.msra.mxu0 %v6328_v33  ;;  %4391 = vmatpush3.bf16.msra.mxu1 %v6330_v31 }
 0x948   :  { %2285 = vmatprep.subr.bf16.mxu0 %v6334_v3  ;;  %4392 = vmatprep.subr.bf16.mxu1 %v6957_v60 }
 0x949   :  { %2315 = vmatprep.mubr.bf16.mxu0 %v6958_v15  ;;  %4406 = vmatprep.mubr.msk.bf16.mxu1 %vm5218_vm1, %v6957_v60 }
 0x94b   :  { %2286 = vmatpush1.bf16.msra.mxu0 %v6338_v35  ;;  %4393 = vmatpush3.bf16.msra.mxu1 %v6340_v44 }
 0x94c   :  { %2287 = vmatprep.subr.bf16.mxu0 %v6344_v61  ;;  %4394 = vmatprep.subr.bf16.mxu1 %v6957_v60 }
 0x94f   :  { %2288 = vmatpush1.bf16.msra.mxu0 %v6351_v8  ;;  %4395 = vmatpush3.bf16.msra.mxu1 %v6353_v2 }
 0x950   :  { %2289 = vmatprep.subr.bf16.mxu0 %v6357_v0  ;;  %4396 = vmatprep.subr.bf16.mxu1 %v6957_v60 }
 0x953   :  { %2290 = vmatpush1.bf16.msra.mxu0 %v6361_v52  ;;  %4397 = vmatpush3.bf16.msra.mxu1 %v6363_v12 }
 0x954   :  { %2291 = vmatprep.subr.bf16.mxu0 %v6367_v19  ;;  %4398 = vmatprep.subr.bf16.mxu1 %v6957_v60 }
 0x957   :  { %2292 = vmatpush1.bf16.msra.mxu0 %v6371_v7  ;;  %4399 = vmatpush3.bf16.msra.mxu1 %v6373_v50 }
 0x958   :  { %2293 = vmatprep.subr.bf16.mxu0 %v6377_v10  ;;  %4400 = vmatprep.subr.bf16.mxu1 %v6957_v60 }
 0x95b   :  { %2294 = vmatpush1.bf16.msra.mxu0 %v6381_v4  ;;  %4401 = vmatpush3.bf16.msra.mxu1 %v6383_v57 }
 0x95c   :  { %2295 = vmatprep.subr.bf16.mxu0 %v6387_v24  ;;  %4402 = vmatprep.subr.bf16.mxu1 %v6957_v60 }
 0x95f   :  { %2296 = vmatpush1.bf16.msra.mxu0 %v6391_v17  ;;  %4403 = vmatpush3.bf16.msra.mxu1 %v6393_v1 }
 0x960   :  { %2297 = vmatprep.subr.bf16.mxu0 %v6397_v48  ;;  %4404 = vmatprep.subr.bf16.mxu1 %v6957_v60 }
 0x963   :  { %2298 = vmatpush1.bf16.msra.mxu0 %v6401_v13  ;;  %4405 = vmatpush3.bf16.msra.mxu1 %v6403_v58 }
 0x964   :  { %2389 = vmatprep.subr.bf16.mxu0 %v6315_v34  ;;  %4410 = vmatprep.subr.bf16.mxu1 %v6957_v60 }
 0x966   :  { %2316 = vmatmul.mubr.bf16.vlgmr.msra.gmra.mrb[64].mxu0 %v1805_v54  ;;  %4407 = vmatmul.mubr.bf16.vlgmr.msra.gmra.mrb[80].mxu1 %v1805_v54  ;;  %v6460_v54 = vrot.slane %v2135_v5, %v6970_v22 }
 0x967   :  { %2390 = vmatpush1.bf16.msra.mxu0 %v6328_v33  ;;  %4411 = vmatpush3.bf16.msra.mxu1 %v6330_v31 }
 0x968   :  { %2391 = vmatprep.subr.bf16.mxu0 %v6334_v3  ;;  %4412 = vmatprep.subr.bf16.mxu1 %v6957_v60 }
 0x969   :  { %2421 = vmatprep.mubr.bf16.mxu0 %v6958_v15  ;;  %4426 = vmatprep.mubr.msk.bf16.mxu1 %vm5218_vm1, %v6957_v60 }
 0x96b   :  { %2392 = vmatpush1.bf16.msra.mxu0 %v6338_v35  ;;  %4413 = vmatpush3.bf16.msra.mxu1 %v6340_v44 }
 0x96c   :  { %2393 = vmatprep.subr.bf16.mxu0 %v6344_v61  ;;  %4414 = vmatprep.subr.bf16.mxu1 %v6957_v60 }
 0x96f   :  { %2394 = vmatpush1.bf16.msra.mxu0 %v6351_v8  ;;  %4415 = vmatpush3.bf16.msra.mxu1 %v6353_v2 }
 0x970   :  { %2395 = vmatprep.subr.bf16.mxu0 %v6357_v0  ;;  %4416 = vmatprep.subr.bf16.mxu1 %v6957_v60 }
 0x973   :  { %2396 = vmatpush1.bf16.msra.mxu0 %v6361_v52  ;;  %4417 = vmatpush3.bf16.msra.mxu1 %v6363_v12 }
 0x974   :  { %2397 = vmatprep.subr.bf16.mxu0 %v6367_v19  ;;  %4418 = vmatprep.subr.bf16.mxu1 %v6957_v60 }
 0x977   :  { %2398 = vmatpush1.bf16.msra.mxu0 %v6371_v7  ;;  %4419 = vmatpush3.bf16.msra.mxu1 %v6373_v50 }
 0x978   :  { %2399 = vmatprep.subr.bf16.mxu0 %v6377_v10  ;;  %4420 = vmatprep.subr.bf16.mxu1 %v6957_v60 }
 0x97b   :  { %2400 = vmatpush1.bf16.msra.mxu0 %v6381_v4  ;;  %4421 = vmatpush3.bf16.msra.mxu1 %v6383_v57 }
 0x97c   :  { %2401 = vmatprep.subr.bf16.mxu0 %v6387_v24  ;;  %4422 = vmatprep.subr.bf16.mxu1 %v6957_v60 }
 0x97f   :  { %2402 = vmatpush1.bf16.msra.mxu0 %v6391_v17  ;;  %4423 = vmatpush3.bf16.msra.mxu1 %v6393_v1 }
 0x980   :  { %2403 = vmatprep.subr.bf16.mxu0 %v6397_v48  ;;  %4424 = vmatprep.subr.bf16.mxu1 %v6957_v60 }
 0x983   :  { %2404 = vmatpush1.bf16.msra.mxu0 %v6401_v13  ;;  %4425 = vmatpush3.bf16.msra.mxu1 %v6403_v58 }
 0x984   :  { %2495 = vmatprep.subr.bf16.mxu0 %v6315_v34  ;;  %4430 = vmatprep.subr.bf16.mxu1 %v6957_v60 }
 0xa19   :  { %v2054_v26 = vpop.f32.mrb[60].mxu0  ;;  %v2095_v27 = vpop.f32.mrb[76].mxu1 }
 0xa1a   :  { %v2055_v40 = vadd.f32 %v2054_v26, %v1843_v47  ;;  %v2096_v41 = vadd.f32 %v2095_v27, %v1851_v6  ;;  %v2056_v42 = vpop.f32.mrb[61].mxu0  ;;  %v2097_v43 = vpop.f32.mrb[77].mxu1 }
 0xa1b   :  { %v2057_v56 = vadd.f32 %v2056_v42, %v1847_v23  ;;  %v2098_v46 = vadd.f32 %v2097_v43, %v1855_v25  ;;  %v2058_v14 = vpop.f32.mrb[62].mxu0  ;;  %v2099_v36 = vpop.f32.mrb[78].mxu1 }
 0xa1c   :  { %2102 = vst [vmem:[#allocation19] sm:$0xff] %v2055_v40  ;;  %v2153_v59 = vadd.f32 %v2096_v41, %v297_v39  ;;  %v2059_v62 = vpop.f32.mrb[63].mxu0  ;;  %v2100_v49 = vpop.f32.mrb[79].mxu1 }
 0xa1d   :  { %v2152_v32 = vadd.f32 %v2057_v56, %v295_v37  ;;  %v2154_v18 = vadd.f32 %v2098_v46, %v368_v63 }
 0xa39   :  { %v2317_v21 = vpop.f32.mrb[64].mxu0  ;;  %v2358_v16 = vpop.f32.mrb[80].mxu1 }
 0xa3a   :  { %v2318_v47 = vadd.f32 %v2317_v21, %v6457_v11  ;;  %v2319_v6 = vpop.f32.mrb[65].mxu0  ;;  %v4408_v23 = vpop.f32.mrb[81].mxu1  ;;  %v2359_v37 = vadd.f32 %v2358_v16, %v6465_v9 }
 0xa3b   :  { %v2320_v25 = vadd.f32 %v2319_v6, %v6460_v54  ;;  %v2321_v26 = vpop.f32.mrb[66].mxu0  ;;  %v2361_v27 = vpop.f32.mrb[82].mxu1  ;;  %v6977_v6 = vld [vmem:[#allocation53_spill] sm:$0xff] }
 0xa3c   :  { %v2364_v28 = vadd.f32 %v2318_v47, %v2152_v32  ;;  %v2322_v30 = vpop.f32.mrb[67].mxu0  ;;  %v4409_v39 = vpop.f32.mrb[83].mxu1  ;;  %v6978_v27 = vld [vmem:[#allocation54_spill] sm:$0xff] }
 0xa3d   :  { %v2371_v40 = vadd.f32 %v2320_v25, %v2153_v59 }
 0xa3e   :  { %v3972_v41 = vmul.f32 -1.442695, %v2364_v28 }
 0xa3f   :  { %v3973_v53 = vmul.f32 -1.442695, %v2371_v40 }
 0xa40   :  { %4820 = vpow2.f32 %v3972_v41 }
 0xa41   :  { %4822 = vpow2.f32 %v3973_v53 }
 0xa4a   :  { %v4821_v22 = vpop.eup %4820 }
 0xa4b   :  { %v2368_v42 = vadd.f32 1.0, %v4821_v22  ;;  %v4823_v43 = vpop.eup %4822 }
 0xa4c   :  { %v2375_v55 = vadd.f32 1.0, %v4823_v43 }
 0xa4d   :  { %4824 = vrcp.f32 %v2368_v42 }
 0xa4e   :  { %4826 = vrcp.f32 %v2375_v55 }
 0xa57   :  { %v4825_v29 = vpop.eup %4824 }
 0xa58   :  { %v2378_v45 = vmul.f32 %v4825_v29, %v2359_v37  ;;  %v4827_v56 = vpop.eup %4826  ;;  %v6979_v37 = vld [vmem:[#allocation47_spill] sm:$0xff] }
 0xa59   :  { %v2381_v46 = vsub.f32 1.0, %v4827_v56  ;;  %v2383_v59 = vmul.f32 %v4827_v56, %v6326_v51 }
 0xa5a   :  { %v2379_v63 = vadd.f32 %v2378_v45, %v2154_v18 }
 0xa5c   :  { %4828 = vtanh.f32 %v2379_v63 }
 0xa66   :  { %v4829_v14 = vpop.eup %4828 }
 0xa67   :  { %v2382_v36 = vmul.f32 %v4829_v14, %v2381_v46 }
 0xa69   :  { %v6469_v62 = vadd.f32 %v2383_v59, %v2382_v36 }
 0xa6b   :  { %v2388_v20 = vpack.c.bf16 %v6469_v62, %v6469_v62 }
 0xa6d   :  { %2422 = vmatmul.mubr.bf16.vlgmr.msra.gmra.mrb[68].mxu0 %v2388_v20  ;;  %4427 = vmatmul.mubr.bf16.vlgmr.msra.gmra.mrb[84].mxu1 %v2388_v20 }
 0xa6e   :  { %2496 = vmatpush1.bf16.msra.mxu0 %v6328_v33  ;;  %4431 = vmatpush3.bf16.msra.mxu1 %v6330_v31 }
 0xa6f   :  { %2497 = vmatprep.subr.bf16.mxu0 %v6334_v3  ;;  %4432 = vmatprep.subr.bf16.mxu1 %v6957_v60 }
 0xa70   :  { %2527 = vmatprep.mubr.bf16.mxu0 %v6958_v15  ;;  %4446 = vmatprep.mubr.msk.bf16.mxu1 %vm5218_vm1, %v6957_v60 }
 0xa72   :  { %2498 = vmatpush1.bf16.msra.mxu0 %v6338_v35  ;;  %4433 = vmatpush3.bf16.msra.mxu1 %v6340_v44 }
 0xa73   :  { %2499 = vmatprep.subr.bf16.mxu0 %v6344_v61  ;;  %4434 = vmatprep.subr.bf16.mxu1 %v6957_v60 }
 0xa76   :  { %2500 = vmatpush1.bf16.msra.mxu0 %v6351_v8  ;;  %4435 = vmatpush3.bf16.msra.mxu1 %v6353_v2 }
 0xa77   :  { %2501 = vmatprep.subr.bf16.mxu0 %v6357_v0  ;;  %4436 = vmatprep.subr.bf16.mxu1 %v6957_v60 }
 0xa7a   :  { %2502 = vmatpush1.bf16.msra.mxu0 %v6361_v52  ;;  %4437 = vmatpush3.bf16.msra.mxu1 %v6363_v12 }
 0xa7b   :  { %2503 = vmatprep.subr.bf16.mxu0 %v6367_v19  ;;  %4438 = vmatprep.subr.bf16.mxu1 %v6957_v60 }
 0xa7e   :  { %2504 = vmatpush1.bf16.msra.mxu0 %v6371_v7  ;;  %4439 = vmatpush3.bf16.msra.mxu1 %v6373_v50 }
 0xa7f   :  { %2505 = vmatprep.subr.bf16.mxu0 %v6377_v10  ;;  %4440 = vmatprep.subr.bf16.mxu1 %v6957_v60 }
 0xa82   :  { %2506 = vmatpush1.bf16.msra.mxu0 %v6381_v4  ;;  %4441 = vmatpush3.bf16.msra.mxu1 %v6383_v57 }
 0xa83   :  { %2507 = vmatprep.subr.bf16.mxu0 %v6387_v24  ;;  %4442 = vmatprep.subr.bf16.mxu1 %v6957_v60 }
 0xa86   :  { %2508 = vmatpush1.bf16.msra.mxu0 %v6391_v17  ;;  %4443 = vmatpush3.bf16.msra.mxu1 %v6393_v1 }
 0xa87   :  { %2509 = vmatprep.subr.bf16.mxu0 %v6397_v48  ;;  %4444 = vmatprep.subr.bf16.mxu1 %v6957_v60 }
 0xa8a   :  { %2510 = vmatpush1.bf16.msra.mxu0 %v6401_v13  ;;  %4445 = vmatpush3.bf16.msra.mxu1 %v6403_v58 }
 0xa8b   :  { %2601 = vmatprep.subr.bf16.mxu0 %v6315_v34  ;;  %4450 = vmatprep.subr.bf16.mxu1 %v6957_v60 }
 0xb40   :  { %v2423_v51 = vpop.f32.mrb[68].mxu0  ;;  %v2464_v49 = vpop.f32.mrb[84].mxu1 }
 0xb41   :  { %v2424_v32 = vadd.f32 %v2423_v51, %v6457_v11  ;;  %v2425_v18 = vpop.f32.mrb[69].mxu0  ;;  %v4428_v5 = vpop.f32.mrb[85].mxu1  ;;  %v2465_v42 = vadd.f32 %v2464_v49, %v6465_v9 }
 0xb42   :  { %v2426_v21 = vadd.f32 %v2425_v18, %v6460_v54  ;;  %v2427_v16 = vpop.f32.mrb[70].mxu0  ;;  %v2467_v47 = vpop.f32.mrb[86].mxu1 }
 0xb43   :  { %v2470_v23 = vadd.f32 %v2424_v32, %v6977_v6  ;;  %v2428_v25 = vpop.f32.mrb[71].mxu0  ;;  %v4429_v26 = vpop.f32.mrb[87].mxu1  ;;  %v6980_v47 = vld [vmem:[#allocation55_spill] sm:$0xff] }
 0xb44   :  { %v2477_v28 = vadd.f32 %v2426_v21, %v6978_v27  ;;  %v6981_v26 = vld [vmem:[#allocation56_spill] sm:$0xff] }
 0xb45   :  { %v3974_v30 = vmul.f32 -1.442695, %v2470_v23 }
 0xb46   :  { %v3975_v39 = vmul.f32 -1.442695, %v2477_v28 }
 0xb47   :  { %4830 = vpow2.f32 %v3974_v30 }
 0xb48   :  { %4832 = vpow2.f32 %v3975_v39 }
 0xb51   :  { %v4831_v40 = vpop.eup %4830 }
 0xb52   :  { %v2474_v41 = vadd.f32 1.0, %v4831_v40  ;;  %v4833_v53 = vpop.eup %4832 }
 0xb53   :  { %v2481_v22 = vadd.f32 1.0, %v4833_v53 }
 0xb54   :  { %4834 = vrcp.f32 %v2474_v41 }
 0xb55   :  { %4836 = vrcp.f32 %v2481_v22 }
 0xb5e   :  { %v4835_v43 = vpop.eup %4834 }
 0xb5f   :  { %v2484_v55 = vmul.f32 %v4835_v43, %v2465_v42  ;;  %v4837_v45 = vpop.eup %4836 }
 0xb60   :  { %v2487_v63 = vsub.f32 1.0, %v4837_v45  ;;  %v2489_v14 = vmul.f32 %v4837_v45, %v6469_v62 }
 0xb61   :  { %v2485_v29 = vadd.f32 %v2484_v55, %v6979_v37  ;;  %v6982_v55 = vld [vmem:[#allocation45_spill] sm:$0xff] }
 0xb63   :  { %4838 = vtanh.f32 %v2485_v29 }
 0xb6d   :  { %v4839_v56 = vpop.eup %4838 }
 0xb6e   :  { %v2488_v46 = vmul.f32 %v4839_v56, %v2487_v63 }
 0xb70   :  { %v6515_v36 = vadd.f32 %v2489_v14, %v2488_v46 }
 0xb72   :  { %v2494_v59 = vpack.c.bf16 %v6515_v36, %v6515_v36 }
 0xb74   :  { %2528 = vmatmul.mubr.bf16.vlgmr.msra.gmra.mrb[72].mxu0 %v2494_v59  ;;  %4447 = vmatmul.mubr.bf16.vlgmr.msra.gmra.mrb[88].mxu1 %v2494_v59 }
 0xb75   :  { %2602 = vmatpush1.bf16.msra.mxu0 %v6328_v33  ;;  %4451 = vmatpush3.bf16.msra.mxu1 %v6330_v31 }
 0xb76   :  { %2603 = vmatprep.subr.bf16.mxu0 %v6334_v3  ;;  %4452 = vmatprep.subr.bf16.mxu1 %v6957_v60 }
 0xb77   :  { %2633 = vmatprep.mubr.bf16.mxu0 %v6958_v15  ;;  %4466 = vmatprep.mubr.msk.bf16.mxu1 %vm5218_vm1, %v6957_v60 }
 0xb79   :  { %2604 = vmatpush1.bf16.msra.mxu0 %v6338_v35  ;;  %4453 = vmatpush3.bf16.msra.mxu1 %v6340_v44 }
 0xb7a   :  { %2605 = vmatprep.subr.bf16.mxu0 %v6344_v61  ;;  %4454 = vmatprep.subr.bf16.mxu1 %v6957_v60 }
 0xb7d   :  { %2606 = vmatpush1.bf16.msra.mxu0 %v6351_v8  ;;  %4455 = vmatpush3.bf16.msra.mxu1 %v6353_v2 }
 0xb7e   :  { %2607 = vmatprep.subr.bf16.mxu0 %v6357_v0  ;;  %4456 = vmatprep.subr.bf16.mxu1 %v6957_v60 }
 0xb81   :  { %2608 = vmatpush1.bf16.msra.mxu0 %v6361_v52  ;;  %4457 = vmatpush3.bf16.msra.mxu1 %v6363_v12 }
 0xb82   :  { %2609 = vmatprep.subr.bf16.mxu0 %v6367_v19  ;;  %4458 = vmatprep.subr.bf16.mxu1 %v6957_v60 }
 0xb85   :  { %2610 = vmatpush1.bf16.msra.mxu0 %v6371_v7  ;;  %4459 = vmatpush3.bf16.msra.mxu1 %v6373_v50 }
 0xb86   :  { %2611 = vmatprep.subr.bf16.mxu0 %v6377_v10  ;;  %4460 = vmatprep.subr.bf16.mxu1 %v6957_v60 }
 0xb89   :  { %2612 = vmatpush1.bf16.msra.mxu0 %v6381_v4  ;;  %4461 = vmatpush3.bf16.msra.mxu1 %v6383_v57 }
 0xb8a   :  { %2613 = vmatprep.subr.bf16.mxu0 %v6387_v24  ;;  %4462 = vmatprep.subr.bf16.mxu1 %v6957_v60 }
 0xb8d   :  { %2614 = vmatpush1.bf16.msra.mxu0 %v6391_v17  ;;  %4463 = vmatpush3.bf16.msra.mxu1 %v6393_v1 }
 0xb8e   :  { %2615 = vmatprep.subr.bf16.mxu0 %v6397_v48  ;;  %4464 = vmatprep.subr.bf16.mxu1 %v6957_v60 }
 0xb91   :  { %2616 = vmatpush1.bf16.msra.mxu0 %v6401_v13  ;;  %4465 = vmatpush3.bf16.msra.mxu1 %v6403_v58 }
 0xb92   :  { %2707 = vmatprep.subr.bf16.mxu0 %v6315_v34  ;;  %4470 = vmatprep.subr.bf16.mxu1 %v6957_v60 }
 0xc47   :  { %v2529_v20 = vpop.f32.mrb[72].mxu0  ;;  %v2570_v51 = vpop.f32.mrb[88].mxu1 }
 0xc48   :  { %v2530_v49 = vadd.f32 %v2529_v20, %v6457_v11  ;;  %v2531_v32 = vpop.f32.mrb[73].mxu0  ;;  %v4448_v18 = vpop.f32.mrb[89].mxu1  ;;  %v2571_v22 = vadd.f32 %v2570_v51, %v6465_v9 }
 0xc49   :  { %v2532_v5 = vadd.f32 %v2531_v32, %v6460_v54  ;;  %v2533_v21 = vpop.f32.mrb[74].mxu0  ;;  %v2573_v16 = vpop.f32.mrb[90].mxu1 }
 0xc4a   :  { %v2576_v6 = vadd.f32 %v2530_v49, %v6980_v47  ;;  %v2534_v23 = vpop.f32.mrb[75].mxu0  ;;  %v4449_v25 = vpop.f32.mrb[91].mxu1  ;;  %v6983_v47 = vld [vmem:[#allocation57_spill] sm:$0xff] }
 0xc4b   :  { %v2583_v27 = vadd.f32 %v2532_v5, %v6981_v26  ;;  %v6984_v26 = vld [vmem:[#allocation58_spill] sm:$0xff] }
 0xc4c   :  { %v3976_v28 = vmul.f32 -1.442695, %v2576_v6 }
 0xc4d   :  { %v3977_v30 = vmul.f32 -1.442695, %v2583_v27 }
 0xc4e   :  { %4840 = vpow2.f32 %v3976_v28 }
 0xc4f   :  { %4842 = vpow2.f32 %v3977_v30 }
 0xc58   :  { %v4841_v39 = vpop.eup %4840 }
 0xc59   :  { %v2580_v40 = vadd.f32 1.0, %v4841_v39  ;;  %v4843_v41 = vpop.eup %4842 }
 0xc5a   :  { %v2587_v53 = vadd.f32 1.0, %v4843_v41 }
 0xc5b   :  { %4844 = vrcp.f32 %v2580_v40 }
 0xc5c   :  { %4846 = vrcp.f32 %v2587_v53 }
 0xc65   :  { %v4845_v42 = vpop.eup %4844 }
 0xc66   :  { %v2590_v43 = vmul.f32 %v4845_v42, %v2571_v22  ;;  %v4847_v29 = vpop.eup %4846 }
 0xc67   :  { %v2593_v45 = vsub.f32 1.0, %v4847_v29  ;;  %v2595_v46 = vmul.f32 %v4847_v29, %v6515_v36 }
 0xc68   :  { %v2591_v37 = vadd.f32 %v2590_v43, %v6982_v55  ;;  %v6985_v55 = vld [vmem:[#allocation46_spill] sm:$0xff] }
 0xc6a   :  { %4848 = vtanh.f32 %v2591_v37 }
 0xc74   :  { %v4849_v63 = vpop.eup %4848 }
 0xc75   :  { %v2594_v56 = vmul.f32 %v4849_v63, %v2593_v45 }
 0xc77   :  { %v6561_v14 = vadd.f32 %v2595_v46, %v2594_v56 }
 0xc79   :  { %v2600_v59 = vpack.c.bf16 %v6561_v14, %v6561_v14 }
 0xc7b   :  { %2634 = vmatmul.mubr.bf16.vlgmr.msra.gmra.mrb[76].mxu0 %v2600_v59  ;;  %4467 = vmatmul.mubr.bf16.vlgmr.msra.gmra.mrb[92].mxu1 %v2600_v59 }
 0xc7c   :  { %2708 = vmatpush1.bf16.msra.mxu0 %v6328_v33  ;;  %4471 = vmatpush3.bf16.msra.mxu1 %v6330_v31 }
 0xc7d   :  { %2709 = vmatprep.subr.bf16.mxu0 %v6334_v3  ;;  %4472 = vmatprep.subr.bf16.mxu1 %v6957_v60 }
 0xc7e   :  { %2739 = vmatprep.mubr.bf16.mxu0 %v6958_v15  ;;  %4486 = vmatprep.mubr.msk.bf16.mxu1 %vm5218_vm1, %v6957_v60 }
 0xc80   :  { %2710 = vmatpush1.bf16.msra.mxu0 %v6338_v35  ;;  %4473 = vmatpush3.bf16.msra.mxu1 %v6340_v44 }
 0xc81   :  { %2711 = vmatprep.subr.bf16.mxu0 %v6344_v61  ;;  %4474 = vmatprep.subr.bf16.mxu1 %v6957_v60 }
 0xc84   :  { %2712 = vmatpush1.bf16.msra.mxu0 %v6351_v8  ;;  %4475 = vmatpush3.bf16.msra.mxu1 %v6353_v2 }
 0xc85   :  { %2713 = vmatprep.subr.bf16.mxu0 %v6357_v0  ;;  %4476 = vmatprep.subr.bf16.mxu1 %v6957_v60 }
 0xc88   :  { %2714 = vmatpush1.bf16.msra.mxu0 %v6361_v52  ;;  %4477 = vmatpush3.bf16.msra.mxu1 %v6363_v12 }
 0xc89   :  { %2715 = vmatprep.subr.bf16.mxu0 %v6367_v19  ;;  %4478 = vmatprep.subr.bf16.mxu1 %v6957_v60 }
 0xc8c   :  { %2716 = vmatpush1.bf16.msra.mxu0 %v6371_v7  ;;  %4479 = vmatpush3.bf16.msra.mxu1 %v6373_v50 }
 0xc8d   :  { %2717 = vmatprep.subr.bf16.mxu0 %v6377_v10  ;;  %4480 = vmatprep.subr.bf16.mxu1 %v6957_v60 }
 0xc90   :  { %2718 = vmatpush1.bf16.msra.mxu0 %v6381_v4  ;;  %4481 = vmatpush3.bf16.msra.mxu1 %v6383_v57 }
 0xc91   :  { %2719 = vmatprep.subr.bf16.mxu0 %v6387_v24  ;;  %4482 = vmatprep.subr.bf16.mxu1 %v6957_v60 }
 0xc94   :  { %2720 = vmatpush1.bf16.msra.mxu0 %v6391_v17  ;;  %4483 = vmatpush3.bf16.msra.mxu1 %v6393_v1 }
 0xc95   :  { %2721 = vmatprep.subr.bf16.mxu0 %v6397_v48  ;;  %4484 = vmatprep.subr.bf16.mxu1 %v6957_v60 }
 0xc98   :  { %2722 = vmatpush1.bf16.msra.mxu0 %v6401_v13  ;;  %4485 = vmatpush3.bf16.msra.mxu1 %v6403_v58 }
 0xc99   :  { %2813 = vmatprep.subr.bf16.mxu0 %v6315_v34  ;;  %4490 = vmatprep.subr.bf16.mxu1 %v6957_v60 }
 0xd4e   :  { %v2635_v20 = vpop.f32.mrb[76].mxu0  ;;  %v2676_v51 = vpop.f32.mrb[92].mxu1 }
 0xd4f   :  { %v2636_v49 = vadd.f32 %v2635_v20, %v6457_v11  ;;  %v2637_v32 = vpop.f32.mrb[77].mxu0  ;;  %v4468_v18 = vpop.f32.mrb[93].mxu1  ;;  %v2677_v22 = vadd.f32 %v2676_v51, %v6465_v9 }
 0xd50   :  { %v2638_v5 = vadd.f32 %v2637_v32, %v6460_v54  ;;  %v2639_v21 = vpop.f32.mrb[78].mxu0  ;;  %v2679_v16 = vpop.f32.mrb[94].mxu1 }
 0xd51   :  { %v2682_v6 = vadd.f32 %v2636_v49, %v6983_v47  ;;  %v2640_v23 = vpop.f32.mrb[79].mxu0  ;;  %v4469_v25 = vpop.f32.mrb[95].mxu1 }
 0xd52   :  { %v2689_v27 = vadd.f32 %v2638_v5, %v6984_v26 }
 0xd53   :  { %v3978_v28 = vmul.f32 -1.442695, %v2682_v6  ;;  %v6986_v6 = vld [vmem:[#allocation59_spill] sm:$0xff] }
 0xd54   :  { %v3979_v30 = vmul.f32 -1.442695, %v2689_v27  ;;  %v6987_v27 = vld [vmem:[#allocation60_spill] sm:$0xff] }
 0xd55   :  { %4850 = vpow2.f32 %v3978_v28 }
 0xd56   :  { %4852 = vpow2.f32 %v3979_v30 }
 0xd5f   :  { %v4851_v39 = vpop.eup %4850 }
 0xd60   :  { %v2686_v40 = vadd.f32 1.0, %v4851_v39  ;;  %v4853_v41 = vpop.eup %4852 }
 0xd61   :  { %v2693_v53 = vadd.f32 1.0, %v4853_v41 }
 0xd62   :  { %4854 = vrcp.f32 %v2686_v40 }
 0xd63   :  { %4856 = vrcp.f32 %v2693_v53 }
 0xd6c   :  { %v4855_v42 = vpop.eup %4854 }
 0xd6d   :  { %v2696_v43 = vmul.f32 %v4855_v42, %v2677_v22  ;;  %v4857_v29 = vpop.eup %4856 }
 0xd6e   :  { %v2699_v45 = vsub.f32 1.0, %v4857_v29  ;;  %v2701_v46 = vmul.f32 %v4857_v29, %v6561_v14 }
 0xd6f   :  { %v2697_v37 = vadd.f32 %v2696_v43, %v6985_v55 }
 0xd71   :  { %4858 = vtanh.f32 %v2697_v37  ;;  %v6988_v37 = vld [vmem:[#allocation50_spill] sm:$0xff] }
 0xd7b   :  { %v4859_v63 = vpop.eup %4858 }
 0xd7c   :  { %v2700_v56 = vmul.f32 %v4859_v63, %v2699_v45 }
 0xd7e   :  { %v6607_v59 = vadd.f32 %v2701_v46, %v2700_v56 }
 0xd80   :  { %v2706_v20 = vpack.c.bf16 %v6607_v59, %v6607_v59 }
 0xd82   :  { %2740 = vmatmul.mubr.bf16.vlgmr.msra.gmra.mrb[80].mxu0 %v2706_v20  ;;  %4487 = vmatmul.mubr.bf16.vlgmr.msra.gmra.mrb[96].mxu1 %v2706_v20 }
 0xd83   :  { %2814 = vmatpush1.bf16.msra.mxu0 %v6328_v33  ;;  %4491 = vmatpush3.bf16.msra.mxu1 %v6330_v31 }
 0xd84   :  { %2815 = vmatprep.subr.bf16.mxu0 %v6334_v3  ;;  %4492 = vmatprep.subr.bf16.mxu1 %v6957_v60 }
 0xd85   :  { %2845 = vmatprep.mubr.bf16.mxu0 %v6958_v15  ;;  %4506 = vmatprep.mubr.msk.bf16.mxu1 %vm5218_vm1, %v6957_v60 }
 0xd87   :  { %2816 = vmatpush1.bf16.msra.mxu0 %v6338_v35  ;;  %4493 = vmatpush3.bf16.msra.mxu1 %v6340_v44 }
 0xd88   :  { %2817 = vmatprep.subr.bf16.mxu0 %v6344_v61  ;;  %4494 = vmatprep.subr.bf16.mxu1 %v6957_v60 }
 0xd8b   :  { %2818 = vmatpush1.bf16.msra.mxu0 %v6351_v8  ;;  %4495 = vmatpush3.bf16.msra.mxu1 %v6353_v2 }
 0xd8c   :  { %2819 = vmatprep.subr.bf16.mxu0 %v6357_v0  ;;  %4496 = vmatprep.subr.bf16.mxu1 %v6957_v60 }
 0xd8f   :  { %2820 = vmatpush1.bf16.msra.mxu0 %v6361_v52  ;;  %4497 = vmatpush3.bf16.msra.mxu1 %v6363_v12 }
 0xd90   :  { %2821 = vmatprep.subr.bf16.mxu0 %v6367_v19  ;;  %4498 = vmatprep.subr.bf16.mxu1 %v6957_v60 }
 0xd93   :  { %2822 = vmatpush1.bf16.msra.mxu0 %v6371_v7  ;;  %4499 = vmatpush3.bf16.msra.mxu1 %v6373_v50 }
 0xd94   :  { %2823 = vmatprep.subr.bf16.mxu0 %v6377_v10  ;;  %4500 = vmatprep.subr.bf16.mxu1 %v6957_v60 }
 0xd97   :  { %2824 = vmatpush1.bf16.msra.mxu0 %v6381_v4  ;;  %4501 = vmatpush3.bf16.msra.mxu1 %v6383_v57 }
 0xd98   :  { %2825 = vmatprep.subr.bf16.mxu0 %v6387_v24  ;;  %4502 = vmatprep.subr.bf16.mxu1 %v6957_v60 }
 0xd9b   :  { %2826 = vmatpush1.bf16.msra.mxu0 %v6391_v17  ;;  %4503 = vmatpush3.bf16.msra.mxu1 %v6393_v1 }
 0xd9c   :  { %2827 = vmatprep.subr.bf16.mxu0 %v6397_v48  ;;  %4504 = vmatprep.subr.bf16.mxu1 %v6957_v60 }
 0xd9f   :  { %2828 = vmatpush1.bf16.msra.mxu0 %v6401_v13  ;;  %4505 = vmatpush3.bf16.msra.mxu1 %v6403_v58 }
 0xda0   :  { %2919 = vmatprep.subr.bf16.mxu0 %v6315_v34  ;;  %4510 = vmatprep.subr.bf16.mxu1 %v6957_v60 }
 0xe55   :  { %v2741_v51 = vpop.f32.mrb[80].mxu0  ;;  %v2782_v49 = vpop.f32.mrb[96].mxu1 }
 0xe56   :  { %v2742_v32 = vadd.f32 %v2741_v51, %v6457_v11  ;;  %v2743_v18 = vpop.f32.mrb[81].mxu0  ;;  %v4488_v5 = vpop.f32.mrb[97].mxu1  ;;  %v2783_v42 = vadd.f32 %v2782_v49, %v6465_v9 }
 0xe57   :  { %v2744_v21 = vadd.f32 %v2743_v18, %v6460_v54  ;;  %v2745_v16 = vpop.f32.mrb[82].mxu0  ;;  %v2785_v47 = vpop.f32.mrb[98].mxu1 }
 0xe58   :  { %v2788_v23 = vadd.f32 %v2742_v32, %v6986_v6  ;;  %v2746_v25 = vpop.f32.mrb[83].mxu0  ;;  %v4489_v26 = vpop.f32.mrb[99].mxu1 }
 0xe59   :  { %v2795_v28 = vadd.f32 %v2744_v21, %v6987_v27  ;;  %v6989_v25 = vld [vmem:[#allocation62_spill] sm:$0xff] }
 0xe5a   :  { %v3980_v30 = vmul.f32 -1.442695, %v2788_v23 }
 0xe5b   :  { %v3981_v39 = vmul.f32 -1.442695, %v2795_v28 }
 0xe5c   :  { %4860 = vpow2.f32 %v3980_v30  ;;  %v6990_v30 = vld [vmem:[#allocation63_spill] sm:$0xff] }
 0xe5d   :  { %4862 = vpow2.f32 %v3981_v39 }
 0xe66   :  { %v4861_v40 = vpop.eup %4860 }
 0xe67   :  { %v2792_v41 = vadd.f32 1.0, %v4861_v40  ;;  %v4863_v53 = vpop.eup %4862 }
 0xe68   :  { %v2799_v22 = vadd.f32 1.0, %v4863_v53 }
 0xe69   :  { %4864 = vrcp.f32 %v2792_v41 }
 0xe6a   :  { %4866 = vrcp.f32 %v2799_v22 }
 0xe73   :  { %v4865_v43 = vpop.eup %4864 }
 0xe74   :  { %v2802_v55 = vmul.f32 %v4865_v43, %v2783_v42  ;;  %v4867_v45 = vpop.eup %4866 }
 0xe75   :  { %v2805_v63 = vsub.f32 1.0, %v4867_v45  ;;  %v2807_v20 = vmul.f32 %v4867_v45, %v6607_v59 }
 0xe76   :  { %v2803_v29 = vadd.f32 %v2802_v55, %v6988_v37 }
 0xe78   :  { %4868 = vtanh.f32 %v2803_v29  ;;  %v6991_v29 = vld [vmem:[#allocation52_spill] sm:$0xff] }
 0xe82   :  { %v4869_v56 = vpop.eup %4868 }
 0xe83   :  { %v2806_v46 = vmul.f32 %v4869_v56, %v2805_v63 }
 0xe85   :  { %v6653_v51 = vadd.f32 %v2807_v20, %v2806_v46 }
 0xe87   :  { %v2812_v32 = vpack.c.bf16 %v6653_v51, %v6653_v51 }
 0xe89   :  { %2846 = vmatmul.mubr.bf16.vlgmr.msra.gmra.mrb[84].mxu0 %v2812_v32  ;;  %4507 = vmatmul.mubr.bf16.vlgmr.msra.gmra.mrb[100].mxu1 %v2812_v32 }
 0xe8a   :  { %2920 = vmatpush1.bf16.msra.mxu0 %v6328_v33  ;;  %4511 = vmatpush3.bf16.msra.mxu1 %v6330_v31 }
 0xe8b   :  { %2921 = vmatprep.subr.bf16.mxu0 %v6334_v3  ;;  %4512 = vmatprep.subr.bf16.mxu1 %v6957_v60 }
 0xe8c   :  { %2951 = vmatprep.mubr.bf16.mxu0 %v6958_v15  ;;  %4526 = vmatprep.mubr.msk.bf16.mxu1 %vm5218_vm1, %v6957_v60 }
 0xe8e   :  { %2922 = vmatpush1.bf16.msra.mxu0 %v6338_v35  ;;  %4513 = vmatpush3.bf16.msra.mxu1 %v6340_v44 }
 0xe8f   :  { %2923 = vmatprep.subr.bf16.mxu0 %v6344_v61  ;;  %4514 = vmatprep.subr.bf16.mxu1 %v6957_v60 }
 0xe92   :  { %2924 = vmatpush1.bf16.msra.mxu0 %v6351_v8  ;;  %4515 = vmatpush3.bf16.msra.mxu1 %v6353_v2 }
 0xe93   :  { %2925 = vmatprep.subr.bf16.mxu0 %v6357_v0  ;;  %4516 = vmatprep.subr.bf16.mxu1 %v6957_v60 }
 0xe96   :  { %2926 = vmatpush1.bf16.msra.mxu0 %v6361_v52  ;;  %4517 = vmatpush3.bf16.msra.mxu1 %v6363_v12 }
 0xe97   :  { %2927 = vmatprep.subr.bf16.mxu0 %v6367_v19  ;;  %4518 = vmatprep.subr.bf16.mxu1 %v6957_v60 }
 0xe9a   :  { %2928 = vmatpush1.bf16.msra.mxu0 %v6371_v7  ;;  %4519 = vmatpush3.bf16.msra.mxu1 %v6373_v50 }
 0xe9b   :  { %2929 = vmatprep.subr.bf16.mxu0 %v6377_v10  ;;  %4520 = vmatprep.subr.bf16.mxu1 %v6957_v60 }
 0xe9e   :  { %2930 = vmatpush1.bf16.msra.mxu0 %v6381_v4  ;;  %4521 = vmatpush3.bf16.msra.mxu1 %v6383_v57 }
 0xe9f   :  { %2931 = vmatprep.subr.bf16.mxu0 %v6387_v24  ;;  %4522 = vmatprep.subr.bf16.mxu1 %v6957_v60 }
 0xea2   :  { %2932 = vmatpush1.bf16.msra.mxu0 %v6391_v17  ;;  %4523 = vmatpush3.bf16.msra.mxu1 %v6393_v1 }
 0xea3   :  { %2933 = vmatprep.subr.bf16.mxu0 %v6397_v48  ;;  %4524 = vmatprep.subr.bf16.mxu1 %v6957_v60 }
 0xea6   :  { %2934 = vmatpush1.bf16.msra.mxu0 %v6401_v13  ;;  %4525 = vmatpush3.bf16.msra.mxu1 %v6403_v58 }
 0xea7   :  { %3025 = vmatprep.subr.bf16.mxu0 %v6315_v34  ;;  %4530 = vmatprep.subr.bf16.mxu1 %v6957_v60 }
 0xf5c   :  { %v2847_v49 = vpop.f32.mrb[84].mxu0  ;;  %v2888_v18 = vpop.f32.mrb[100].mxu1 }
 0xf5d   :  { %v2848_v5 = vadd.f32 %v2847_v49, %v6457_v11  ;;  %v2849_v21 = vpop.f32.mrb[85].mxu0  ;;  %v4508_v16 = vpop.f32.mrb[101].mxu1  ;;  %v2889_v43 = vadd.f32 %v2888_v18, %v6465_v9 }
 0xf5e   :  { %v2850_v47 = vadd.f32 %v2849_v21, %v6460_v54  ;;  %v2851_v6 = vpop.f32.mrb[86].mxu0  ;;  %v2891_v23 = vpop.f32.mrb[102].mxu1 }
 0xf5f   :  { %v2894_v26 = vadd.f32 %v2848_v5, %v6989_v25  ;;  %v2852_v27 = vpop.f32.mrb[87].mxu0  ;;  %v4509_v28 = vpop.f32.mrb[103].mxu1 }
 0xf60   :  { %v2901_v39 = vadd.f32 %v2850_v47, %v6990_v30  ;;  %v4733_v27 = vld [vmem:[%s6884_s14 + $0x8] sm:$0xff]   ;;  %v3127_v28 = vpack.c.bf16 %v6515_v36, %v6469_v62  ;;  %v4734_v30 = vld [vmem:[%s6884_s14 + $0x10] sm:$0xff]   ;;  %v4736_v62 = vld [vmem:[%s6884_s14 + $0x20] sm:$0xff]  }
 0xf61   :  { %v3982_v40 = vmul.f32 -1.442695, %v2894_v26  ;;  %v4737_v36 = vld [vmem:[%s6884_s14 + $0x28] sm:$0xff]  }
 0xf62   :  { %v3983_v34 = vmul.f32 -1.442695, %v2901_v39  ;;  %v4735_v39 = vld [vmem:[%s6884_s14 + $0x18] sm:$0xff]  }
 0xf63   :  { %4870 = vpow2.f32 %v3982_v40  ;;  %v4738_v40 = vld [vmem:[%s6884_s14 + $0x30] sm:$0xff]  }
 0xf64   :  { %4872 = vpow2.f32 %v3983_v34  ;;  %v4739_v34 = vld [vmem:[%s6884_s14 + $0x38] sm:$0xff]  }
 0xf6d   :  { %v4871_v41 = vpop.eup %4870 }
 0xf6e   :  { %v2898_v53 = vadd.f32 1.0, %v4871_v41  ;;  %v4873_v22 = vpop.eup %4872  ;;  %v3128_v41 = vpack.c.bf16 %v6607_v59, %v6561_v14  ;;  %v6996_v14 = vld [vmem:[#allocation67_spill] sm:$0xff] }
 0xf6f   :  { %v2905_v42 = vadd.f32 1.0, %v4873_v22 }
 0xf70   :  { %4874 = vrcp.f32 %v2898_v53 }
 0xf71   :  { %4876 = vrcp.f32 %v2905_v42 }
 0xf7a   :  { %v4875_v55 = vpop.eup %4874 }
 0xf7b   :  { %v2908_v37 = vmul.f32 %v4875_v55, %v2889_v43  ;;  %v4877_v63 = vpop.eup %4876 }
 0xf7c   :  { %v2911_v56 = vsub.f32 1.0, %v4877_v63  ;;  %v2913_v32 = vmul.f32 %v4877_v63, %v6653_v51 }
 0xf7d   :  { %v2909_v45 = vadd.f32 %v2908_v37, %v6991_v29 }
 0xf7f   :  { %4878 = vtanh.f32 %v2909_v45 }
 0xf89   :  { %v4879_v46 = vpop.eup %4878 }
 0xf8a   :  { %v2912_v20 = vmul.f32 %v4879_v46, %v2911_v56  ;;  %v6995_v56 = vld [vmem:[#allocation66_spill] sm:$0xff] }
 0xf8c   :  { %v6699_v49 = vadd.f32 %v2913_v32, %v2912_v20 }
 0xf8e   :  { %v2918_v5 = vpack.c.bf16 %v6699_v49, %v6699_v49  ;;  %v3129_v53 = vpack.c.bf16 %v6699_v49, %v6653_v51 }
 0xf90   :  { %2952 = vmatmul.mubr.bf16.vlgmr.msra.gmra.mrb[88].mxu0 %v2918_v5  ;;  %4527 = vmatmul.mubr.bf16.vlgmr.msra.gmra.mrb[104].mxu1 %v2918_v5 }
 0xf91   :  { %3026 = vmatpush1.bf16.msra.mxu0 %v6328_v33  ;;  %4531 = vmatpush3.bf16.msra.mxu1 %v6330_v31 }
 0xf92   :  { %3027 = vmatprep.subr.bf16.mxu0 %v6334_v3  ;;  %4532 = vmatprep.subr.bf16.mxu1 %v6957_v60 }
 0xf93   :  { %3057 = vmatprep.mubr.bf16.mxu0 %v6958_v15  ;;  %4546 = vmatprep.mubr.msk.bf16.mxu1 %vm5218_vm1, %v6957_v60  ;;  %v4732_v15 = vld [vmem:[%s6884_s14] sm:$0xff]   ;;  %s5220_s14 = smov [#allocation19]  }
 0xf94   :  { %s3801_s20 = sshll.u32 %s5220_s14, 4  ;;  %s3802_s20 = int_to_ptr.vmem [resolvable:$true] %s3801_s20 }
 0xf95   :  { %3028 = vmatpush1.bf16.msra.mxu0 %v6338_v35  ;;  %4533 = vmatpush3.bf16.msra.mxu1 %v6340_v44  ;;  %s5144_s0 = scalar_lea.vmem %s3802_s20, 128  ;;  %p5149_p11 = scmp.lt.s32.totalorder %s3802_s20, %s3802_s20 }
 0xf96   :  { %3029 = vmatprep.subr.bf16.mxu0 %v6344_v61  ;;  %4534 = vmatprep.subr.bf16.mxu1 %v6957_v60  ;;  %p5145_p10 = scmp.ne.s32.totalorder %s3802_s20, %s5144_s0  ;;  %p5150_p12 = scmp.lt.s32.totalorder %s5144_s0, %s5144_s0 }
 0xf98   :  { %p5151_p13 = por %p5150_p12, %p5149_p11 }
 0xf99   :  { %3030 = vmatpush1.bf16.msra.mxu0 %v6351_v8  ;;  %4535 = vmatpush3.bf16.msra.mxu1 %v6353_v2 }
 0xf9a   :  { %3031 = vmatprep.subr.bf16.mxu0 %v6357_v0  ;;  %4536 = vmatprep.subr.bf16.mxu1 %v6957_v60  ;;  %p5152_p0 = pnand %p5151_p13, %p5145_p10 }
 0xf9d   :  { %3032 = vmatpush1.bf16.msra.mxu0 %v6361_v52  ;;  %4537 = vmatpush3.bf16.msra.mxu1 %v6363_v12 }
 0xf9e   :  { %3033 = vmatprep.subr.bf16.mxu0 %v6367_v19  ;;  %4538 = vmatprep.subr.bf16.mxu1 %v6957_v60  ;;  %v6993_v19 = vld [vmem:[#allocation65_spill] sm:$0xff] }
 0xfa1   :  { %3034 = vmatpush1.bf16.msra.mxu0 %v6371_v7  ;;  %4539 = vmatpush3.bf16.msra.mxu1 %v6373_v50 }
 0xfa2   :  { %3035 = vmatprep.subr.bf16.mxu0 %v6377_v10  ;;  %4540 = vmatprep.subr.bf16.mxu1 %v6957_v60 }
 0xfa5   :  { %3036 = vmatpush1.bf16.msra.mxu0 %v6381_v4  ;;  %4541 = vmatpush3.bf16.msra.mxu1 %v6383_v57 }
 0xfa6   :  { %3037 = vmatprep.subr.bf16.mxu0 %v6387_v24  ;;  %4542 = vmatprep.subr.bf16.mxu1 %v6957_v60 }
 0xfa9   :  { %3038 = vmatpush1.bf16.msra.mxu0 %v6391_v17  ;;  %4543 = vmatpush3.bf16.msra.mxu1 %v6393_v1 }
 0xfaa   :  { %3039 = vmatprep.subr.bf16.mxu0 %v6397_v48  ;;  %4544 = vmatprep.subr.bf16.mxu1 %v6957_v60  ;;  %v6992_v60 = vld [vmem:[#allocation64_spill] sm:$0xff] }
 0xfad   :  { %3040 = vmatpush1.bf16.msra.mxu0 %v6401_v13  ;;  %4545 = vmatpush3.bf16.msra.mxu1 %v6403_v58  ;;  %v6994_v58 = vld [vmem:[#allocation49_spill] sm:$0xff] }
 0xfae   :  { %4550 = vmatprep.subr.bf16.mxu0 %v4732_v15 }
0x1063   :  { %v2953_v33 = vpop.f32.mrb[88].mxu0  ;;  %v2994_v31 = vpop.f32.mrb[104].mxu1 }
0x1064   :  { %v2954_v3 = vadd.f32 %v2953_v33, %v6457_v11  ;;  %v2955_v35 = vpop.f32.mrb[89].mxu0  ;;  %v4528_v44 = vpop.f32.mrb[105].mxu1  ;;  %v2995_v1 = vadd.f32 %v2994_v31, %v6465_v9 }
0x1065   :  { %v2956_v61 = vadd.f32 %v2955_v35, %v6460_v54  ;;  %v2957_v8 = vpop.f32.mrb[90].mxu0  ;;  %v2997_v2 = vpop.f32.mrb[106].mxu1 }
0x1066   :  { %v3000_v0 = vadd.f32 %v2954_v3, %v6992_v60  ;;  %v2958_v52 = vpop.f32.mrb[91].mxu0  ;;  %v4529_v12 = vpop.f32.mrb[107].mxu1 }
0x1067   :  { %v3007_v7 = vadd.f32 %v2956_v61, %v6993_v19  ;;  %v6782_v61 = vld [vmem:[#allocation17] ss:$0 sm:$0xff] }
0x1068   :  { %v3984_v50 = vmul.f32 -1.442695, %v3000_v0  ;;  %v6997_v0 = vld [vmem:[#allocation51_spill] sm:$0xff] }
0x1069   :  { %v3985_v10 = vmul.f32 -1.442695, %v3007_v7 }
0x106a   :  { %4880 = vpow2.f32 %v3984_v50 }
0x106b   :  { %4882 = vpow2.f32 %v3985_v10 }
0x1074   :  { %v4881_v4 = vpop.eup %4880 }
0x1075   :  { %v3004_v57 = vadd.f32 1.0, %v4881_v4  ;;  %v4883_v24 = vpop.eup %4882 }
0x1076   :  { %v3011_v17 = vadd.f32 1.0, %v4883_v24 }
0x1077   :  { %4884 = vrcp.f32 %v3004_v57 }
0x1078   :  { %4886 = vrcp.f32 %v3011_v17 }
0x1081   :  { %v4885_v48 = vpop.eup %4884 }
0x1082   :  { %v3014_v13 = vmul.f32 %v4885_v48, %v2995_v1  ;;  %v4887_v21 = vpop.eup %4886 }
0x1083   :  { %v3017_v16 = vsub.f32 1.0, %v4887_v21  ;;  %v3019_v23 = vmul.f32 %v4887_v21, %v6699_v49 }
0x1084   :  { %v3015_v18 = vadd.f32 %v3014_v13, %v6994_v58 }
0x1086   :  { %4888 = vtanh.f32 %v3015_v18 }
0x1090   :  { %v4889_v47 = vpop.eup %4888 }
0x1091   :  { %v3018_v6 = vmul.f32 %v4889_v47, %v3017_v16 }
0x1093   :  { %v6746_v25 = vadd.f32 %v3019_v23, %v3018_v6 }
0x1095   :  { %v3024_v26 = vpack.c.bf16 %v6746_v25, %v6746_v25 }
0x1097   :  { %3058 = vmatmul.mubr.bf16.vlgmr.msra.gmra.mrb[92].mxu0 %v3024_v26  ;;  %4547 = vmatmul.mubr.bf16.vlgmr.msra.gmra.mrb[108].mxu1 %v3024_v26 }
0x1098   :  { %4551 = vmatpush3.bf16.msra.mxu0 %v4732_v15  ;;  %4566 = vmatprep.mubr.bf16.mxu0 %v3127_v28 }
0x1099   :  { %4552 = vmatprep.subr.bf16.mxu0 %v4733_v27 }
0x109c   :  { %4553 = vmatpush3.bf16.msra.mxu0 %v4733_v27 }
0x109d   :  { %4554 = vmatprep.subr.bf16.mxu0 %v4734_v30 }
0x10a0   :  { %4555 = vmatpush3.bf16.msra.mxu0 %v4734_v30 }
0x10a1   :  { %4556 = vmatprep.subr.bf16.mxu0 %v4735_v39 }
0x10a4   :  { %4557 = vmatpush3.bf16.msra.mxu0 %v4735_v39 }
0x10a5   :  { %4558 = vmatprep.subr.bf16.mxu0 %v4736_v62 }
0x10a8   :  { %4559 = vmatpush3.bf16.msra.mxu0 %v4736_v62 }
0x10a9   :  { %4560 = vmatprep.subr.bf16.mxu0 %v4737_v36 }
0x10ac   :  { %4561 = vmatpush3.bf16.msra.mxu0 %v4737_v36 }
0x10ad   :  { %4562 = vmatprep.subr.bf16.mxu0 %v4738_v40 }
0x10b0   :  { %4563 = vmatpush3.bf16.msra.mxu0 %v4738_v40 }
0x10b1   :  { %4564 = vmatprep.subr.bf16.mxu0 %v4739_v34 }
0x10b4   :  { %4565 = vmatpush3.bf16.msra.mxu0 %v4739_v34 }
0x10b7   :  { %4567 = vmatmul.mubr.bf16.vlgmr.msra.gmra.mrb[96].mxu0 %v3128_v41 }
0x10b8   :  { %4570 = vmatprep.mubr.bf16.mxu0 %v3129_v53 }
0x116a   :  { %v3059_v22 = vpop.f32.mrb[92].mxu0  ;;  %v3100_v42 = vpop.f32.mrb[108].mxu1 }
0x116b   :  { %v3060_v43 = vadd.f32 %v3059_v22, %v6457_v11  ;;  %v3061_v55 = vpop.f32.mrb[93].mxu0  ;;  %v4548_v37 = vpop.f32.mrb[109].mxu1  ;;  %v5219_v11 = vmov 1966171168   ;;  %v3101_v35 = vadd.f32 %v3100_v42, %v6465_v9 }
0x116c   :  { %v3062_v29 = vadd.f32 %v3061_v55, %v6460_v54  ;;  %v3063_v45 = vpop.f32.mrb[94].mxu0  ;;  %v3103_v63 = vpop.f32.mrb[110].mxu1  ;;  %v3270_v33 = vunpack.c.l.s4 %v5219_v11 }
0x116d   :  { %v3106_v46 = vadd.f32 %v3060_v43, %v6995_v56  ;;  %v3064_v20 = vpop.f32.mrb[95].mxu0  ;;  %v4549_v32 = vpop.f32.mrb[111].mxu1 }
0x116e   :  { %v3113_v59 = vadd.f32 %v3062_v29, %v6996_v14  ;;  %v3271_v3 = vunpack.c.0.s8 %v3270_v33 }
0x116f   :  { %v3986_v5 = vmul.f32 -1.442695, %v3106_v46 }
0x1170   :  { %v3987_v51 = vmul.f32 -1.442695, %v3113_v59  ;;  %v6785_v2 = vsub.s32 %v3271_v3, %v6967_v38 }
0x1171   :  { %4890 = vpow2.f32 %v3986_v5 }
0x1172   :  { %4892 = vpow2.f32 %v3987_v51 }
0x117b   :  { %v4891_v49 = vpop.eup %4890 }
0x117c   :  { %v3110_v15 = vadd.f32 1.0, %v4891_v49  ;;  %v4893_v31 = vpop.eup %4892 }
0x117d   :  { %v3117_v54 = vadd.f32 1.0, %v4893_v31 }
0x117e   :  { %4894 = vrcp.f32 %v3110_v15 }
0x117f   :  { %4896 = vrcp.f32 %v3117_v54 }
0x1188   :  { %v4895_v44 = vpop.eup %4894 }
0x1189   :  { %v3120_v8 = vmul.f32 %v4895_v44, %v3101_v35  ;;  %v4897_v53 = vpop.eup %4896 }
0x118a   :  { %v4568_v60 = vpop.f32.mrb[96].mxu0  ;;  %v3123_v49 = vsub.f32 1.0, %v4897_v53  ;;  %v3125_v35 = vmul.f32 %v4897_v53, %v6746_v25 }
0x118b   :  { %v3121_v52 = vadd.f32 %v3120_v8, %v6997_v0  ;;  %v3245_v12 = vadd.f32 %v4568_v60, %v6782_v61  ;;  %v3236_v19 = vpop.f32.mrb[97].mxu0 }
0x118c   :  { %v3237_v7 = vadd.f32 %v6782_v61, %v3236_v19  ;;  %v4569_v50 = vpop.f32.mrb[98].mxu0 }
0x118d   :  { %4898 = vtanh.f32 %v3121_v52  ;;  %v3400_v10 = vcombine.high %v3245_v12, %v3245_v12  ;;  %v3407_v9 = vrot.slane %v3245_v12, %v6785_v2  ;;  %v3248_v4 = vadd.f32 %v4569_v50, %v6782_v61  ;;  %v3239_v57 = vpop.f32.mrb[99].mxu0 }
0x118e   :  { %v3268_v24 = vcombine.high %v3237_v7, %v3237_v7  ;;  %v3275_v38 = vrot.slane %v3237_v7, %v6785_v2  ;;  %v3240_v17 = vadd.f32 %v6782_v61, %v3239_v57 }
0x118f   :  { %v3414_v1 = vrot.slane %v3400_v10, %v6785_v2  ;;  %v3415_v48 = vcombine.high %v3407_v9, %v3407_v9  ;;  %v3423_v13 = vrot.slane %v3407_v9, %v6785_v2  ;;  %4005 = vst.sshfl [vmem:[#allocation20 + $0x2] sm:$0x1 pattern:$0x73625140] %v3407_v9  ;;  %v3466_v58 = vcombine.high %v3248_v4, %v3248_v4 }
0x1190   :  { %v3282_v18 = vrot.slane %v3268_v24, %v6785_v2  ;;  %v3283_v21 = vcombine.high %v3275_v38, %v3275_v38  ;;  %v3291_v16 = vrot.slane %v3275_v38, %v6785_v2  ;;  %3997 = vst.sshfl [vmem:[#allocation20] sm:$0x1 pattern:$0x73625140] %v3275_v38  ;;  %v3473_v47 = vrot.slane %v3248_v4, %v6785_v2 }
0x1191   :  { %v3416_v6 = vcombine.high %v3414_v1, %v3414_v1  ;;  %v3430_v23 = vrot.slane %v3414_v1, %v6785_v2  ;;  %v3437_v26 = vrot.slane %v3415_v48, %v6785_v2  ;;  %v3445_v27 = vcombine.high %v3423_v13, %v3423_v13  ;;  %4006 = vst.sshfl [vmem:[#allocation20 + $0xa] sm:$0x1 pattern:$0x73625140] %v3415_v48 }
0x1192   :  { %4007 = vst.sshfl [vmem:[#allocation20 + $0x22] sm:$0x1 pattern:$0x73625140] %v3414_v1  ;;  %v3284_v28 = vcombine.high %v3282_v18, %v3282_v18  ;;  %v3298_v30 = vrot.slane %v3282_v18, %v6785_v2  ;;  %v3305_v39 = vrot.slane %v3283_v21, %v6785_v2  ;;  %v3313_v62 = vcombine.high %v3291_v16, %v3291_v16 }
0x1193   :  { %3998 = vst.sshfl [vmem:[#allocation20 + $0x8] sm:$0x1 pattern:$0x73625140] %v3283_v21  ;;  %v3444_v36 = vrot.slane %v3416_v6, %v6785_v2  ;;  %v3446_v40 = vcombine.high %v3430_v23, %v3430_v23  ;;  %v3447_v34 = vcombine.high %v3437_v26, %v3437_v26  ;;  %3459 = vst [vmem:[#allocation20 + $0x12] sm:$0x1] %v3445_v27 }
0x1194   :  { %3999 = vst.sshfl [vmem:[#allocation20 + $0x20] sm:$0x1 pattern:$0x73625140] %v3282_v18  ;;  %v3480_v41 = vrot.slane %v3466_v58, %v6785_v2  ;;  %v3312_v22 = vrot.slane %v3284_v28, %v6785_v2  ;;  %v3314_v42 = vcombine.high %v3298_v30, %v3298_v30  ;;  %v3315_v43 = vcombine.high %v3305_v39, %v3305_v39 }
0x1195   :  { %4009 = vst.sshfl [vmem:[#allocation20 + $0x3] sm:$0x1 pattern:$0x73625140] %v3473_v47  ;;  %3327 = vst [vmem:[#allocation20 + $0x10] sm:$0x1] %v3313_v62  ;;  %v3481_v55 = vcombine.high %v3473_v47, %v3473_v47  ;;  %v3448_v37 = vcombine.high %v3444_v36, %v3444_v36  ;;  %v3489_v45 = vrot.slane %v3473_v47, %v6785_v2 }
0x1196   :  { %4008 = vst.sshfl [vmem:[#allocation20 + $0x2a] sm:$0x1 pattern:$0x73625140] %v3416_v6  ;;  %3460 = vst [vmem:[#allocation20 + $0x1a] sm:$0x1] %v3447_v34  ;;  %v3482_v29 = vcombine.high %v3480_v41, %v3480_v41  ;;  %v3496_v63 = vrot.slane %v3480_v41, %v6785_v2  ;;  %v3316_v56 = vcombine.high %v3312_v22, %v3312_v22 }
0x1197   :  { %4000 = vst.sshfl [vmem:[#allocation20 + $0x28] sm:$0x1 pattern:$0x73625140] %v3284_v28  ;;  %3463 = vst [vmem:[#allocation20 + $0x32] sm:$0x1] %v3446_v40  ;;  %v3503_v46 = vrot.slane %v3481_v55, %v6785_v2  ;;  %v3334_v20 = vcombine.high %v3240_v17, %v3240_v17  ;;  %v3341_v32 = vrot.slane %v3240_v17, %v6785_v2  ;;  %v4899_v14 = vpop.eup %4898 }
0x1198   :  { %4011 = vst.sshfl [vmem:[#allocation20 + $0x23] sm:$0x1 pattern:$0x73625140] %v3480_v41  ;;  %3328 = vst [vmem:[#allocation20 + $0x18] sm:$0x1] %v3315_v43  ;;  %v3510_v59 = vrot.slane %v3482_v29, %v6785_v2  ;;  %v3511_v5 = vcombine.high %v3489_v45, %v3489_v45  ;;  %v3512_v51 = vcombine.high %v3496_v63, %v3496_v63 }
0x1199   :  { %3331 = vst [vmem:[#allocation20 + $0x30] sm:$0x1] %v3314_v42  ;;  %4010 = vst.sshfl [vmem:[#allocation20 + $0xb] sm:$0x1 pattern:$0x73625140] %v3481_v55  ;;  %v3513_v15 = vcombine.high %v3503_v46, %v3503_v46  ;;  %v3348_v11 = vrot.slane %v3334_v20, %v6785_v2  ;;  %v3349_v33 = vcombine.high %v3341_v32, %v3341_v32 }
0x119a   :  { %3464 = vst [vmem:[#allocation20 + $0x3a] sm:$0x1] %v3448_v37  ;;  %4012 = vst.sshfl [vmem:[#allocation20 + $0x2b] sm:$0x1 pattern:$0x73625140] %v3482_v29  ;;  %v3357_v31 = vrot.slane %v3341_v32, %v6785_v2  ;;  %v3514_v3 = vcombine.high %v3510_v59, %v3510_v59  ;;  %v3124_v54 = vmul.f32 %v4899_v14, %v3123_v49 }
0x119b   :  { %3332 = vst [vmem:[#allocation20 + $0x38] sm:$0x1] %v3316_v56  ;;  %4001 = vst.sshfl [vmem:[#allocation20 + $0x1] sm:$0x1 pattern:$0x73625140] %v3341_v32  ;;  %v3350_v44 = vcombine.high %v3348_v11, %v3348_v11  ;;  %v3364_v8 = vrot.slane %v3348_v11, %v6785_v2  ;;  %v3371_v60 = vrot.slane %v3349_v33, %v6785_v2 }
0x119c   :  { %3525 = vst [vmem:[#allocation20 + $0x13] sm:$0x1] %v3511_v5  ;;  %3529 = vst [vmem:[#allocation20 + $0x33] sm:$0x1] %v3512_v51  ;;  %v3379_v0 = vcombine.high %v3357_v31, %v3357_v31  ;;  %v3126_v52 = vadd.f32 %v3125_v35, %v3124_v54 }
0x119d   :  { %3526 = vst [vmem:[#allocation20 + $0x1b] sm:$0x1] %v3513_v15  ;;  %4002 = vst.sshfl [vmem:[#allocation20 + $0x9] sm:$0x1 pattern:$0x73625140] %v3349_v33  ;;  %v3378_v12 = vrot.slane %v3350_v44, %v6785_v2  ;;  %v3380_v19 = vcombine.high %v3364_v8, %v3364_v8  ;;  %v3381_v7 = vcombine.high %v3371_v60, %v3371_v60 }
0x119e   :  { %4003 = vst.sshfl [vmem:[#allocation20 + $0x21] sm:$0x1 pattern:$0x73625140] %v3348_v11  ;;  %3530 = vst [vmem:[#allocation20 + $0x3b] sm:$0x1] %v3514_v3  ;;  %v3130_v50 = vpack.c.bf16 %v3126_v52, %v6746_v25 }
0x119f   :  { %3393 = vst [vmem:[#allocation20 + $0x11] sm:$0x1] %v3379_v0  ;;  %4004 = vst.sshfl [vmem:[#allocation20 + $0x29] sm:$0x1 pattern:$0x73625140] %v3350_v44  ;;  %v3382_v10 = vcombine.high %v3378_v12, %v3378_v12 }
0x11a0   :  { %3394 = vst [vmem:[#allocation20 + $0x19] sm:$0x1] %v3381_v7  ;;  %3397 = vst [vmem:[#allocation20 + $0x31] sm:$0x1] %v3380_v19  ;;  %4571 = vmatmul.mubr.bf16.gmra.mrb[100].mxu0 %v3130_v50 }
0x11a1   :  { %3398 = vst [vmem:[#allocation20 + $0x39] sm:$0x1] %v3382_v10 }
0x11a2   :  { %5155 = shalt.err (!%p5152_p0)
}
0x11a3   :  { %s5156_s19 = scalar_lea.hbm %s6886_s16, 128 }
0x11a4   :  { %p5157_p1 = scmp.ne.s32.totalorder %s6886_s16, %s5156_s19  ;;  %p5160_p2 = scmp.lt.u32.totalorder %s5156_s19, %s6886_s16 }
0x11a6   :  { %p5162_p3 = pnand %p5160_p2, %p5157_p1 }
0x11a8   :  { %5165 = shalt.err (!%p5162_p3)
}
0x11a9   :  { %3804 = dma.vmem_to_hbm [thread:$0]  %s3802_s20, 128, %s6886_s16, [#allocation4]  }
0x11aa   :  { %s5221_s16 = smov [#allocation20]  }
0x11ab   :  { %s3810_s4 = sshll.u32 %s5221_s16, 4  ;;  %s3811_s4 = int_to_ptr.vmem [resolvable:$true] %s3810_s4 }
0x11ac   :  { %s5166_s7 = scalar_lea.vmem %s3811_s4, 1024  ;;  %p5171_p5 = scmp.lt.s32.totalorder %s3811_s4, %s3811_s4 }
0x11ad   :  { %p5167_p4 = scmp.ne.s32.totalorder %s3811_s4, %s5166_s7  ;;  %p5172_p6 = scmp.lt.s32.totalorder %s5166_s7, %s5166_s7 }
0x11af   :  { %p5173_p7 = por %p5172_p6, %p5171_p5 }
0x11b1   :  { %p5174_p8 = pnand %p5173_p7, %p5167_p4 }
0x1273   :  { %v4572_v25 = vpop.f32.mrb[100].mxu0 }
0x1274   :  { %v3261_v9 = vadd.f32 %v4572_v25, %v6782_v61  ;;  %v3252_v4 = vpop.f32.mrb[101].mxu0 }
0x1275   :  { %v3253_v57 = vadd.f32 %v6782_v61, %v3252_v4  ;;  %v4573_v24 = vpop.f32.mrb[102].mxu0 }
0x1276   :  { %v3664_v38 = vcombine.high %v3261_v9, %v3261_v9  ;;  %v3671_v17 = vrot.slane %v3261_v9, %v6785_v2  ;;  %v3264_v1 = vadd.f32 %v4573_v24, %v6782_v61  ;;  %v3255_v48 = vpop.f32.mrb[103].mxu0 }
0x1277   :  { %v3532_v13 = vcombine.high %v3253_v57, %v3253_v57  ;;  %v3539_v58 = vrot.slane %v3253_v57, %v6785_v2  ;;  %v3256_v18 = vadd.f32 %v6782_v61, %v3255_v48 }
0x1278   :  { %v3678_v21 = vrot.slane %v3664_v38, %v6785_v2  ;;  %v3679_v16 = vcombine.high %v3671_v17, %v3671_v17  ;;  %v3687_v47 = vrot.slane %v3671_v17, %v6785_v2  ;;  %4021 = vst.sshfl [vmem:[#allocation20 + $0x6] sm:$0x1 pattern:$0x73625140] %v3671_v17  ;;  %v3730_v6 = vcombine.high %v3264_v1, %v3264_v1 }
0x1279   :  { %v3546_v23 = vrot.slane %v3532_v13, %v6785_v2  ;;  %v3547_v26 = vcombine.high %v3539_v58, %v3539_v58  ;;  %v3555_v27 = vrot.slane %v3539_v58, %v6785_v2  ;;  %4013 = vst.sshfl [vmem:[#allocation20 + $0x4] sm:$0x1 pattern:$0x73625140] %v3539_v58  ;;  %v3737_v28 = vrot.slane %v3264_v1, %v6785_v2 }
0x127a   :  { %v3680_v30 = vcombine.high %v3678_v21, %v3678_v21  ;;  %v3694_v39 = vrot.slane %v3678_v21, %v6785_v2  ;;  %v3701_v61 = vrot.slane %v3679_v16, %v6785_v2  ;;  %v3709_v62 = vcombine.high %v3687_v47, %v3687_v47  ;;  %4022 = vst.sshfl [vmem:[#allocation20 + $0xe] sm:$0x1 pattern:$0x73625140] %v3679_v16 }
0x127b   :  { %4023 = vst.sshfl [vmem:[#allocation20 + $0x26] sm:$0x1 pattern:$0x73625140] %v3678_v21  ;;  %v3548_v36 = vcombine.high %v3546_v23, %v3546_v23  ;;  %v3562_v40 = vrot.slane %v3546_v23, %v6785_v2  ;;  %v3569_v34 = vrot.slane %v3547_v26, %v6785_v2  ;;  %v3577_v41 = vcombine.high %v3555_v27, %v3555_v27 }
0x127c   :  { %4014 = vst.sshfl [vmem:[#allocation20 + $0xc] sm:$0x1 pattern:$0x73625140] %v3547_v26  ;;  %v3708_v53 = vrot.slane %v3680_v30, %v6785_v2  ;;  %v3710_v22 = vcombine.high %v3694_v39, %v3694_v39  ;;  %v3711_v42 = vcombine.high %v3701_v61, %v3701_v61  ;;  %3723 = vst [vmem:[#allocation20 + $0x16] sm:$0x1] %v3709_v62 }
0x127d   :  { %4015 = vst.sshfl [vmem:[#allocation20 + $0x24] sm:$0x1 pattern:$0x73625140] %v3546_v23  ;;  %v3744_v43 = vrot.slane %v3730_v6, %v6785_v2  ;;  %v3576_v55 = vrot.slane %v3548_v36, %v6785_v2  ;;  %v3578_v37 = vcombine.high %v3562_v40, %v3562_v40  ;;  %v3579_v29 = vcombine.high %v3569_v34, %v3569_v34 }
0x127e   :  { %4025 = vst.sshfl [vmem:[#allocation20 + $0x7] sm:$0x1 pattern:$0x73625140] %v3737_v28  ;;  %3591 = vst [vmem:[#allocation20 + $0x14] sm:$0x1] %v3577_v41  ;;  %v3745_v45 = vcombine.high %v3737_v28, %v3737_v28  ;;  %v3712_v63 = vcombine.high %v3708_v53, %v3708_v53  ;;  %v3753_v46 = vrot.slane %v3737_v28, %v6785_v2 }
0x127f   :  { %4024 = vst.sshfl [vmem:[#allocation20 + $0x2e] sm:$0x1 pattern:$0x73625140] %v3680_v30  ;;  %3724 = vst [vmem:[#allocation20 + $0x1e] sm:$0x1] %v3711_v42  ;;  %v3746_v56 = vcombine.high %v3744_v43, %v3744_v43  ;;  %v3760_v20 = vrot.slane %v3744_v43, %v6785_v2  ;;  %v3580_v32 = vcombine.high %v3576_v55, %v3576_v55 }
0x1280   :  { %4016 = vst.sshfl [vmem:[#allocation20 + $0x2c] sm:$0x1 pattern:$0x73625140] %v3548_v36  ;;  %3727 = vst [vmem:[#allocation20 + $0x36] sm:$0x1] %v3710_v22  ;;  %v3767_v14 = vrot.slane %v3745_v45, %v6785_v2  ;;  %v3598_v59 = vcombine.high %v3256_v18, %v3256_v18  ;;  %v3605_v5 = vrot.slane %v3256_v18, %v6785_v2 }
0x1281   :  { %4027 = vst.sshfl [vmem:[#allocation20 + $0x27] sm:$0x1 pattern:$0x73625140] %v3744_v43  ;;  %3592 = vst [vmem:[#allocation20 + $0x1c] sm:$0x1] %v3579_v29  ;;  %v3774_v51 = vrot.slane %v3746_v56, %v6785_v2  ;;  %v3775_v49 = vcombine.high %v3753_v46, %v3753_v46  ;;  %v3776_v15 = vcombine.high %v3760_v20, %v3760_v20 }
0x1282   :  { %3595 = vst [vmem:[#allocation20 + $0x34] sm:$0x1] %v3578_v37  ;;  %4026 = vst.sshfl [vmem:[#allocation20 + $0xf] sm:$0x1 pattern:$0x73625140] %v3745_v45  ;;  %v3777_v11 = vcombine.high %v3767_v14, %v3767_v14  ;;  %v3612_v33 = vrot.slane %v3598_v59, %v6785_v2  ;;  %v3613_v31 = vcombine.high %v3605_v5, %v3605_v5 }
0x1283   :  { %3728 = vst [vmem:[#allocation20 + $0x3e] sm:$0x1] %v3712_v63  ;;  %4028 = vst.sshfl [vmem:[#allocation20 + $0x2f] sm:$0x1 pattern:$0x73625140] %v3746_v56  ;;  %v3621_v3 = vrot.slane %v3605_v5, %v6785_v2  ;;  %v3778_v54 = vcombine.high %v3774_v51, %v3774_v51 }
0x1284   :  { %3596 = vst [vmem:[#allocation20 + $0x3c] sm:$0x1] %v3580_v32  ;;  %4017 = vst.sshfl [vmem:[#allocation20 + $0x5] sm:$0x1 pattern:$0x73625140] %v3605_v5  ;;  %v3614_v35 = vcombine.high %v3612_v33, %v3612_v33  ;;  %v3628_v44 = vrot.slane %v3612_v33, %v6785_v2  ;;  %v3635_v8 = vrot.slane %v3613_v31, %v6785_v2 }
0x1285   :  { %3789 = vst [vmem:[#allocation20 + $0x17] sm:$0x1] %v3775_v49  ;;  %3793 = vst [vmem:[#allocation20 + $0x37] sm:$0x1] %v3776_v15  ;;  %v3643_v60 = vcombine.high %v3621_v3, %v3621_v3 }
0x1286   :  { %3790 = vst [vmem:[#allocation20 + $0x1f] sm:$0x1] %v3777_v11  ;;  %4018 = vst.sshfl [vmem:[#allocation20 + $0xd] sm:$0x1 pattern:$0x73625140] %v3613_v31  ;;  %v3642_v0 = vrot.slane %v3614_v35, %v6785_v2  ;;  %v3644_v52 = vcombine.high %v3628_v44, %v3628_v44  ;;  %v3645_v12 = vcombine.high %v3635_v8, %v3635_v8 }
0x1287   :  { %4019 = vst.sshfl [vmem:[#allocation20 + $0x25] sm:$0x1 pattern:$0x73625140] %v3612_v33  ;;  %3794 = vst [vmem:[#allocation20 + $0x3f] sm:$0x1] %v3778_v54 }
0x1288   :  { %3657 = vst [vmem:[#allocation20 + $0x15] sm:$0x1] %v3643_v60  ;;  %4020 = vst.sshfl [vmem:[#allocation20 + $0x2d] sm:$0x1 pattern:$0x73625140] %v3614_v35  ;;  %v3646_v19 = vcombine.high %v3642_v0, %v3642_v0 }
0x1289   :  { %3658 = vst [vmem:[#allocation20 + $0x1d] sm:$0x1] %v3645_v12  ;;  %3661 = vst [vmem:[#allocation20 + $0x35] sm:$0x1] %v3644_v52 }
0x128a   :  { %3662 = vst [vmem:[#allocation20 + $0x3d] sm:$0x1] %v3646_v19 }
0x128b   :  { %5177 = shalt.err (!%p5174_p8)
}
0x128c   :  { %s5178_s26 = scalar_lea.hbm %s6887_s17, 1024 }
0x128d   :  { %p5179_p9 = scmp.ne.s32.totalorder %s6887_s17, %s5178_s26  ;;  %p5182_p10 = scmp.lt.u32.totalorder %s5178_s26, %s6887_s17 }
0x128f   :  { %p5184_p11 = pnand %p5182_p10, %p5179_p9 }
0x1291   :  { %5187 = shalt.err (!%p5184_p11)
}
0x1292   :  { %s5222_s18 = smov 128   ;;  %s5223_s13 = smov 8  }
0x1293   :  { %3816 = dma.vmem_to_hbm [thread:$0]  %s3811_s4, 1024, %s6887_s17, [#allocation21], %s5222_s18, %s5222_s18, %s5223_s13  }
0x1294   :  { %5200 = dma.done.wait [#allocation4], 128  }
0x1295   :  { %5201 = vsyncadd [#allocation4], 4294967168 }
0x1296   :  { %5202 = dma.done.wait [#allocation21], 1024  }
0x1297   :  { %5203 = vsyncadd [#allocation21], 4294966272 }
0x1298   :  { %3823 = vsyncpa [#allocation3], 1 }
0x1299   :  { %3824 = vsyncpa [#allocation6], 1 }
0x129a   :  { %3825 = vsyncpa [#allocation9], 1 }
0x129b   :  { %3826 = vsyncpa [#allocation12], 1 }
0x129c   :  { %3827 = vsyncpa [#allocation15], 1 }
0x129d   :  { %3828 = vsyncpa [#allocation18], 1 }
0x129e   :  { %3829 = vsyncpa [#allocation4], 1 }
0x129f   :  { %3830 = vsyncpa [#allocation21], 1 }

</bundles_post_ra>
